<compile_context>
chip_gen: v5e
topology: v5e:2x2
jax: 0.10.0
libtpu: 0.0.40
codegen_flags: <defaults>
</compile_context>

<pallas_src>
import jax
import jax.numpy as jnp
import numpy as np
from jax import lax
from jax.scipy import linalg as jsl
from jax.experimental import pallas as pl
from jax.experimental.pallas import tpu as pltpu

# ---------------- configuration (small synthetic shapes) ----------------
B = 2            # batch
T = 8            # sequence length
C = 32           # hidden size
N = 16           # head size
H = C // N       # number of heads
DM = 32          # time-mix LoRA dim (TIME_MIX_EXTRA_DIM)
DD = 64          # time-decay LoRA dim (TIME_DECAY_EXTRA_DIM)
F = 4 * C        # ffn hidden size
TB = T * B
C2 = C * C       # flat (c_key, c_val) state width per batch

LN_EPS = 1e-5
GN_EPS = 64e-5   # nn.GroupNorm(n_head, C, eps=(1e-5) * head_size_divisor**2), divisor = 8


def _gold_finch_block_kernel(
    # inputs
    x_ref,        # (B, T, C)
    s1_ref,       # (B, 1, C)   tmix shift state
    wkv_ref,      # (B, 1, C2)  tmix wkv state, flattened block-diagonal (m = c_key*C + c_val)
    s2_ref,       # (B, 1, C)   cmix shift state
    lnp_ref,      # (6, C)      ln1 w/b, ln2 w/b, ln_x w/b
    maa_ref,      # (8, C)      maa x,w,k,v,r,g, ffn_k, ffn_r
    tmw1_ref,     # (C, 5*DM)
    tmw2_ref,     # (5*DM, 5*C) block-diagonal fused LoRA
    td_ref,       # (1, C)
    tdw1_ref,     # (C, DD)
    tdw2_ref,     # (DD, C)
    urep_ref,     # (1, C2)     time_faaaa expanded to the flat state layout
    wrkvg_ref,    # (4C, 4C)    block-diag(wr, wk, wv, wg)
    wo_ref,       # (C, C)
    wffn_ref,     # (2C, F+C)   block-diag(wkf, wrf)
    wvf_ref,      # (F, C)
    rep_ref,      # (C, C2)     selector: out[m] = in[m // C]
    repm_ref,     # (C, C2)     selector: out[m] = in[m // C] * same_head(m//C, m%C)
    tile_ref,     # (C, C2)     selector: out[m] = in[m % C]
    red_ref,      # (C2, C)     reducer: y[c] = sum_{m : m%C == c} z[m]
    pgn_ref,      # (C, C)      per-head averaging matrix (1/N on same-head entries)
    # outputs
    xout_ref,     # (B, T, C)
    s1out_ref,    # (B, 1, C)
    wkvout_ref,   # (B, 1, C2)
    s2out_ref,    # (B, 1, C)
    # scratch
    rrep_s,       # (B, T, C2)  r expanded over c_key
    wrep_s,       # (B, T, C2)  decay expanded over c_key
    kv_s,         # (B, T, C2)  masked k (x) v outer products, all steps
    rukv_s,       # (B, T, C2)  r * u * kv (current-step y contribution), all steps
    sall_s,       # (B, T, C2)  pre-update state for every timestep
):
    f32 = jnp.float32

    def layer_norm(v, w, b):
        m = jnp.mean(v, axis=-1, keepdims=True)
        var = jnp.mean(jnp.square(v - m), axis=-1, keepdims=True)
        return (v - m) * lax.rsqrt(var + LN_EPS) * w + b

    ln1_w, ln1_b = lnp_ref[0:1, :], lnp_ref[1:2, :]
    ln2_w, ln2_b = lnp_ref[2:3, :], lnp_ref[3:4, :]
    lnx_w, lnx_b = lnp_ref[4:5, :], lnp_ref[5:6, :]

    x3 = x_ref[...].astype(f32)                    # (B, T, C)
    x2d = x3.reshape(TB, C)                        # batch-major rows (b*T + t)

    # ================= RWKV6 time-mix (attention) on ln1(x) =================
    xa3 = layer_norm(x3, ln1_w, ln1_b)             # (B, T, C)
    s1out_ref[...] = xa3[:, T - 1:T, :].astype(s1out_ref.dtype)

    # token shift: xprev[:, t] = xa[:, t-1], t==0 takes the incoming shift state
    xprev = jnp.concatenate([s1_ref[...].astype(f32), xa3[:, 0:T - 1, :]], axis=1)
    dxp = (xprev - xa3).reshape(TB, C)
    xa = xa3.reshape(TB, C)

    maa_x = maa_ref[0:1, :]
    maa_w = maa_ref[1:2, :]
    maa_k = maa_ref[2:3, :]
    maa_v = maa_ref[3:4, :]
    maa_r = maa_ref[4:5, :]
    maa_g = maa_ref[5:6, :]

    # data-dependent token-shift mixing: 5-way LoRA fused into one block-diag matmul
    xxx = xa + dxp * maa_x
    t1 = jnp.tanh(jnp.dot(xxx, tmw1_ref[...], preferred_element_type=f32))     # (TB, 5*DM)
    mix = jnp.dot(t1, tmw2_ref[...], preferred_element_type=f32)               # (TB, 5*C)
    mw = mix[:, 0 * C:1 * C]
    mk = mix[:, 1 * C:2 * C]
    mv = mix[:, 2 * C:3 * C]
    mr = mix[:, 3 * C:4 * C]
    mg = mix[:, 4 * C:5 * C]

    xw = xa + dxp * (maa_w + mw)
    xk = xa + dxp * (maa_k + mk)
    xv = xa + dxp * (maa_v + mv)
    xr = xa + dxp * (maa_r + mr)
    xg = xa + dxp * (maa_g + mg)

    # fused r/k/v/g projection: one lane-dense (TB,4C) x (4C,4C) block-diagonal matmul
    rkvg = jnp.dot(jnp.concatenate([xr, xk, xv, xg], axis=-1), wrkvg_ref[...],
                   preferred_element_type=f32)                                  # (TB, 4C)
    r = rkvg[:, 0 * C:1 * C]
    k = rkvg[:, 1 * C:2 * C]
    v = rkvg[:, 2 * C:3 * C]
    glin = rkvg[:, 3 * C:4 * C]
    g = glin * jax.nn.sigmoid(glin)                                             # SiLU gate

    ww = jnp.dot(jnp.tanh(jnp.dot(xw, tdw1_ref[...], preferred_element_type=f32)),
                 tdw2_ref[...], preferred_element_type=f32)
    wdec = jnp.exp(-jnp.exp(td_ref[...] + ww))                                  # (TB, C)

    # ---- bulk expansion to the flat block-diagonal state layout (done once) ----
    # flat lane index m = c_key*C + c_val; REP picks channel m//C, TILE picks m%C,
    # REPM additionally zeroes cross-head (key,val) pairs so the state stays block-diag.
    r_rep = jnp.dot(r, rep_ref[...], preferred_element_type=f32)                # (TB, C2)
    w_rep = jnp.dot(wdec, rep_ref[...], preferred_element_type=f32)             # (TB, C2)
    k_rep = jnp.dot(k, repm_ref[...], preferred_element_type=f32)               # (TB, C2)
    v_til = jnp.dot(v, tile_ref[...], preferred_element_type=f32)               # (TB, C2)
    kv = k_rep * v_til                                                          # masked k (x) v
    rukv = r_rep * urep_ref[...] * kv                                           # r * u * kv

    rrep_s[...] = r_rep.reshape(B, T, C2)
    wrep_s[...] = w_rep.reshape(B, T, C2)
    kv_s[...] = kv.reshape(B, T, C2)
    rukv_s[...] = rukv.reshape(B, T, C2)
    wkvout_ref[...] = wkv_ref[...].astype(f32)     # running state lives in the output ref

    # ---- WKV linear-attention recurrence, vectorized over (batch, head) ----
    #   per step (pure VPU + slab store):  save S_t, then S <- w_t * S + k_t (x) v_t.
    #   The y reduction over c_key is hoisted out of the loop (single MXU matmul below).
    def step(t, carry):
        S = wkvout_ref[...]                              # (B, 1, C2) pre-update state
        sall_s[:, pl.ds(t, 1), :] = S
        wkvout_ref[...] = wrep_s[:, pl.ds(t, 1), :] * S + kv_s[:, pl.ds(t, 1), :]
        return carry

    lax.fori_loop(0, T, step, 0, unroll=True)

    #   y_t[c_val] = sum_{c_key} r_t[c_key] * (S_t + u*k_t(x)v_t)[c_key, c_val]
    z = (rrep_s[...].reshape(TB, C2) * sall_s[...].reshape(TB, C2)
         + rukv_s[...].reshape(TB, C2))
    y = jnp.dot(z, red_ref[...], preferred_element_type=f32)          # (TB, C)

    # ln_x: GroupNorm(n_head) via a per-head averaging matmul (no Python head loop)
    mean_h = jnp.dot(y, pgn_ref[...], preferred_element_type=f32)     # per-head mean
    d = y - mean_h
    var_h = jnp.dot(d * d, pgn_ref[...], preferred_element_type=f32)  # per-head variance
    yn = d * lax.rsqrt(var_h + GN_EPS) * lnx_w + lnx_b

    att_out = jnp.dot(yn * g, wo_ref[...], preferred_element_type=f32)
    x_mid = x2d + att_out                                  # residual 1 (drop0 = Identity)

    # ================= RWKV6 channel-mix (ffn) on ln2(x) =================
    xc3 = layer_norm(x_mid.reshape(B, T, C), ln2_w, ln2_b)
    s2out_ref[...] = xc3[:, T - 1:T, :].astype(s2out_ref.dtype)
    xprev2 = jnp.concatenate([s2_ref[...].astype(f32), xc3[:, 0:T - 1, :]], axis=1)
    dxp2 = (xprev2 - xc3).reshape(TB, C)
    xc = xc3.reshape(TB, C)

    maa_fk = maa_ref[6:7, :]
    maa_fr = maa_ref[7:8, :]
    xk2 = xc + dxp2 * maa_fk
    xr2 = xc + dxp2 * maa_fr

    # fused ffn key / receptance projection (block-diagonal)
    krl = jnp.dot(jnp.concatenate([xk2, xr2], axis=-1), wffn_ref[...],
                  preferred_element_type=f32)              # (TB, F + C)
    kf = jnp.square(jnp.maximum(krl[:, 0:F], 0.0))         # relu(k)**2
    kvf = jnp.dot(kf, wvf_ref[...], preferred_element_type=f32)
    ffn_out = jax.nn.sigmoid(krl[:, F:F + C]) * kvf

    xout_ref[...] = (x_mid + ffn_out).reshape(B, T, C).astype(xout_ref.dtype)


def gold_finch_layer_block(x, last_state, params):
    """x: (B, T, C). last_state = (tmix_shift (B,C), tmix_wkv (B,H,N,N), cmix_shift (B,C))."""
    f32 = jnp.float32
    s1, wkv, s2 = last_state

    # ---- fused / expanded parameters (pure param prep; done once at load time in practice) ----
    W_rkvg = jsl.block_diag(params["wr"], params["wk"], params["wv"], params["wg"])   # (4C,4C)
    W2bd = jsl.block_diag(*[params["tm_w2"][i] for i in range(5)])                    # (5DM,5C)
    W_ffn = jsl.block_diag(params["wkf"], params["wrf"])                              # (2C,F+C)

    cidx = jnp.arange(C)
    m = jnp.arange(C2)
    key_of_m = m // C
    val_of_m = m % C
    REP = (cidx[:, None] == key_of_m[None, :]).astype(f32)                 # (C, C2)
    TILE = (cidx[:, None] == val_of_m[None, :]).astype(f32)                # (C, C2)
    same_head = ((key_of_m // N) == (val_of_m // N)).astype(f32)
    REPM = REP * same_head[None, :]                                        # (C, C2)
    RED = (val_of_m[:, None] == cidx[None, :]).astype(f32)                 # (C2, C)
    PGN = ((cidx[:, None] // N) == (cidx[None, :] // N)).astype(f32) / N   # (C, C)
    u_rep = jnp.repeat(params["u"].reshape(-1).astype(f32), C)[None, :]    # (1, C2)

    # flatten the per-head wkv state into the block-diagonal flat layout (m = c_key*C + c_val)
    S0 = jnp.zeros((B, C, C), f32)
    for h in range(H):
        S0 = S0.at[:, h * N:(h + 1) * N, h * N:(h + 1) * N].set(wkv[:, h].astype(f32))
    S0 = S0.reshape(B, 1, C2)

    inputs = [
        x.astype(f32),
        s1.reshape(B, 1, C).astype(f32),
        S0,
        s2.reshape(B, 1, C).astype(f32),
        params["ln_p"], params["maa"], params["tm_w1"], W2bd,
        params["td"], params["td_w1"], params["td_w2"], u_rep,
        W_rkvg, params["wo"], W_ffn, params["wvf"],
        REP, REPM, TILE, RED, PGN,
    ]

    out_shape = (
        jax.ShapeDtypeStruct((B, T, C), f32),       # block output
        jax.ShapeDtypeStruct((B, 1, C), f32),       # tmix shift state
        jax.ShapeDtypeStruct((B, 1, C2), f32),      # tmix wkv state (flat)
        jax.ShapeDtypeStruct((B, 1, C), f32),       # cmix shift state
    )
    scratch = [
        pltpu.VMEM((B, T, C2), f32),   # r expanded
        pltpu.VMEM((B, T, C2), f32),   # decay expanded
        pltpu.VMEM((B, T, C2), f32),   # kv outer products
        pltpu.VMEM((B, T, C2), f32),   # r*u*kv
        pltpu.VMEM((B, T, C2), f32),   # pre-update state at every step
    ]
    vmem = pltpu.MemorySpace.VMEM

    x_out, s1_out, S_out, s2_out = pl.pallas_call(
        _gold_finch_block_kernel,
        out_shape=out_shape,
        in_specs=[pl.BlockSpec(memory_space=vmem)] * len(inputs),
        out_specs=tuple(pl.BlockSpec(memory_space=vmem) for _ in out_shape),
        scratch_shapes=scratch,
        compiler_params=pltpu.CompilerParams(vmem_limit_bytes=32 * 1024 * 1024),
    )(*inputs)

    # unpack the flat block-diagonal state back to (B, H, N, N)
    Sr = S_out.reshape(B, C, C)
    wkv_out = jnp.stack(
        [Sr[:, h * N:(h + 1) * N, h * N:(h + 1) * N] for h in range(H)], axis=1)
    return x_out, (s1_out.reshape(B, C), wkv_out, s2_out.reshape(B, C))


# ------------------------- pure-JAX reference (same math) -------------------------
def reference_forward(x, state, p):
    lnp, maa = p["ln_p"], p["maa"]

    def ln(v, w, b, eps=LN_EPS):
        m = jnp.mean(v, axis=-1, keepdims=True)
        var = jnp.mean(jnp.square(v - m), axis=-1, keepdims=True)
        return (v - m) * lax.rsqrt(var + eps) * w + b

    xa = ln(x, lnp[0], lnp[1])
    dxp = jnp.concatenate([state[0][:, None, :], xa[:, :-1]], axis=1) - xa
    shift1_out = xa[:, -1]

    xxx = xa + dxp * maa[0]
    t1 = jnp.tanh(xxx @ p["tm_w1"])
    mix = [t1[..., i * DM:(i + 1) * DM] @ p["tm_w2"][i] for i in range(5)]
    mw, mk, mv, mr, mg = mix
    xw = xa + dxp * (maa[1] + mw)
    xk = xa + dxp * (maa[2] + mk)
    xv = xa + dxp * (maa[3] + mv)
    xr = xa + dxp * (maa[4] + mr)
    xg = xa + dxp * (maa[5] + mg)

    r = xr @ p["wr"]; k = xk @ p["wk"]; v = xv @ p["wv"]
    g = jax.nn.silu(xg @ p["wg"])
    wdec = jnp.exp(-jnp.exp(p["td"] + jnp.tanh(xw @ p["td_w1"]) @ p["td_w2"]))

    rr = r.reshape(B, T, H, N); kk = k.reshape(B, T, H, N)
    vv = v.reshape(B, T, H, N); ww = wdec.reshape(B, T, H, N)
    u = p["u"]
    S = state[1]
    ys = []
    for t in range(T):
        kt, vt, rt, wt = kk[:, t], vv[:, t], rr[:, t], ww[:, t]
        kv = kt[..., :, None] * vt[..., None, :]
        y = jnp.sum((S + u[None, :, :, None] * kv) * rt[..., :, None], axis=-2)
        S = wt[..., :, None] * S + kv
        ys.append(y.reshape(B, C))
    y = jnp.stack(ys, axis=1)
    wkv_out = S

    yh = y.reshape(B, T, H, N)
    mh = jnp.mean(yh, axis=-1, keepdims=True)
    vh = jnp.mean(jnp.square(yh - mh), axis=-1, keepdims=True)
    yn = ((yh - mh) * lax.rsqrt(vh + GN_EPS)).reshape(B, T, C) * lnp[4] + lnp[5]
    x_mid = x + (yn * g) @ p["wo"]

    xc = ln(x_mid, lnp[2], lnp[3])
    dxp2 = jnp.concatenate([state[2][:, None, :], xc[:, :-1]], axis=1) - xc
    shift2_out = xc[:, -1]
    xk2 = xc + dxp2 * maa[6]
    xr2 = xc + dxp2 * maa[7]
    kf = jnp.square(jax.nn.relu(xk2 @ p["wkf"]))
    out = x_mid + jax.nn.sigmoid(xr2 @ p["wrf"]) * (kf @ p["wvf"])
    return out, (shift1_out, wkv_out, shift2_out)


# ------------------------- deterministic synthetic parameters -------------------------
def init_params(key):
    ks = iter(jax.random.split(key, 32))

    def nrm(shape, scale):
        return jax.random.normal(next(ks), shape, dtype=jnp.float32) * scale

    # Linear weights are stored as (in, out) so the kernel computes x @ W
    ln_p = jnp.stack([
        1.0 + nrm((C,), 0.05), nrm((C,), 0.05),   # ln1 weight, bias
        1.0 + nrm((C,), 0.05), nrm((C,), 0.05),   # ln2 weight, bias
        1.0 + nrm((C,), 0.05), nrm((C,), 0.05),   # ln_x (GroupNorm) weight, bias
    ])
    maa = jax.random.uniform(next(ks), (8, C), dtype=jnp.float32)  # x,w,k,v,r,g, ffn_k, ffn_r
    return dict(
        ln_p=ln_p,
        maa=maa,
        tm_w1=nrm((C, 5 * DM), 0.1),
        tm_w2=nrm((5, DM, C), 0.1),
        td=nrm((1, C), 0.3),
        td_w1=nrm((C, DD), 0.1),
        td_w2=nrm((DD, C), 0.1),
        u=nrm((H, N), 0.1),
        wr=nrm((C, C), C ** -0.5),
        wk=nrm((C, C), C ** -0.5),
        wv=nrm((C, C), C ** -0.5),
        wg=nrm((C, C), C ** -0.5),
        wo=nrm((C, C), C ** -0.5),
        wkf=nrm((C, F), C ** -0.5),
        wvf=nrm((F, C), F ** -0.5),
        wrf=nrm((C, C), C ** -0.5),
    )


if __name__ == "__main__":
    key = jax.random.PRNGKey(0)
    kp, kx, ks1, kw, ks2 = jax.random.split(key, 5)
    params = init_params(kp)

    x = jax.random.normal(kx, (B, T, C), dtype=jnp.float32)
    tmix_shift = jax.random.normal(ks1, (B, C), dtype=jnp.float32)
    tmix_wkv = 0.1 * jax.random.normal(kw, (B, H, N, N), dtype=jnp.float32)
    cmix_shift = jax.random.normal(ks2, (B, C), dtype=jnp.float32)
    last_state = (tmix_shift, tmix_wkv, cmix_shift)

    out_x, out_state = jax.jit(gold_finch_layer_block)(x, last_state, params)
    jax.block_until_ready((out_x, out_state))

    # sanity check against the pure-JAX reference of the same math
    ref_x, ref_state = reference_forward(x, last_state, params)
    np.testing.assert_allclose(np.asarray(out_x), np.asarray(ref_x), rtol=5e-2, atol=5e-2)
    for got, want in zip(out_state, ref_state):
        np.testing.assert_allclose(np.asarray(got), np.asarray(want), rtol=5e-2, atol=5e-2)

    print("KERNEL_OK")
</pallas_src>

<mosaic_0001>
module attributes {stable_mosaic.version = 11 : i64} {
  func.func @_gold_finch_block_kernel(%arg0: memref<2x8x32xf32, #tpu.memory_space<vmem>>, %arg1: memref<2x1x32xf32, #tpu.memory_space<vmem>>, %arg2: memref<2x1x1024xf32, #tpu.memory_space<vmem>>, %arg3: memref<2x1x32xf32, #tpu.memory_space<vmem>>, %arg4: memref<6x32xf32, #tpu.memory_space<vmem>>, %arg5: memref<8x32xf32, #tpu.memory_space<vmem>>, %arg6: memref<32x160xf32, #tpu.memory_space<vmem>>, %arg7: memref<160x160xf32, #tpu.memory_space<vmem>>, %arg8: memref<1x32xf32, #tpu.memory_space<vmem>>, %arg9: memref<32x64xf32, #tpu.memory_space<vmem>>, %arg10: memref<64x32xf32, #tpu.memory_space<vmem>>, %arg11: memref<1x1024xf32, #tpu.memory_space<vmem>>, %arg12: memref<128x128xf32, #tpu.memory_space<vmem>>, %arg13: memref<32x32xf32, #tpu.memory_space<vmem>>, %arg14: memref<64x160xf32, #tpu.memory_space<vmem>>, %arg15: memref<128x32xf32, #tpu.memory_space<vmem>>, %arg16: memref<32x1024xf32, #tpu.memory_space<vmem>>, %arg17: memref<32x1024xf32, #tpu.memory_space<vmem>>, %arg18: memref<32x1024xf32, #tpu.memory_space<vmem>>, %arg19: memref<1024x32xf32, #tpu.memory_space<vmem>>, %arg20: memref<32x32xf32, #tpu.memory_space<vmem>>, %arg21: memref<2x8x32xf32, #tpu.memory_space<vmem>>, %arg22: memref<2x1x32xf32, #tpu.memory_space<vmem>>, %arg23: memref<2x1x1024xf32, #tpu.memory_space<vmem>>, %arg24: memref<2x1x32xf32, #tpu.memory_space<vmem>>, %arg25: memref<2x8x1024xf32, #tpu.memory_space<vmem>>, %arg26: memref<2x8x1024xf32, #tpu.memory_space<vmem>>, %arg27: memref<2x8x1024xf32, #tpu.memory_space<vmem>>, %arg28: memref<2x8x1024xf32, #tpu.memory_space<vmem>>, %arg29: memref<2x8x1024xf32, #tpu.memory_space<vmem>>) attributes {dimension_semantics = [], scalar_prefetch = 0 : i64, scratch_operands = 5 : i64, tpu.core_type = #tpu.core_type<tc>} {
    %c0 = arith.constant 0 : index
    %c0_0 = arith.constant 0 : index
    %0 = vector.load %arg4[%c0, %c0_0] : memref<6x32xf32, #tpu.memory_space<vmem>>, vector<1x32xf32>
    %c1 = arith.constant 1 : index
    %c0_1 = arith.constant 0 : index
    %1 = vector.load %arg4[%c1, %c0_1] : memref<6x32xf32, #tpu.memory_space<vmem>>, vector<1x32xf32>
    %c2 = arith.constant 2 : index
    %c0_2 = arith.constant 0 : index
    %2 = vector.load %arg4[%c2, %c0_2] : memref<6x32xf32, #tpu.memory_space<vmem>>, vector<1x32xf32>
    %c3 = arith.constant 3 : index
    %c0_3 = arith.constant 0 : index
    %3 = vector.load %arg4[%c3, %c0_3] : memref<6x32xf32, #tpu.memory_space<vmem>>, vector<1x32xf32>
    %c4 = arith.constant 4 : index
    %c0_4 = arith.constant 0 : index
    %4 = vector.load %arg4[%c4, %c0_4] : memref<6x32xf32, #tpu.memory_space<vmem>>, vector<1x32xf32>
    %c5 = arith.constant 5 : index
    %c0_5 = arith.constant 0 : index
    %5 = vector.load %arg4[%c5, %c0_5] : memref<6x32xf32, #tpu.memory_space<vmem>>, vector<1x32xf32>
    %c0_6 = arith.constant 0 : index
    %c0_7 = arith.constant 0 : index
    %c0_8 = arith.constant 0 : index
    %6 = vector.load %arg0[%c0_6, %c0_7, %c0_8] : memref<2x8x32xf32, #tpu.memory_space<vmem>>, vector<2x8x32xf32>
    %7 = vector.shape_cast %6 : vector<2x8x32xf32> to vector<16x32xf32>
    %cst = arith.constant dense<0.000000e+00> : vector<2x8xf32>
    %8 = vector.multi_reduction <add>, %6, %cst [2] : vector<2x8x32xf32> to vector<2x8xf32>
    %9 = vector.shape_cast %8 : vector<2x8xf32> to vector<2x8x1xf32>
    %cst_9 = arith.constant 3.200000e+01 : f32
    %10 = vector.broadcast %cst_9 : f32 to vector<2x8x1xf32>
    %11 = arith.divf %9, %10 : vector<2x8x1xf32>
    %12 = vector.broadcast %11 : vector<2x8x1xf32> to vector<2x8x32xf32>
    %13 = arith.subf %6, %12 : vector<2x8x32xf32>
    %14 = arith.mulf %13, %13 : vector<2x8x32xf32>
    %cst_10 = arith.constant dense<0.000000e+00> : vector<2x8xf32>
    %15 = vector.multi_reduction <add>, %14, %cst_10 [2] : vector<2x8x32xf32> to vector<2x8xf32>
    %16 = vector.shape_cast %15 : vector<2x8xf32> to vector<2x8x1xf32>
    %cst_11 = arith.constant 3.200000e+01 : f32
    %17 = vector.broadcast %cst_11 : f32 to vector<2x8x1xf32>
    %18 = arith.divf %16, %17 : vector<2x8x1xf32>
    %19 = vector.broadcast %11 : vector<2x8x1xf32> to vector<2x8x32xf32>
    %20 = arith.subf %6, %19 : vector<2x8x32xf32>
    %cst_12 = arith.constant 9.99999974E-6 : f32
    %21 = vector.broadcast %cst_12 : f32 to vector<2x8x1xf32>
    %22 = arith.addf %18, %21 : vector<2x8x1xf32>
    %23 = math.rsqrt %22 : vector<2x8x1xf32>
    %24 = vector.broadcast %23 : vector<2x8x1xf32> to vector<2x8x32xf32>
    %25 = arith.mulf %20, %24 : vector<2x8x32xf32>
    %26 = vector.shape_cast %0 : vector<1x32xf32> to vector<1x1x32xf32>
    %27 = vector.broadcast %26 : vector<1x1x32xf32> to vector<2x8x32xf32>
    %28 = arith.mulf %25, %27 : vector<2x8x32xf32>
    %29 = vector.shape_cast %1 : vector<1x32xf32> to vector<1x1x32xf32>
    %30 = vector.broadcast %29 : vector<1x1x32xf32> to vector<2x8x32xf32>
    %31 = arith.addf %28, %30 : vector<2x8x32xf32>
    %32 = vector.extract_strided_slice %31 {offsets = [0, 7, 0], sizes = [2, 1, 32], strides = [1, 1, 1]} : vector<2x8x32xf32> to vector<2x1x32xf32>
    %c0_13 = arith.constant 0 : index
    %c0_14 = arith.constant 0 : index
    %c0_15 = arith.constant 0 : index
    %33 = vector.load %arg22[%c0_13, %c0_14, %c0_15] : memref<2x1x32xf32, #tpu.memory_space<vmem>>, vector<2x1x32xf32>
    tpu.vector_store %arg22[%c0_13, %c0_14, %c0_15], %32 {strides = array<i32>} : memref<2x1x32xf32, #tpu.memory_space<vmem>>, vector<2x1x32xf32>,
    %c0_16 = arith.constant 0 : index
    %c0_17 = arith.constant 0 : index
    %c0_18 = arith.constant 0 : index
    %34 = vector.load %arg1[%c0_16, %c0_17, %c0_18] : memref<2x1x32xf32, #tpu.memory_space<vmem>>, vector<2x1x32xf32>
    %35 = vector.extract_strided_slice %31 {offsets = [0, 0, 0], sizes = [2, 7, 32], strides = [1, 1, 1]} : vector<2x8x32xf32> to vector<2x7x32xf32>
    %36 = tpu.concatenate %34, %35 in 1 : vector<2x1x32xf32>, vector<2x7x32xf32> -> vector<2x8x32xf32>
    %37 = arith.subf %36, %31 : vector<2x8x32xf32>
    %38 = vector.shape_cast %37 : vector<2x8x32xf32> to vector<16x32xf32>
    %39 = vector.shape_cast %31 : vector<2x8x32xf32> to vector<16x32xf32>
    %c0_19 = arith.constant 0 : index
    %c0_20 = arith.constant 0 : index
    %40 = vector.load %arg5[%c0_19, %c0_20] : memref<8x32xf32, #tpu.memory_space<vmem>>, vector<1x32xf32>
    %c1_21 = arith.constant 1 : index
    %c0_22 = arith.constant 0 : index
    %41 = vector.load %arg5[%c1_21, %c0_22] : memref<8x32xf32, #tpu.memory_space<vmem>>, vector<1x32xf32>
    %c2_23 = arith.constant 2 : index
    %c0_24 = arith.constant 0 : index
    %42 = vector.load %arg5[%c2_23, %c0_24] : memref<8x32xf32, #tpu.memory_space<vmem>>, vector<1x32xf32>
    %c3_25 = arith.constant 3 : index
    %c0_26 = arith.constant 0 : index
    %43 = vector.load %arg5[%c3_25, %c0_26] : memref<8x32xf32, #tpu.memory_space<vmem>>, vector<1x32xf32>
    %c4_27 = arith.constant 4 : index
    %c0_28 = arith.constant 0 : index
    %44 = vector.load %arg5[%c4_27, %c0_28] : memref<8x32xf32, #tpu.memory_space<vmem>>, vector<1x32xf32>
    %c5_29 = arith.constant 5 : index
    %c0_30 = arith.constant 0 : index
    %45 = vector.load %arg5[%c5_29, %c0_30] : memref<8x32xf32, #tpu.memory_space<vmem>>, vector<1x32xf32>
    %46 = vector.broadcast %40 : vector<1x32xf32> to vector<16x32xf32>
    %47 = arith.mulf %38, %46 : vector<16x32xf32>
    %48 = arith.addf %39, %47 : vector<16x32xf32>
    %c0_31 = arith.constant 0 : index
    %c0_32 = arith.constant 0 : index
    %49 = vector.load %arg6[%c0_31, %c0_32] : memref<32x160xf32, #tpu.memory_space<vmem>>, vector<32x160xf32>
    %cst_33 = arith.constant dense<0.000000e+00> : vector<16x160xf32>
    %50 = tpu.matmul %48, %49, %cst_33 {dimension_numbers = #tpu.dot_dimension_numbers<[1], [0], [0], [1], [0, 0, 1, 1], [], []>} : vector<16x32xf32>, vector<32x160xf32>, vector<16x160xf32> -> vector<16x160xf32>
    %51 = math.tanh %50 : vector<16x160xf32>
    %c0_34 = arith.constant 0 : index
    %c0_35 = arith.constant 0 : index
    %52 = vector.load %arg7[%c0_34, %c0_35] : memref<160x160xf32, #tpu.memory_space<vmem>>, vector<160x160xf32>
    %cst_36 = arith.constant dense<0.000000e+00> : vector<16x160xf32>
    %53 = tpu.matmul %51, %52, %cst_36 {dimension_numbers = #tpu.dot_dimension_numbers<[1], [0], [0], [1], [0, 0, 1, 1], [], []>} : vector<16x160xf32>, vector<160x160xf32>, vector<16x160xf32> -> vector<16x160xf32>
    %54 = vector.extract_strided_slice %53 {offsets = [0, 0], sizes = [16, 32], strides = [1, 1]} : vector<16x160xf32> to vector<16x32xf32>
    %55 = vector.extract_strided_slice %53 {offsets = [0, 32], sizes = [16, 32], strides = [1, 1]} : vector<16x160xf32> to vector<16x32xf32>
    %56 = vector.extract_strided_slice %53 {offsets = [0, 64], sizes = [16, 32], strides = [1, 1]} : vector<16x160xf32> to vector<16x32xf32>
    %57 = vector.extract_strided_slice %53 {offsets = [0, 96], sizes = [16, 32], strides = [1, 1]} : vector<16x160xf32> to vector<16x32xf32>
    %58 = vector.extract_strided_slice %53 {offsets = [0, 128], sizes = [16, 32], strides = [1, 1]} : vector<16x160xf32> to vector<16x32xf32>
    %59 = vector.broadcast %41 : vector<1x32xf32> to vector<16x32xf32>
    %60 = arith.addf %59, %54 : vector<16x32xf32>
    %61 = arith.mulf %38, %60 : vector<16x32xf32>
    %62 = arith.addf %39, %61 : vector<16x32xf32>
    %63 = vector.broadcast %42 : vector<1x32xf32> to vector<16x32xf32>
    %64 = arith.addf %63, %55 : vector<16x32xf32>
    %65 = arith.mulf %38, %64 : vector<16x32xf32>
    %66 = arith.addf %39, %65 : vector<16x32xf32>
    %67 = vector.broadcast %43 : vector<1x32xf32> to vector<16x32xf32>
    %68 = arith.addf %67, %56 : vector<16x32xf32>
    %69 = arith.mulf %38, %68 : vector<16x32xf32>
    %70 = arith.addf %39, %69 : vector<16x32xf32>
    %71 = vector.broadcast %44 : vector<1x32xf32> to vector<16x32xf32>
    %72 = arith.addf %71, %57 : vector<16x32xf32>
    %73 = arith.mulf %38, %72 : vector<16x32xf32>
    %74 = arith.addf %39, %73 : vector<16x32xf32>
    %75 = vector.broadcast %45 : vector<1x32xf32> to vector<16x32xf32>
    %76 = arith.addf %75, %58 : vector<16x32xf32>
    %77 = arith.mulf %38, %76 : vector<16x32xf32>
    %78 = arith.addf %39, %77 : vector<16x32xf32>
    %79 = tpu.concatenate %74, %66, %70, %78 in 1 : vector<16x32xf32>, vector<16x32xf32>, vector<16x32xf32>, vector<16x32xf32> -> vector<16x128xf32>
    %c0_37 = arith.constant 0 : index
    %c0_38 = arith.constant 0 : index
    %80 = vector.load %arg12[%c0_37, %c0_38] : memref<128x128xf32, #tpu.memory_space<vmem>>, vector<128x128xf32>
    %cst_39 = arith.constant dense<0.000000e+00> : vector<16x128xf32>
    %81 = tpu.matmul %79, %80, %cst_39 {dimension_numbers = #tpu.dot_dimension_numbers<[1], [0], [0], [1], [0, 0, 1, 1], [], []>} : vector<16x128xf32>, vector<128x128xf32>, vector<16x128xf32> -> vector<16x128xf32>
    %82 = vector.extract_strided_slice %81 {offsets = [0, 0], sizes = [16, 32], strides = [1, 1]} : vector<16x128xf32> to vector<16x32xf32>
    %83 = vector.extract_strided_slice %81 {offsets = [0, 32], sizes = [16, 32], strides = [1, 1]} : vector<16x128xf32> to vector<16x32xf32>
    %84 = vector.extract_strided_slice %81 {offsets = [0, 64], sizes = [16, 32], strides = [1, 1]} : vector<16x128xf32> to vector<16x32xf32>
    %85 = vector.extract_strided_slice %81 {offsets = [0, 96], sizes = [16, 32], strides = [1, 1]} : vector<16x128xf32> to vector<16x32xf32>
    %86 = arith.negf %85 : vector<16x32xf32>
    %87 = math.exp %86 : vector<16x32xf32>
    %cst_40 = arith.constant 1.000000e+00 : f32
    %88 = vector.broadcast %cst_40 : f32 to vector<16x32xf32>
    %89 = arith.addf %88, %87 : vector<16x32xf32>
    %90 = arith.divf %88, %89 : vector<16x32xf32>
    %91 = arith.mulf %85, %90 : vector<16x32xf32>
    %c0_41 = arith.constant 0 : index
    %c0_42 = arith.constant 0 : index
    %92 = vector.load %arg9[%c0_41, %c0_42] : memref<32x64xf32, #tpu.memory_space<vmem>>, vector<32x64xf32>
    %cst_43 = arith.constant dense<0.000000e+00> : vector<16x64xf32>
    %93 = tpu.matmul %62, %92, %cst_43 {dimension_numbers = #tpu.dot_dimension_numbers<[1], [0], [0], [1], [0, 0, 1, 1], [], []>} : vector<16x32xf32>, vector<32x64xf32>, vector<16x64xf32> -> vector<16x64xf32>
    %94 = math.tanh %93 : vector<16x64xf32>
    %c0_44 = arith.constant 0 : index
    %c0_45 = arith.constant 0 : index
    %95 = vector.load %arg10[%c0_44, %c0_45] : memref<64x32xf32, #tpu.memory_space<vmem>>, vector<64x32xf32>
    %cst_46 = arith.constant dense<0.000000e+00> : vector<16x32xf32>
    %96 = tpu.matmul %94, %95, %cst_46 {dimension_numbers = #tpu.dot_dimension_numbers<[1], [0], [0], [1], [0, 0, 1, 1], [], []>} : vector<16x64xf32>, vector<64x32xf32>, vector<16x32xf32> -> vector<16x32xf32>
    %c0_47 = arith.constant 0 : index
    %c0_48 = arith.constant 0 : index
    %97 = vector.load %arg8[%c0_47, %c0_48] : memref<1x32xf32, #tpu.memory_space<vmem>>, vector<1x32xf32>
    %98 = vector.broadcast %97 : vector<1x32xf32> to vector<16x32xf32>
    %99 = arith.addf %98, %96 : vector<16x32xf32>
    %100 = math.exp %99 : vector<16x32xf32>
    %cst_49 = arith.constant 0.000000e+00 : f32
    %101 = vector.broadcast %cst_49 : f32 to vector<16x32xf32>
    %102 = arith.subf %101, %100 : vector<16x32xf32>
    %103 = math.exp %102 : vector<16x32xf32>
    %c0_50 = arith.constant 0 : index
    %c0_51 = arith.constant 0 : index
    %104 = vector.load %arg16[%c0_50, %c0_51] : memref<32x1024xf32, #tpu.memory_space<vmem>>, vector<32x1024xf32>
    %cst_52 = arith.constant dense<0.000000e+00> : vector<16x1024xf32>
    %105 = tpu.matmul %82, %104, %cst_52 {dimension_numbers = #tpu.dot_dimension_numbers<[1], [0], [0], [1], [0, 0, 1, 1], [], []>} : vector<16x32xf32>, vector<32x1024xf32>, vector<16x1024xf32> -> vector<16x1024xf32>
    %c0_53 = arith.constant 0 : index
    %c0_54 = arith.constant 0 : index
    %106 = vector.load %arg16[%c0_53, %c0_54] : memref<32x1024xf32, #tpu.memory_space<vmem>>, vector<32x1024xf32>
    %cst_55 = arith.constant dense<0.000000e+00> : vector<16x1024xf32>
    %107 = tpu.matmul %103, %106, %cst_55 {dimension_numbers = #tpu.dot_dimension_numbers<[1], [0], [0], [1], [0, 0, 1, 1], [], []>} : vector<16x32xf32>, vector<32x1024xf32>, vector<16x1024xf32> -> vector<16x1024xf32>
    %c0_56 = arith.constant 0 : index
    %c0_57 = arith.constant 0 : index
    %108 = vector.load %arg17[%c0_56, %c0_57] : memref<32x1024xf32, #tpu.memory_space<vmem>>, vector<32x1024xf32>
    %cst_58 = arith.constant dense<0.000000e+00> : vector<16x1024xf32>
    %109 = tpu.matmul %83, %108, %cst_58 {dimension_numbers = #tpu.dot_dimension_numbers<[1], [0], [0], [1], [0, 0, 1, 1], [], []>} : vector<16x32xf32>, vector<32x1024xf32>, vector<16x1024xf32> -> vector<16x1024xf32>
    %c0_59 = arith.constant 0 : index
    %c0_60 = arith.constant 0 : index
    %110 = vector.load %arg18[%c0_59, %c0_60] : memref<32x1024xf32, #tpu.memory_space<vmem>>, vector<32x1024xf32>
    %cst_61 = arith.constant dense<0.000000e+00> : vector<16x1024xf32>
    %111 = tpu.matmul %84, %110, %cst_61 {dimension_numbers = #tpu.dot_dimension_numbers<[1], [0], [0], [1], [0, 0, 1, 1], [], []>} : vector<16x32xf32>, vector<32x1024xf32>, vector<16x1024xf32> -> vector<16x1024xf32>
    %112 = arith.mulf %109, %111 : vector<16x1024xf32>
    %c0_62 = arith.constant 0 : index
    %c0_63 = arith.constant 0 : index
    %113 = vector.load %arg11[%c0_62, %c0_63] : memref<1x1024xf32, #tpu.memory_space<vmem>>, vector<1x1024xf32>
    %114 = vector.broadcast %113 : vector<1x1024xf32> to vector<16x1024xf32>
    %115 = arith.mulf %105, %114 : vector<16x1024xf32>
    %116 = arith.mulf %115, %112 : vector<16x1024xf32>
    %117 = vector.shape_cast %105 : vector<16x1024xf32> to vector<2x8x1024xf32>
    %c0_64 = arith.constant 0 : index
    %c0_65 = arith.constant 0 : index
    %c0_66 = arith.constant 0 : index
    %118 = vector.load %arg25[%c0_64, %c0_65, %c0_66] : memref<2x8x1024xf32, #tpu.memory_space<vmem>>, vector<2x8x1024xf32>
    tpu.vector_store %arg25[%c0_64, %c0_65, %c0_66], %117 {strides = array<i32>} : memref<2x8x1024xf32, #tpu.memory_space<vmem>>, vector<2x8x1024xf32>,
    %119 = vector.shape_cast %107 : vector<16x1024xf32> to vector<2x8x1024xf32>
    %c0_67 = arith.constant 0 : index
    %c0_68 = arith.constant 0 : index
    %c0_69 = arith.constant 0 : index
    %120 = vector.load %arg26[%c0_67, %c0_68, %c0_69] : memref<2x8x1024xf32, #tpu.memory_space<vmem>>, vector<2x8x1024xf32>
    tpu.vector_store %arg26[%c0_67, %c0_68, %c0_69], %119 {strides = array<i32>} : memref<2x8x1024xf32, #tpu.memory_space<vmem>>, vector<2x8x1024xf32>,
    %121 = vector.shape_cast %112 : vector<16x1024xf32> to vector<2x8x1024xf32>
    %c0_70 = arith.constant 0 : index
    %c0_71 = arith.constant 0 : index
    %c0_72 = arith.constant 0 : index
    %122 = vector.load %arg27[%c0_70, %c0_71, %c0_72] : memref<2x8x1024xf32, #tpu.memory_space<vmem>>, vector<2x8x1024xf32>
    tpu.vector_store %arg27[%c0_70, %c0_71, %c0_72], %121 {strides = array<i32>} : memref<2x8x1024xf32, #tpu.memory_space<vmem>>, vector<2x8x1024xf32>,
    %123 = vector.shape_cast %116 : vector<16x1024xf32> to vector<2x8x1024xf32>
    %c0_73 = arith.constant 0 : index
    %c0_74 = arith.constant 0 : index
    %c0_75 = arith.constant 0 : index
    %124 = vector.load %arg28[%c0_73, %c0_74, %c0_75] : memref<2x8x1024xf32, #tpu.memory_space<vmem>>, vector<2x8x1024xf32>
    tpu.vector_store %arg28[%c0_73, %c0_74, %c0_75], %123 {strides = array<i32>} : memref<2x8x1024xf32, #tpu.memory_space<vmem>>, vector<2x8x1024xf32>,
    %c0_76 = arith.constant 0 : index
    %c0_77 = arith.constant 0 : index
    %c0_78 = arith.constant 0 : index
    %125 = vector.load %arg2[%c0_76, %c0_77, %c0_78] : memref<2x1x1024xf32, #tpu.memory_space<vmem>>, vector<2x1x1024xf32>
    %c0_79 = arith.constant 0 : index
    %c0_80 = arith.constant 0 : index
    %c0_81 = arith.constant 0 : index
    %126 = vector.load %arg23[%c0_79, %c0_80, %c0_81] : memref<2x1x1024xf32, #tpu.memory_space<vmem>>, vector<2x1x1024xf32>
    tpu.vector_store %arg23[%c0_79, %c0_80, %c0_81], %125 {strides = array<i32>} : memref<2x1x1024xf32, #tpu.memory_space<vmem>>, vector<2x1x1024xf32>,
    %c0_i32 = arith.constant 0 : i32
    %c0_82 = arith.constant 0 : index
    %c0_83 = arith.constant 0 : index
    %c0_84 = arith.constant 0 : index
    %127 = vector.load %arg23[%c0_82, %c0_83, %c0_84] : memref<2x1x1024xf32, #tpu.memory_space<vmem>>, vector<2x1x1024xf32>
    %c0_85 = arith.constant 0 : index
    %128 = arith.index_cast %c0_i32 : i32 to index
    %c0_86 = arith.constant 0 : index
    %129 = vector.load %arg29[%c0_85, %128, %c0_86] : memref<2x8x1024xf32, #tpu.memory_space<vmem>>, vector<2x1x1024xf32>
    tpu.vector_store %arg29[%c0_85, %128, %c0_86], %127 {strides = array<i32>} : memref<2x8x1024xf32, #tpu.memory_space<vmem>>, vector<2x1x1024xf32>,
    %c0_87 = arith.constant 0 : index
    %130 = arith.index_cast %c0_i32 : i32 to index
    %c0_88 = arith.constant 0 : index
    %131 = vector.load %arg26[%c0_87, %130, %c0_88] : memref<2x8x1024xf32, #tpu.memory_space<vmem>>, vector<2x1x1024xf32>
    %132 = arith.mulf %131, %127 : vector<2x1x1024xf32>
    %c0_89 = arith.constant 0 : index
    %133 = arith.index_cast %c0_i32 : i32 to index
    %c0_90 = arith.constant 0 : index
    %134 = vector.load %arg27[%c0_89, %133, %c0_90] : memref<2x8x1024xf32, #tpu.memory_space<vmem>>, vector<2x1x1024xf32>
    %135 = arith.addf %132, %134 : vector<2x1x1024xf32>
    %c0_91 = arith.constant 0 : index
    %c0_92 = arith.constant 0 : index
    %c0_93 = arith.constant 0 : index
    %136 = vector.load %arg23[%c0_91, %c0_92, %c0_93] : memref<2x1x1024xf32, #tpu.memory_space<vmem>>, vector<2x1x1024xf32>
    tpu.vector_store %arg23[%c0_91, %c0_92, %c0_93], %135 {strides = array<i32>} : memref<2x1x1024xf32, #tpu.memory_space<vmem>>, vector<2x1x1024xf32>,
    %c1_i32 = arith.constant 1 : i32
    %c0_94 = arith.constant 0 : index
    %c0_95 = arith.constant 0 : index
    %c0_96 = arith.constant 0 : index
    %137 = vector.load %arg23[%c0_94, %c0_95, %c0_96] : memref<2x1x1024xf32, #tpu.memory_space<vmem>>, vector<2x1x1024xf32>
    %c0_97 = arith.constant 0 : index
    %138 = arith.index_cast %c1_i32 : i32 to index
    %c0_98 = arith.constant 0 : index
    %139 = vector.load %arg29[%c0_97, %138, %c0_98] : memref<2x8x1024xf32, #tpu.memory_space<vmem>>, vector<2x1x1024xf32>
    tpu.vector_store %arg29[%c0_97, %138, %c0_98], %137 {strides = array<i32>} : memref<2x8x1024xf32, #tpu.memory_space<vmem>>, vector<2x1x1024xf32>,
    %c0_99 = arith.constant 0 : index
    %140 = arith.index_cast %c1_i32 : i32 to index
    %c0_100 = arith.constant 0 : index
    %141 = vector.load %arg26[%c0_99, %140, %c0_100] : memref<2x8x1024xf32, #tpu.memory_space<vmem>>, vector<2x1x1024xf32>
    %142 = arith.mulf %141, %137 : vector<2x1x1024xf32>
    %c0_101 = arith.constant 0 : index
    %143 = arith.index_cast %c1_i32 : i32 to index
    %c0_102 = arith.constant 0 : index
    %144 = vector.load %arg27[%c0_101, %143, %c0_102] : memref<2x8x1024xf32, #tpu.memory_space<vmem>>, vector<2x1x1024xf32>
    %145 = arith.addf %142, %144 : vector<2x1x1024xf32>
    %c0_103 = arith.constant 0 : index
    %c0_104 = arith.constant 0 : index
    %c0_105 = arith.constant 0 : index
    %146 = vector.load %arg23[%c0_103, %c0_104, %c0_105] : memref<2x1x1024xf32, #tpu.memory_space<vmem>>, vector<2x1x1024xf32>
    tpu.vector_store %arg23[%c0_103, %c0_104, %c0_105], %145 {strides = array<i32>} : memref<2x1x1024xf32, #tpu.memory_space<vmem>>, vector<2x1x1024xf32>,
    %c2_i32 = arith.constant 2 : i32
    %c0_106 = arith.constant 0 : index
    %c0_107 = arith.constant 0 : index
    %c0_108 = arith.constant 0 : index
    %147 = vector.load %arg23[%c0_106, %c0_107, %c0_108] : memref<2x1x1024xf32, #tpu.memory_space<vmem>>, vector<2x1x1024xf32>
    %c0_109 = arith.constant 0 : index
    %148 = arith.index_cast %c2_i32 : i32 to index
    %c0_110 = arith.constant 0 : index
    %149 = vector.load %arg29[%c0_109, %148, %c0_110] : memref<2x8x1024xf32, #tpu.memory_space<vmem>>, vector<2x1x1024xf32>
    tpu.vector_store %arg29[%c0_109, %148, %c0_110], %147 {strides = array<i32>} : memref<2x8x1024xf32, #tpu.memory_space<vmem>>, vector<2x1x1024xf32>,
    %c0_111 = arith.constant 0 : index
    %150 = arith.index_cast %c2_i32 : i32 to index
    %c0_112 = arith.constant 0 : index
    %151 = vector.load %arg26[%c0_111, %150, %c0_112] : memref<2x8x1024xf32, #tpu.memory_space<vmem>>, vector<2x1x1024xf32>
    %152 = arith.mulf %151, %147 : vector<2x1x1024xf32>
    %c0_113 = arith.constant 0 : index
    %153 = arith.index_cast %c2_i32 : i32 to index
    %c0_114 = arith.constant 0 : index
    %154 = vector.load %arg27[%c0_113, %153, %c0_114] : memref<2x8x1024xf32, #tpu.memory_space<vmem>>, vector<2x1x1024xf32>
    %155 = arith.addf %152, %154 : vector<2x1x1024xf32>
    %c0_115 = arith.constant 0 : index
    %c0_116 = arith.constant 0 : index
    %c0_117 = arith.constant 0 : index
    %156 = vector.load %arg23[%c0_115, %c0_116, %c0_117] : memref<2x1x1024xf32, #tpu.memory_space<vmem>>, vector<2x1x1024xf32>
    tpu.vector_store %arg23[%c0_115, %c0_116, %c0_117], %155 {strides = array<i32>} : memref<2x1x1024xf32, #tpu.memory_space<vmem>>, vector<2x1x1024xf32>,
    %c3_i32 = arith.constant 3 : i32
    %c0_118 = arith.constant 0 : index
    %c0_119 = arith.constant 0 : index
    %c0_120 = arith.constant 0 : index
    %157 = vector.load %arg23[%c0_118, %c0_119, %c0_120] : memref<2x1x1024xf32, #tpu.memory_space<vmem>>, vector<2x1x1024xf32>
    %c0_121 = arith.constant 0 : index
    %158 = arith.index_cast %c3_i32 : i32 to index
    %c0_122 = arith.constant 0 : index
    %159 = vector.load %arg29[%c0_121, %158, %c0_122] : memref<2x8x1024xf32, #tpu.memory_space<vmem>>, vector<2x1x1024xf32>
    tpu.vector_store %arg29[%c0_121, %158, %c0_122], %157 {strides = array<i32>} : memref<2x8x1024xf32, #tpu.memory_space<vmem>>, vector<2x1x1024xf32>,
    %c0_123 = arith.constant 0 : index
    %160 = arith.index_cast %c3_i32 : i32 to index
    %c0_124 = arith.constant 0 : index
    %161 = vector.load %arg26[%c0_123, %160, %c0_124] : memref<2x8x1024xf32, #tpu.memory_space<vmem>>, vector<2x1x1024xf32>
    %162 = arith.mulf %161, %157 : vector<2x1x1024xf32>
    %c0_125 = arith.constant 0 : index
    %163 = arith.index_cast %c3_i32 : i32 to index
    %c0_126 = arith.constant 0 : index
    %164 = vector.load %arg27[%c0_125, %163, %c0_126] : memref<2x8x1024xf32, #tpu.memory_space<vmem>>, vector<2x1x1024xf32>
    %165 = arith.addf %162, %164 : vector<2x1x1024xf32>
    %c0_127 = arith.constant 0 : index
    %c0_128 = arith.constant 0 : index
    %c0_129 = arith.constant 0 : index
    %166 = vector.load %arg23[%c0_127, %c0_128, %c0_129] : memref<2x1x1024xf32, #tpu.memory_space<vmem>>, vector<2x1x1024xf32>
    tpu.vector_store %arg23[%c0_127, %c0_128, %c0_129], %165 {strides = array<i32>} : memref<2x1x1024xf32, #tpu.memory_space<vmem>>, vector<2x1x1024xf32>,
    %c4_i32 = arith.constant 4 : i32
    %c0_130 = arith.constant 0 : index
    %c0_131 = arith.constant 0 : index
    %c0_132 = arith.constant 0 : index
    %167 = vector.load %arg23[%c0_130, %c0_131, %c0_132] : memref<2x1x1024xf32, #tpu.memory_space<vmem>>, vector<2x1x1024xf32>
    %c0_133 = arith.constant 0 : index
    %168 = arith.index_cast %c4_i32 : i32 to index
    %c0_134 = arith.constant 0 : index
    %169 = vector.load %arg29[%c0_133, %168, %c0_134] : memref<2x8x1024xf32, #tpu.memory_space<vmem>>, vector<2x1x1024xf32>
    tpu.vector_store %arg29[%c0_133, %168, %c0_134], %167 {strides = array<i32>} : memref<2x8x1024xf32, #tpu.memory_space<vmem>>, vector<2x1x1024xf32>,
    %c0_135 = arith.constant 0 : index
    %170 = arith.index_cast %c4_i32 : i32 to index
    %c0_136 = arith.constant 0 : index
    %171 = vector.load %arg26[%c0_135, %170, %c0_136] : memref<2x8x1024xf32, #tpu.memory_space<vmem>>, vector<2x1x1024xf32>
    %172 = arith.mulf %171, %167 : vector<2x1x1024xf32>
    %c0_137 = arith.constant 0 : index
    %173 = arith.index_cast %c4_i32 : i32 to index
    %c0_138 = arith.constant 0 : index
    %174 = vector.load %arg27[%c0_137, %173, %c0_138] : memref<2x8x1024xf32, #tpu.memory_space<vmem>>, vector<2x1x1024xf32>
    %175 = arith.addf %172, %174 : vector<2x1x1024xf32>
    %c0_139 = arith.constant 0 : index
    %c0_140 = arith.constant 0 : index
    %c0_141 = arith.constant 0 : index
    %176 = vector.load %arg23[%c0_139, %c0_140, %c0_141] : memref<2x1x1024xf32, #tpu.memory_space<vmem>>, vector<2x1x1024xf32>
    tpu.vector_store %arg23[%c0_139, %c0_140, %c0_141], %175 {strides = array<i32>} : memref<2x1x1024xf32, #tpu.memory_space<vmem>>, vector<2x1x1024xf32>,
    %c5_i32 = arith.constant 5 : i32
    %c0_142 = arith.constant 0 : index
    %c0_143 = arith.constant 0 : index
    %c0_144 = arith.constant 0 : index
    %177 = vector.load %arg23[%c0_142, %c0_143, %c0_144] : memref<2x1x1024xf32, #tpu.memory_space<vmem>>, vector<2x1x1024xf32>
    %c0_145 = arith.constant 0 : index
    %178 = arith.index_cast %c5_i32 : i32 to index
    %c0_146 = arith.constant 0 : index
    %179 = vector.load %arg29[%c0_145, %178, %c0_146] : memref<2x8x1024xf32, #tpu.memory_space<vmem>>, vector<2x1x1024xf32>
    tpu.vector_store %arg29[%c0_145, %178, %c0_146], %177 {strides = array<i32>} : memref<2x8x1024xf32, #tpu.memory_space<vmem>>, vector<2x1x1024xf32>,
    %c0_147 = arith.constant 0 : index
    %180 = arith.index_cast %c5_i32 : i32 to index
    %c0_148 = arith.constant 0 : index
    %181 = vector.load %arg26[%c0_147, %180, %c0_148] : memref<2x8x1024xf32, #tpu.memory_space<vmem>>, vector<2x1x1024xf32>
    %182 = arith.mulf %181, %177 : vector<2x1x1024xf32>
    %c0_149 = arith.constant 0 : index
    %183 = arith.index_cast %c5_i32 : i32 to index
    %c0_150 = arith.constant 0 : index
    %184 = vector.load %arg27[%c0_149, %183, %c0_150] : memref<2x8x1024xf32, #tpu.memory_space<vmem>>, vector<2x1x1024xf32>
    %185 = arith.addf %182, %184 : vector<2x1x1024xf32>
    %c0_151 = arith.constant 0 : index
    %c0_152 = arith.constant 0 : index
    %c0_153 = arith.constant 0 : index
    %186 = vector.load %arg23[%c0_151, %c0_152, %c0_153] : memref<2x1x1024xf32, #tpu.memory_space<vmem>>, vector<2x1x1024xf32>
    tpu.vector_store %arg23[%c0_151, %c0_152, %c0_153], %185 {strides = array<i32>} : memref<2x1x1024xf32, #tpu.memory_space<vmem>>, vector<2x1x1024xf32>,
    %c6_i32 = arith.constant 6 : i32
    %c0_154 = arith.constant 0 : index
    %c0_155 = arith.constant 0 : index
    %c0_156 = arith.constant 0 : index
    %187 = vector.load %arg23[%c0_154, %c0_155, %c0_156] : memref<2x1x1024xf32, #tpu.memory_space<vmem>>, vector<2x1x1024xf32>
    %c0_157 = arith.constant 0 : index
    %188 = arith.index_cast %c6_i32 : i32 to index
    %c0_158 = arith.constant 0 : index
    %189 = vector.load %arg29[%c0_157, %188, %c0_158] : memref<2x8x1024xf32, #tpu.memory_space<vmem>>, vector<2x1x1024xf32>
    tpu.vector_store %arg29[%c0_157, %188, %c0_158], %187 {strides = array<i32>} : memref<2x8x1024xf32, #tpu.memory_space<vmem>>, vector<2x1x1024xf32>,
    %c0_159 = arith.constant 0 : index
    %190 = arith.index_cast %c6_i32 : i32 to index
    %c0_160 = arith.constant 0 : index
    %191 = vector.load %arg26[%c0_159, %190, %c0_160] : memref<2x8x1024xf32, #tpu.memory_space<vmem>>, vector<2x1x1024xf32>
    %192 = arith.mulf %191, %187 : vector<2x1x1024xf32>
    %c0_161 = arith.constant 0 : index
    %193 = arith.index_cast %c6_i32 : i32 to index
    %c0_162 = arith.constant 0 : index
    %194 = vector.load %arg27[%c0_161, %193, %c0_162] : memref<2x8x1024xf32, #tpu.memory_space<vmem>>, vector<2x1x1024xf32>
    %195 = arith.addf %192, %194 : vector<2x1x1024xf32>
    %c0_163 = arith.constant 0 : index
    %c0_164 = arith.constant 0 : index
    %c0_165 = arith.constant 0 : index
    %196 = vector.load %arg23[%c0_163, %c0_164, %c0_165] : memref<2x1x1024xf32, #tpu.memory_space<vmem>>, vector<2x1x1024xf32>
    tpu.vector_store %arg23[%c0_163, %c0_164, %c0_165], %195 {strides = array<i32>} : memref<2x1x1024xf32, #tpu.memory_space<vmem>>, vector<2x1x1024xf32>,
    %c7_i32 = arith.constant 7 : i32
    %c0_166 = arith.constant 0 : index
    %c0_167 = arith.constant 0 : index
    %c0_168 = arith.constant 0 : index
    %197 = vector.load %arg23[%c0_166, %c0_167, %c0_168] : memref<2x1x1024xf32, #tpu.memory_space<vmem>>, vector<2x1x1024xf32>
    %c0_169 = arith.constant 0 : index
    %198 = arith.index_cast %c7_i32 : i32 to index
    %c0_170 = arith.constant 0 : index
    %199 = vector.load %arg29[%c0_169, %198, %c0_170] : memref<2x8x1024xf32, #tpu.memory_space<vmem>>, vector<2x1x1024xf32>
    tpu.vector_store %arg29[%c0_169, %198, %c0_170], %197 {strides = array<i32>} : memref<2x8x1024xf32, #tpu.memory_space<vmem>>, vector<2x1x1024xf32>,
    %c0_171 = arith.constant 0 : index
    %200 = arith.index_cast %c7_i32 : i32 to index
    %c0_172 = arith.constant 0 : index
    %201 = vector.load %arg26[%c0_171, %200, %c0_172] : memref<2x8x1024xf32, #tpu.memory_space<vmem>>, vector<2x1x1024xf32>
    %202 = arith.mulf %201, %197 : vector<2x1x1024xf32>
    %c0_173 = arith.constant 0 : index
    %203 = arith.index_cast %c7_i32 : i32 to index
    %c0_174 = arith.constant 0 : index
    %204 = vector.load %arg27[%c0_173, %203, %c0_174] : memref<2x8x1024xf32, #tpu.memory_space<vmem>>, vector<2x1x1024xf32>
    %205 = arith.addf %202, %204 : vector<2x1x1024xf32>
    %c0_175 = arith.constant 0 : index
    %c0_176 = arith.constant 0 : index
    %c0_177 = arith.constant 0 : index
    %206 = vector.load %arg23[%c0_175, %c0_176, %c0_177] : memref<2x1x1024xf32, #tpu.memory_space<vmem>>, vector<2x1x1024xf32>
    tpu.vector_store %arg23[%c0_175, %c0_176, %c0_177], %205 {strides = array<i32>} : memref<2x1x1024xf32, #tpu.memory_space<vmem>>, vector<2x1x1024xf32>,
    %c8_i32 = arith.constant 8 : i32
    %c0_178 = arith.constant 0 : index
    %c0_179 = arith.constant 0 : index
    %c0_180 = arith.constant 0 : index
    %207 = vector.load %arg25[%c0_178, %c0_179, %c0_180] : memref<2x8x1024xf32, #tpu.memory_space<vmem>>, vector<2x8x1024xf32>
    %208 = vector.shape_cast %207 : vector<2x8x1024xf32> to vector<16x1024xf32>
    %c0_181 = arith.constant 0 : index
    %c0_182 = arith.constant 0 : index
    %c0_183 = arith.constant 0 : index
    %209 = vector.load %arg29[%c0_181, %c0_182, %c0_183] : memref<2x8x1024xf32, #tpu.memory_space<vmem>>, vector<2x8x1024xf32>
    %210 = vector.shape_cast %209 : vector<2x8x1024xf32> to vector<16x1024xf32>
    %211 = arith.mulf %208, %210 : vector<16x1024xf32>
    %c0_184 = arith.constant 0 : index
    %c0_185 = arith.constant 0 : index
    %c0_186 = arith.constant 0 : index
    %212 = vector.load %arg28[%c0_184, %c0_185, %c0_186] : memref<2x8x1024xf32, #tpu.memory_space<vmem>>, vector<2x8x1024xf32>
    %213 = vector.shape_cast %212 : vector<2x8x1024xf32> to vector<16x1024xf32>
    %214 = arith.addf %211, %213 : vector<16x1024xf32>
    %c0_187 = arith.constant 0 : index
    %c0_188 = arith.constant 0 : index
    %215 = vector.load %arg19[%c0_187, %c0_188] : memref<1024x32xf32, #tpu.memory_space<vmem>>, vector<1024x32xf32>
    %cst_189 = arith.constant dense<0.000000e+00> : vector<16x32xf32>
    %216 = tpu.matmul %214, %215, %cst_189 {dimension_numbers = #tpu.dot_dimension_numbers<[1], [0], [0], [1], [0, 0, 1, 1], [], []>} : vector<16x1024xf32>, vector<1024x32xf32>, vector<16x32xf32> -> vector<16x32xf32>
    %c0_190 = arith.constant 0 : index
    %c0_191 = arith.constant 0 : index
    %217 = vector.load %arg20[%c0_190, %c0_191] : memref<32x32xf32, #tpu.memory_space<vmem>>, vector<32x32xf32>
    %cst_192 = arith.constant dense<0.000000e+00> : vector<16x32xf32>
    %218 = tpu.matmul %216, %217, %cst_192 {dimension_numbers = #tpu.dot_dimension_numbers<[1], [0], [0], [1], [0, 0, 1, 1], [], []>} : vector<16x32xf32>, vector<32x32xf32>, vector<16x32xf32> -> vector<16x32xf32>
    %219 = arith.subf %216, %218 : vector<16x32xf32>
    %220 = arith.mulf %219, %219 : vector<16x32xf32>
    %c0_193 = arith.constant 0 : index
    %c0_194 = arith.constant 0 : index
    %221 = vector.load %arg20[%c0_193, %c0_194] : memref<32x32xf32, #tpu.memory_space<vmem>>, vector<32x32xf32>
    %cst_195 = arith.constant dense<0.000000e+00> : vector<16x32xf32>
    %222 = tpu.matmul %220, %221, %cst_195 {dimension_numbers = #tpu.dot_dimension_numbers<[1], [0], [0], [1], [0, 0, 1, 1], [], []>} : vector<16x32xf32>, vector<32x32xf32>, vector<16x32xf32> -> vector<16x32xf32>
    %cst_196 = arith.constant 6.400000e-04 : f32
    %223 = vector.broadcast %cst_196 : f32 to vector<16x32xf32>
    %224 = arith.addf %222, %223 : vector<16x32xf32>
    %225 = math.rsqrt %224 : vector<16x32xf32>
    %226 = arith.mulf %219, %225 : vector<16x32xf32>
    %227 = vector.broadcast %4 : vector<1x32xf32> to vector<16x32xf32>
    %228 = arith.mulf %226, %227 : vector<16x32xf32>
    %229 = vector.broadcast %5 : vector<1x32xf32> to vector<16x32xf32>
    %230 = arith.addf %228, %229 : vector<16x32xf32>
    %231 = arith.mulf %230, %91 : vector<16x32xf32>
    %c0_197 = arith.constant 0 : index
    %c0_198 = arith.constant 0 : index
    %232 = vector.load %arg13[%c0_197, %c0_198] : memref<32x32xf32, #tpu.memory_space<vmem>>, vector<32x32xf32>
    %cst_199 = arith.constant dense<0.000000e+00> : vector<16x32xf32>
    %233 = tpu.matmul %231, %232, %cst_199 {dimension_numbers = #tpu.dot_dimension_numbers<[1], [0], [0], [1], [0, 0, 1, 1], [], []>} : vector<16x32xf32>, vector<32x32xf32>, vector<16x32xf32> -> vector<16x32xf32>
    %234 = arith.addf %7, %233 : vector<16x32xf32>
    %235 = vector.shape_cast %234 : vector<16x32xf32> to vector<2x8x32xf32>
    %cst_200 = arith.constant dense<0.000000e+00> : vector<2x8xf32>
    %236 = vector.multi_reduction <add>, %235, %cst_200 [2] : vector<2x8x32xf32> to vector<2x8xf32>
    %237 = vector.shape_cast %236 : vector<2x8xf32> to vector<2x8x1xf32>
    %cst_201 = arith.constant 3.200000e+01 : f32
    %238 = vector.broadcast %cst_201 : f32 to vector<2x8x1xf32>
    %239 = arith.divf %237, %238 : vector<2x8x1xf32>
    %240 = vector.broadcast %239 : vector<2x8x1xf32> to vector<2x8x32xf32>
    %241 = arith.subf %235, %240 : vector<2x8x32xf32>
    %242 = arith.mulf %241, %241 : vector<2x8x32xf32>
    %cst_202 = arith.constant dense<0.000000e+00> : vector<2x8xf32>
    %243 = vector.multi_reduction <add>, %242, %cst_202 [2] : vector<2x8x32xf32> to vector<2x8xf32>
    %244 = vector.shape_cast %243 : vector<2x8xf32> to vector<2x8x1xf32>
    %cst_203 = arith.constant 3.200000e+01 : f32
    %245 = vector.broadcast %cst_203 : f32 to vector<2x8x1xf32>
    %246 = arith.divf %244, %245 : vector<2x8x1xf32>
    %247 = vector.broadcast %239 : vector<2x8x1xf32> to vector<2x8x32xf32>
    %248 = arith.subf %235, %247 : vector<2x8x32xf32>
    %cst_204 = arith.constant 9.99999974E-6 : f32
    %249 = vector.broadcast %cst_204 : f32 to vector<2x8x1xf32>
    %250 = arith.addf %246, %249 : vector<2x8x1xf32>
    %251 = math.rsqrt %250 : vector<2x8x1xf32>
    %252 = vector.broadcast %251 : vector<2x8x1xf32> to vector<2x8x32xf32>
    %253 = arith.mulf %248, %252 : vector<2x8x32xf32>
    %254 = vector.shape_cast %2 : vector<1x32xf32> to vector<1x1x32xf32>
    %255 = vector.broadcast %254 : vector<1x1x32xf32> to vector<2x8x32xf32>
    %256 = arith.mulf %253, %255 : vector<2x8x32xf32>
    %257 = vector.shape_cast %3 : vector<1x32xf32> to vector<1x1x32xf32>
    %258 = vector.broadcast %257 : vector<1x1x32xf32> to vector<2x8x32xf32>
    %259 = arith.addf %256, %258 : vector<2x8x32xf32>
    %260 = vector.extract_strided_slice %259 {offsets = [0, 7, 0], sizes = [2, 1, 32], strides = [1, 1, 1]} : vector<2x8x32xf32> to vector<2x1x32xf32>
    %c0_205 = arith.constant 0 : index
    %c0_206 = arith.constant 0 : index
    %c0_207 = arith.constant 0 : index
    %261 = vector.load %arg24[%c0_205, %c0_206, %c0_207] : memref<2x1x32xf32, #tpu.memory_space<vmem>>, vector<2x1x32xf32>
    tpu.vector_store %arg24[%c0_205, %c0_206, %c0_207], %260 {strides = array<i32>} : memref<2x1x32xf32, #tpu.memory_space<vmem>>, vector<2x1x32xf32>,
    %c0_208 = arith.constant 0 : index
    %c0_209 = arith.constant 0 : index
    %c0_210 = arith.constant 0 : index
    %262 = vector.load %arg3[%c0_208, %c0_209, %c0_210] : memref<2x1x32xf32, #tpu.memory_space<vmem>>, vector<2x1x32xf32>
    %263 = vector.extract_strided_slice %259 {offsets = [0, 0, 0], sizes = [2, 7, 32], strides = [1, 1, 1]} : vector<2x8x32xf32> to vector<2x7x32xf32>
    %264 = tpu.concatenate %262, %263 in 1 : vector<2x1x32xf32>, vector<2x7x32xf32> -> vector<2x8x32xf32>
    %265 = arith.subf %264, %259 : vector<2x8x32xf32>
    %266 = vector.shape_cast %265 : vector<2x8x32xf32> to vector<16x32xf32>
    %267 = vector.shape_cast %259 : vector<2x8x32xf32> to vector<16x32xf32>
    %c6 = arith.constant 6 : index
    %c0_211 = arith.constant 0 : index
    %268 = vector.load %arg5[%c6, %c0_211] : memref<8x32xf32, #tpu.memory_space<vmem>>, vector<1x32xf32>
    %c7 = arith.constant 7 : index
    %c0_212 = arith.constant 0 : index
    %269 = vector.load %arg5[%c7, %c0_212] : memref<8x32xf32, #tpu.memory_space<vmem>>, vector<1x32xf32>
    %270 = vector.broadcast %268 : vector<1x32xf32> to vector<16x32xf32>
    %271 = arith.mulf %266, %270 : vector<16x32xf32>
    %272 = arith.addf %267, %271 : vector<16x32xf32>
    %273 = vector.broadcast %269 : vector<1x32xf32> to vector<16x32xf32>
    %274 = arith.mulf %266, %273 : vector<16x32xf32>
    %275 = arith.addf %267, %274 : vector<16x32xf32>
    %276 = tpu.concatenate %272, %275 in 1 : vector<16x32xf32>, vector<16x32xf32> -> vector<16x64xf32>
    %c0_213 = arith.constant 0 : index
    %c0_214 = arith.constant 0 : index
    %277 = vector.load %arg14[%c0_213, %c0_214] : memref<64x160xf32, #tpu.memory_space<vmem>>, vector<64x160xf32>
    %cst_215 = arith.constant dense<0.000000e+00> : vector<16x160xf32>
    %278 = tpu.matmul %276, %277, %cst_215 {dimension_numbers = #tpu.dot_dimension_numbers<[1], [0], [0], [1], [0, 0, 1, 1], [], []>} : vector<16x64xf32>, vector<64x160xf32>, vector<16x160xf32> -> vector<16x160xf32>
    %279 = vector.extract_strided_slice %278 {offsets = [0, 0], sizes = [16, 128], strides = [1, 1]} : vector<16x160xf32> to vector<16x128xf32>
    %cst_216 = arith.constant 0.000000e+00 : f32
    %280 = vector.broadcast %cst_216 : f32 to vector<16x128xf32>
    %281 = arith.maximumf %279, %280 : vector<16x128xf32>
    %282 = arith.mulf %281, %281 : vector<16x128xf32>
    %c0_217 = arith.constant 0 : index
    %c0_218 = arith.constant 0 : index
    %283 = vector.load %arg15[%c0_217, %c0_218] : memref<128x32xf32, #tpu.memory_space<vmem>>, vector<128x32xf32>
    %cst_219 = arith.constant dense<0.000000e+00> : vector<16x32xf32>
    %284 = tpu.matmul %282, %283, %cst_219 {dimension_numbers = #tpu.dot_dimension_numbers<[1], [0], [0], [1], [0, 0, 1, 1], [], []>} : vector<16x128xf32>, vector<128x32xf32>, vector<16x32xf32> -> vector<16x32xf32>
    %285 = vector.extract_strided_slice %278 {offsets = [0, 128], sizes = [16, 32], strides = [1, 1]} : vector<16x160xf32> to vector<16x32xf32>
    %286 = arith.negf %285 : vector<16x32xf32>
    %287 = math.exp %286 : vector<16x32xf32>
    %cst_220 = arith.constant 1.000000e+00 : f32
    %288 = vector.broadcast %cst_220 : f32 to vector<16x32xf32>
    %289 = arith.addf %288, %287 : vector<16x32xf32>
    %290 = arith.divf %288, %289 : vector<16x32xf32>
    %291 = arith.mulf %290, %284 : vector<16x32xf32>
    %292 = arith.addf %234, %291 : vector<16x32xf32>
    %293 = vector.shape_cast %292 : vector<16x32xf32> to vector<2x8x32xf32>
    %c0_221 = arith.constant 0 : index
    %c0_222 = arith.constant 0 : index
    %c0_223 = arith.constant 0 : index
    %294 = vector.load %arg21[%c0_221, %c0_222, %c0_223] : memref<2x8x32xf32, #tpu.memory_space<vmem>>, vector<2x8x32xf32>
    tpu.vector_store %arg21[%c0_221, %c0_222, %c0_223], %293 {strides = array<i32>} : memref<2x8x32xf32, #tpu.memory_space<vmem>>, vector<2x8x32xf32>,
    return
  }
}

</mosaic_0001>

<bundles_post_ra>
// kernel: gold_finch_layer_block.1
= control target key start
LH: loop header
LB: loop body
LE: loop exit
PB: predicated region body
PF: predicated region fallthrough
CT: control target
= control target key end

     0   :  { %s4777_s0 = inlined_call_operand.vmem [shape: f32[2,8,32], index: 0, kind: input, shape index: {}]   ;;  %s4778_s1 = inlined_call_operand.vmem [shape: f32[2,1,32], index: 1, kind: input, shape index: {}]   ;;  %s4779_s2 = inlined_call_operand.vmem [shape: f32[2,1,1024], index: 2, kind: input, shape index: {}]   ;;  %s4780_s3 = inlined_call_operand.vmem [shape: f32[2,1,32], index: 3, kind: input, shape index: {}]   ;;  %s4781_s4 = inlined_call_operand.vmem [shape: f32[6,32], index: 4, kind: input, shape index: {}]   ;;  %s4782_s5 = inlined_call_operand.vmem [shape: f32[8,32], index: 5, kind: input, shape index: {}]   ;;  %s4783_s6 = inlined_call_operand.vmem [shape: f32[32,160], index: 6, kind: input, shape index: {}]   ;;  %s4784_s7 = inlined_call_operand.vmem [shape: f32[160,160], index: 7, kind: input, shape index: {}]   ;;  %s4785_s8 = inlined_call_operand.vmem [shape: f32[1,32], index: 8, kind: input, shape index: {}]   ;;  %s4786_s9 = inlined_call_operand.vmem [shape: f32[32,64], index: 9, kind: input, shape index: {}]   ;;  %s4787_s10 = inlined_call_operand.vmem [shape: f32[64,32], index: 10, kind: input, shape index: {}]   ;;  %s4788_s11 = inlined_call_operand.vmem [shape: f32[1,1024], index: 11, kind: input, shape index: {}]   ;;  %s4789_s12 = inlined_call_operand.vmem [shape: f32[128,128], index: 12, kind: input, shape index: {}]   ;;  %s4790_s13 = inlined_call_operand.vmem [shape: f32[32,32], index: 13, kind: input, shape index: {}]   ;;  %s4791_s14 = inlined_call_operand.vmem [shape: f32[64,160], index: 14, kind: input, shape index: {}]   ;;  %s4792_s15 = inlined_call_operand.vmem [shape: f32[128,32], index: 15, kind: input, shape index: {}]   ;;  %s4793_s16 = inlined_call_operand.vmem [shape: f32[32,1024], index: 16, kind: input, shape index: {}]   ;;  %s4794_s17 = inlined_call_operand.vmem [shape: f32[32,1024], index: 17, kind: input, shape index: {}]   ;;  %s4795_s18 = inlined_call_operand.vmem [shape: f32[32,1024], index: 18, kind: input, shape index: {}]   ;;  %s4796_s19 = inlined_call_operand.vmem [shape: f32[1024,32], index: 19, kind: input, shape index: {}]   ;;  %s4797_s20 = inlined_call_operand.vmem [shape: f32[32,32], index: 20, kind: input, shape index: {}]   ;;  %s4798_s21 = inlined_call_operand.hbm [shape: f32[2,8,32], index: 21, kind: output, shape index: {0}]   ;;  %s4799_s22 = inlined_call_operand.hbm [shape: f32[2,1,32], index: 22, kind: output, shape index: {1}]   ;;  %s4800_s23 = inlined_call_operand.vmem [shape: f32[2,1,1024], index: 23, kind: output, shape index: {2}]   ;;  %s4801_s24 = inlined_call_operand.hbm [shape: f32[2,1,32], index: 24, kind: output, shape index: {3}]  }
   0x1   :  { %4810 = sst [smem:[#allocation14_spill]] %s4777_s0 }
   0x2   :  { %4811 = sst [smem:[#allocation15_spill]] %s4778_s1 }
   0x3   :  { %4812 = sst [smem:[#allocation16_spill]] %s4779_s2 }
   0x4   :  { %4813 = sst [smem:[#allocation17_spill]] %s4780_s3 }
   0x5   :  { %4814 = sst [smem:[#allocation18_spill]] %s4781_s4 }
   0x6   :  { %4815 = sst [smem:[#allocation19_spill]] %s4782_s5 }
   0x7   :  { %4816 = sst [smem:[#allocation20_spill]] %s4783_s6 }
   0x8   :  { %4817 = sst [smem:[#allocation21_spill]] %s4784_s7 }
   0x9   :  { %4818 = sst [smem:[#allocation22_spill]] %s4785_s8 }
   0xa   :  { %30 = vsyncpa [#allocation8], 0  ;;  %s4819_s27 = sld [smem:[#allocation14_spill]]  ;;  %vm82_vm0 = vcmask 261120  }
  0x10   :  { %v80_v0 = vld [vmem:[%s4819_s27] sm:$0xff]  ;;  %v81_v2 = vld [vmem:[%s4819_s27 + $0x8] sm:$0xff] }
  0x11   :  { %v83_v1 = vsel %vm82_vm0, %v80_v0, 0.0 }
  0x12   :  { %84 = vadd.xlane.f32.xlu0 %v83_v1 }
  0x13   :  { %31 = vsyncpa [#allocation10], 0  ;;  %v86_v3 = vsel %vm82_vm0, %v81_v2, 0.0  ;;  %v2927_v4 = vmov 32.0   ;;  %s4820_s0 = sld [smem:[#allocation20_spill]]  ;;  %vm140_vm6 = vcmask 261127  }
  0x14   :  { %2799 = vrcp.f32 %v2927_v4  ;;  %s4821_s25 = sld [smem:[#allocation21_spill]]  ;;  %vm151_vm8 = vcmask 1040384   ;;  %s2928_s2 = smov 96   ;;  %vm450_vm10 = vcmask 523264   ;;  %vm453_vm11 = vcmask 785408  }
  0x15   :  { %s4822_s6 = sld [smem:[#allocation18_spill]]  ;;  %s2930_s7 = smov 32  }
  0x16   :  { %s4823_s4 = sld [smem:[#allocation15_spill]] }
  0x17   :  { %s4824_s29 = sld [smem:[#allocation19_spill]] }
  0x18   :  { %s4825_s1 = sld [smem:[#allocation22_spill]] }
  0x19   :  { %v173_v21 = vld [vmem:[%s4820_s0 + $0x30] sm:$0xff]  ;;  %v174_v22 = vld [vmem:[%s4820_s0 + $0x38] sm:$0xff]  ;;  %v171_v24 = vld [vmem:[%s4820_s0 + $0x20] sm:$0xff] }
  0x1a   :  { %87 = vadd.xlane.f32.xlu0 %v86_v3  ;;  %v2800_v5 = vpop.eup %2799  ;;  %193 = vmatpush.msra.mxu0 %v173_v21  ;;  %v172_v25 = vld [vmem:[%s4820_s0 + $0x28] sm:$0xff]  ;;  %v169_v27 = vld [vmem:[%s4820_s0 + $0x10] sm:$0xff]  ;;  %v170_v28 = vld [vmem:[%s4820_s0 + $0x18] sm:$0xff] }
  0x1b   :  { %v90_v6 = vmul.f32 32.0, %v2800_v5  ;;  %vm94_vm1 = vweird.f32 %v2800_v5  ;;  %216 = vmatpush.msra.mxu3 %v174_v22  ;;  %v167_v30 = vld [vmem:[%s4820_s0] sm:$0xff]  ;;  %v168_v31 = vld [vmem:[%s4820_s0 + $0x8] sm:$0xff]  ;;  %v261_v38 = vld [vmem:[%s4821_s25 + $0xf0] sm:$0xff] }
  0x1c   :  { %194 = vmatpush.msra.mxu0 %v171_v24  ;;  %v262_v39 = vld [vmem:[%s4821_s25 + $0xf8] sm:$0xff]  ;;  %v259_v40 = vld [vmem:[%s4821_s25 + $0xe0] sm:$0xff]  ;;  %277 = vmatpush.msra.mxu2 %v261_v38  ;;  %v260_v41 = vld [vmem:[%s4821_s25 + $0xe8] sm:$0xff] }
  0x1d   :  { %v91_v7 = vsub.f32 1.0, %v90_v6  ;;  %217 = vmatpush.msra.mxu3 %v172_v25  ;;  %v257_v43 = vld [vmem:[%s4821_s25 + $0xd0] sm:$0xff]  ;;  %v258_v44 = vld [vmem:[%s4821_s25 + $0xd8] sm:$0xff]  ;;  %v255_v46 = vld [vmem:[%s4821_s25 + $0xc0] sm:$0xff] }
  0x1e   :  { %195 = vmatpush.msra.mxu0 %v169_v27  ;;  %278 = vmatpush.msra.mxu2 %v259_v40  ;;  %v256_v47 = vld [vmem:[%s4821_s25 + $0xc8] sm:$0xff]  ;;  %v253_v51 = vld [vmem:[%s4821_s25 + $0xb0] sm:$0xff]  ;;  %v254_v52 = vld [vmem:[%s4821_s25 + $0xb8] sm:$0xff] }
  0x1f   :  { %v92_v8 = vmul.f32 %v2800_v5, %v91_v7  ;;  %218 = vmatpush.msra.mxu3 %v170_v28  ;;  %v2784_v53 = vld [vmem:[%s4822_s6] ss:$0 sm:$0xff]  ;;  %v269_v54 = vld [vmem:[%s4821_s25 + $0x130] sm:$0xff]  ;;  %v252_v58 = vld [vmem:[%s4821_s25 + $0xa8] sm:$0xff] }
  0x20   :  { %196 = vmatpush.msra.mxu0 %v167_v30  ;;  %279 = vmatpush.msra.mxu2 %v257_v43  ;;  %v251_v57 = vld [vmem:[%s4821_s25 + $0xa0] sm:$0xff]  ;;  %v249_v62 = vld [vmem:[%s4821_s25 + $0x90] sm:$0xff]  ;;  %v250_v63 = vld [vmem:[%s4821_s25 + $0x98] sm:$0xff] }
  0x21   :  { %v93_v9 = vadd.f32 %v2800_v5, %v92_v8  ;;  %219 = vmatpush.msra.mxu3 %v168_v31  ;;  %v2785_v60 = vld [vmem:[%s4822_s6 + $0x1] ss:$0 sm:$0xff]  ;;  %v248_v3 = vld [vmem:[%s4821_s25 + $0x88] sm:$0xff]  ;;  %v143_v6 = vld [vmem:[%s4823_s4] sm:$0x1] }
  0x22   :  { %323 = vmatpush.msrb.mxu0 %v262_v39  ;;  %280 = vmatpush.msra.mxu2 %v255_v46  ;;  %v245_v7 = vld [vmem:[%s4821_s25 + $0x70] sm:$0xff]  ;;  %v246_v8 = vld [vmem:[%s4821_s25 + $0x78] sm:$0xff]  ;;  %v239_v22 = vld [vmem:[%s4821_s25 + $0x40] sm:$0xff] }
  0x23   :  { %v3071_v10 = vsel %vm94_vm1, %v2800_v5, %v93_v9  ;;  %312 = vmatpush.msrb.mxu3 %v269_v54  ;;  %v234_v38 = vld [vmem:[%s4821_s25 + $0x18] sm:$0xff]  ;;  %v231_v39 = vld [vmem:[%s4821_s25] sm:$0xff]  ;;  %v232_v40 = vld [vmem:[%s4821_s25 + $0x8] sm:$0xff] }
  0x24   :  { %324 = vmatpush.msrb.mxu0 %v260_v41  ;;  %281 = vmatpush.msra.mxu2 %v253_v51  ;;  %v270_v41 = vld [vmem:[%s4821_s25 + $0x138] sm:$0xff]  ;;  %v268_v43 = vld [vmem:[%s4821_s25 + $0x128] sm:$0xff] }
  0x25   :  { %358 = vmatpush.msra.mxu1 %v270_v41  ;;  %v264_v46 = vld [vmem:[%s4821_s25 + $0x108] sm:$0xff] }
  0x26   :  { %325 = vmatpush.msrb.mxu0 %v258_v44  ;;  %282 = vmatpush.msra.mxu2 %v251_v57  ;;  %v263_v44 = vld [vmem:[%s4821_s25 + $0x100] sm:$0xff]  ;;  %v536_v57 = vld [vmem:[%s4786_s9 + $0x8] sm:$0xff] }
  0x27   :  { %359 = vmatpush.msra.mxu1 %v268_v43  ;;  %v471_v43 = vld [vmem:[%s4789_s12 + $0x78] sm:$0xff] }
  0x28   :  { %326 = vmatpush.msrb.mxu0 %v256_v47  ;;  %283 = vmatpush.msra.mxu2 %v249_v62 }
  0x2a   :  { %327 = vmatpush.msrb.mxu0 %v254_v52 }
  0x2c   :  { %328 = vmatpush.msrb.mxu0 %v252_v58  ;;  %v535_v58 = vld [vmem:[%s4786_s9] sm:$0xff] }
  0x2e   :  { %329 = vmatpush.msrb.mxu0 %v250_v63 }
  0x30   :  { %330 = vmatpush.msrb.mxu0 %v248_v3 }
  0x32   :  { %331 = vmatpush.msrb.mxu0 %v246_v8 }
  0x85   :  { %v85_v11 = vpop.xlane.xlu0 %84 }
  0x86   :  { %v96_v12 = vmul.f32 %v3071_v10, %v85_v11 }
  0x88   :  { %v3074_v13 = vsub.f32 %v80_v0, %v96_v12  ;;  %v2786_v12 = vld [vmem:[%s4824_s29] ss:$0 sm:$0xff] }
  0x8a   :  { %v100_v14 = vmul.f32 %v3074_v13, %v3074_v13 }
  0x8c   :  { %v102_v15 = vsel %vm82_vm0, %v100_v14, 0.0  ;;  %v244_v14 = vld [vmem:[%s4821_s25 + $0x68] sm:$0xff] }
  0x8d   :  { %103 = vadd.xlane.f32.xlu1 %v102_v15  ;;  %v88_v16 = vpop.xlane.xlu0 %87  ;;  %332 = vmatpush.msrb.mxu0 %v244_v14 }
  0x8e   :  { %v97_v17 = vmul.f32 %v3071_v10, %v88_v16 }
  0x90   :  { %v3080_v18 = vsub.f32 %v81_v2, %v97_v17  ;;  %v247_v2 = vld [vmem:[%s4821_s25 + $0x80] sm:$0xff] }
  0x91   :  { %284 = vmatpush.msra.mxu2 %v247_v2 }
  0x92   :  { %v101_v19 = vmul.f32 %v3080_v18, %v3080_v18 }
  0x93   :  { %285 = vmatpush.msra.mxu2 %v245_v7 }
  0x94   :  { %v105_v20 = vsel %vm82_vm0, %v101_v19, 0.0  ;;  %v241_v19 = vld [vmem:[%s4821_s25 + $0x50] sm:$0xff] }
  0x95   :  { %106 = vadd.xlane.f32.xlu1 %v105_v20  ;;  %v242_v20 = vld [vmem:[%s4821_s25 + $0x58] sm:$0xff] }
  0x96   :  { %333 = vmatpush.msrb.mxu0 %v242_v20 }
 0x100   :  { %v104_v23 = vpop.xlane.xlu1 %103 }
 0x101   :  { %v108_v26 = vmul.f32 %v104_v23, %v3071_v10  ;;  %v240_v23 = vld [vmem:[%s4821_s25 + $0x48] sm:$0xff] }
 0x102   :  { %334 = vmatpush.msrb.mxu0 %v240_v23  ;;  %v574_v23 = vld [vmem:[%s4787_s10 + $0x20] sm:$0xff] }
 0x103   :  { %v110_v29 = vadd.f32 1e-05, %v108_v26  ;;  %v144_v26 = vld [vmem:[%s4823_s4 + $0x1] sm:$0x1] }
 0x105   :  { %2801 = vrsqrt.f32 %v110_v29  ;;  %vm118_vm3 = vweird.f32 %v110_v29 }
 0x108   :  { %v107_v32 = vpop.xlane.xlu1 %106 }
 0x109   :  { %v109_v33 = vmul.f32 %v107_v32, %v3071_v10  ;;  %v237_v32 = vld [vmem:[%s4821_s25 + $0x30] sm:$0xff] }
 0x10b   :  { %v2802_v34 = vpop.eup %2801  ;;  %v111_v35 = vadd.f32 1e-05, %v109_v33  ;;  %v238_v33 = vld [vmem:[%s4821_s25 + $0x38] sm:$0xff] }
 0x10c   :  { %v113_v36 = vmul.f32 %v2802_v34, %v110_v29  ;;  %vm119_vm2 = vweird.f32 %v2802_v34  ;;  %335 = vmatpush.msrb.mxu0 %v238_v33 }
 0x10d   :  { %2803 = vrsqrt.f32 %v111_v35  ;;  %vm120_vm4 = vmor %vm118_vm3, %vm119_vm2  ;;  %vm128_vm7 = vweird.f32 %v111_v35 }
 0x10e   :  { %v114_v37 = vmul.f32 %v2802_v34, %v113_v36  ;;  %v236_v36 = vld [vmem:[%s4821_s25 + $0x28] sm:$0xff] }
 0x10f   :  { %336 = vmatpush.msrb.mxu0 %v236_v36  ;;  %v570_v36 = vld [vmem:[%s4787_s10] sm:$0xff] }
 0x110   :  { %v115_v42 = vmul.f32 0.5, %v114_v37  ;;  %v233_v37 = vld [vmem:[%s4821_s25 + $0x10] sm:$0xff] }
 0x111   :  { %337 = vmatpush.msrb.mxu0 %v234_v38 }
 0x112   :  { %v116_v45 = vsub.f32 1.5, %v115_v42  ;;  %v265_v42 = vld [vmem:[%s4821_s25 + $0x110] sm:$0xff] }
 0x113   :  { %v2804_v48 = vpop.eup %2803  ;;  %338 = vmatpush.msrb.mxu0 %v232_v40 }
 0x114   :  { %v117_v49 = vmul.f32 %v2802_v34, %v116_v45  ;;  %v123_v50 = vmul.f32 %v2804_v48, %v111_v35  ;;  %vm129_vm5 = vweird.f32 %v2804_v48  ;;  %v235_v35 = vld [vmem:[%s4821_s25 + $0x20] sm:$0xff]  ;;  %v266_v45 = vld [vmem:[%s4821_s25 + $0x118] sm:$0xff] }
 0x115   :  { %vm130_vm9 = vmor %vm128_vm7, %vm129_vm5  ;;  %360 = vmatpush.msra.mxu1 %v266_v45  ;;  %v469_v45 = vld [vmem:[%s4789_s12 + $0x68] sm:$0xff] }
 0x116   :  { %v121_v55 = vsel %vm120_vm4, %v2802_v34, %v117_v49  ;;  %v124_v56 = vmul.f32 %v2804_v48, %v123_v50  ;;  %v267_v34 = vld [vmem:[%s4821_s25 + $0x120] sm:$0xff] }
 0x117   :  { %v132_v59 = vmul.f32 %v121_v55, %v3074_v13  ;;  %v243_v13 = vld [vmem:[%s4821_s25 + $0x60] sm:$0xff]  ;;  %313 = vmatpush.msrb.mxu3 %v267_v34  ;;  %361 = vmatpush.msra.mxu1 %v264_v46  ;;  %v538_v55 = vld [vmem:[%s4786_s9 + $0x18] sm:$0xff]  ;;  %s4826_s25 = sld [smem:[#allocation16_spill]] }
 0x118   :  { %v125_v61 = vmul.f32 0.5, %v124_v56  ;;  %286 = vmatpush.msra.mxu2 %v243_v13  ;;  %v537_v56 = vld [vmem:[%s4786_s9 + $0x10] sm:$0xff]  ;;  %s2929_s9 = smov 64   ;;  %v577_v13 = vld [vmem:[%s4787_s10 + $0x38] sm:$0xff] }
 0x119   :  { %v135_v0 = vmul.f32 %v2784_v53, %v132_v59  ;;  %314 = vmatpush.msrb.mxu3 %v265_v42  ;;  %557 = vmatpush.msrb.mxu1 %v538_v55  ;;  %v465_v55 = vld [vmem:[%s4789_s12 + $0x48] sm:$0xff] }
 0x11a   :  { %v126_v1 = vsub.f32 1.5, %v125_v61  ;;  %287 = vmatpush.msra.mxu2 %v241_v19  ;;  %v575_v19 = vld [vmem:[%s4787_s10 + $0x28] sm:$0xff] }
 0x11b   :  { %v3169_v4 = vadd.f32 %v2785_v60, %v135_v0  ;;  %315 = vmatpush.msrb.mxu3 %v263_v44  ;;  %558 = vmatpush.msrb.mxu1 %v537_v56  ;;  %v470_v44 = vld [vmem:[%s4789_s12 + $0x70] sm:$0xff] }
 0x11c   :  { %v127_v5 = vmul.f32 %v2804_v48, %v126_v1  ;;  %288 = vmatpush.msra.mxu2 %v239_v22 }
 0x11d   :  { %v147_v9 = vrot.slane %v3169_v4, 7  ;;  %141 = vst.msk [vmem:[#allocation9 - $0x7] sm:$0x80] %vm140_vm6, %v3169_v4  ;;  %559 = vmatpush.msrb.mxu1 %v536_v57 }
 0x11e   :  { %v131_v11 = vsel %vm130_vm9, %v2804_v48, %v127_v5  ;;  %289 = vmatpush.msra.mxu2 %v237_v32 }
 0x11f   :  { %v133_v15 = vmul.f32 %v131_v11, %v3080_v18  ;;  %v152_v16 = vsel %vm151_vm8, %v143_v6, %v147_v9  ;;  %560 = vmatpush.msrb.mxu1 %v535_v58  ;;  %v2789_v9 = vld [vmem:[%s4824_s29 + $0x2] ss:$0 sm:$0xff] }
 0x120   :  { %v3195_v17 = vsub.f32 %v152_v16, %v3169_v4  ;;  %290 = vmatpush.msra.mxu2 %v235_v35  ;;  %v576_v16 = vld [vmem:[%s4787_s10 + $0x30] sm:$0xff]  ;;  %v571_v35 = vld [vmem:[%s4787_s10 + $0x8] sm:$0xff] }
 0x121   :  { %v136_v21 = vmul.f32 %v2784_v53, %v133_v15 }
 0x122   :  { %v163_v18 = vmul.f32 %v2786_v12, %v3195_v17  ;;  %291 = vmatpush.msra.mxu2 %v233_v37 }
 0x123   :  { %v3210_v24 = vadd.f32 %v2785_v60, %v136_v21  ;;  %v2788_v60 = vld [vmem:[%s4824_s29 + $0x1] ss:$0 sm:$0xff]  ;;  %v2790_v21 = vld [vmem:[%s4824_s29 + $0x3] ss:$0 sm:$0xff] }
 0x124   :  { %v165_v25 = vadd.f32 %v163_v18, %v3169_v4  ;;  %292 = vmatpush.msra.mxu2 %v231_v39 }
 0x125   :  { %v148_v27 = vrot.slane %v3210_v24, 7  ;;  %142 = vst.msk [vmem:[#allocation9 - $0x6] sm:$0x80] %vm140_vm6, %v3210_v24 }
 0x126   :  { %2683 = vmatmul.msk.f32.vlgmr.msra.gmra.mxu0 %vm82_vm0, %v165_v25  ;;  %2685 = vmatmul.msk.f32.vlgmr.msra.gmra.mxu3 %vm82_vm0, %v165_v25 }
 0x127   :  { %v153_v28 = vsel %vm151_vm8, %v144_v26, %v148_v27  ;;  %592 = vmatpush.msrb.mxu2 %v577_v13  ;;  %v2787_v26 = vld [vmem:[%s4824_s29 + $0x5] ss:$0 sm:$0xff]  ;;  %472 = vmatpush.msra.mxu3 %v471_v43  ;;  %v3497_v43 = vld [vmem:[%s4793_s16 + $0x8] sm:$0xff] }
 0x128   :  { %v3223_v29 = vsub.f32 %v153_v28, %v3210_v24  ;;  %v573_v28 = vld [vmem:[%s4787_s10 + $0x18] sm:$0xff] }
 0x129   :  { %593 = vmatpush.msrb.mxu2 %v576_v16  ;;  %473 = vmatpush.msra.mxu3 %v470_v44  ;;  %v3502_v44 = vld [vmem:[%s4793_s16 + $0x10] sm:$0xff] }
 0x12a   :  { %v164_v30 = vmul.f32 %v2786_v12, %v3223_v29 }
 0x12b   :  { %594 = vmatpush.msrb.mxu2 %v575_v19  ;;  %474 = vmatpush.msra.mxu3 %v469_v45  ;;  %v3509_v45 = vld [vmem:[%s4793_s16 + $0x18] sm:$0xff] }
 0x12c   :  { %v166_v31 = vadd.f32 %v164_v30, %v3210_v24 }
 0x12d   :  { %595 = vmatpush.msrb.mxu2 %v574_v23 }
 0x12e   :  { %2684 = vmatmul.msk.f32.gmra.mxu0 %vm82_vm0, %v166_v31  ;;  %2686 = vmatmul.msk.f32.gmra.mxu3 %vm82_vm0, %v166_v31  ;;  %v572_v31 = vld [vmem:[%s4787_s10 + $0x10] sm:$0xff]  ;;  %s2932_s10 = smov 16  }
 0x12f   :  { %596 = vmatpush.msrb.mxu2 %v573_v28 }
 0x131   :  { %597 = vmatpush.msrb.mxu2 %v572_v31 }
 0x133   :  { %598 = vmatpush.msrb.mxu2 %v571_v35  ;;  %v3447_v35 = vld [vmem:[%s4793_s16 + $0x88] sm:$0xff] }
 0x135   :  { %599 = vmatpush.msrb.mxu2 %v570_v36  ;;  %v3454_v36 = vld [vmem:[%s4793_s16 + $0x90] sm:$0xff] }
 0x1a3   :  { %v198_v47 = vpop.f32.mrf.mxu0 }
 0x1a4   :  { %2805 = vtanh.f32 %v198_v47  ;;  %v468_v47 = vld [vmem:[%s4789_s12 + $0x60] sm:$0xff] }
 0x1a5   :  { %475 = vmatpush.msra.mxu3 %v468_v47 }
 0x1a9   :  { %v221_v48 = vpop.f32.mrf.mxu3 }
 0x1aa   :  { %v2806_v49 = vpop.eup %2805  ;;  %2807 = vtanh.f32 %v221_v48  ;;  %v467_v48 = vld [vmem:[%s4789_s12 + $0x58] sm:$0xff] }
 0x1ab   :  { %v201_v50 = vpop.f32.mrf.mxu0  ;;  %293 = vmatmul.f32.vlgmr.msra.gmra.mxu2 %v2806_v49  ;;  %339 = vmatmul.f32.vlgmr.msrb.gmra.mxu0 %v2806_v49 }
 0x1ac   :  { %2809 = vtanh.f32 %v201_v50  ;;  %476 = vmatpush.msra.mxu3 %v467_v48 }
 0x1b0   :  { %v2808_v51 = vpop.eup %2807 }
 0x1b1   :  { %v224_v52 = vpop.f32.mrf.mxu3  ;;  %2687 = vmatmul.msk.f32.vlgmr.msrb.gmra.mxu3 %vm82_vm0, %v2808_v51  ;;  %2689 = vmatmul.msk.f32.vlgmr.msra.gmra.mxu1 %vm82_vm0, %v2808_v51 }
 0x1b2   :  { %v2810_v53 = vpop.eup %2809  ;;  %2811 = vtanh.f32 %v224_v52  ;;  %v466_v52 = vld [vmem:[%s4789_s12 + $0x50] sm:$0xff] }
 0x1b3   :  { %296 = vmatmul.f32.gmra.mxu2 %v2810_v53  ;;  %342 = vmatmul.f32.gmra.mxu0 %v2810_v53 }
 0x1b4   :  { %477 = vmatpush.msra.mxu3 %v466_v52  ;;  %v3548_v52 = vld [vmem:[%s4793_s16 + $0xf8] sm:$0xff] }
 0x1b6   :  { %478 = vmatpush.msra.mxu3 %v465_v55 }
 0x1b8   :  { %v2812_v54 = vpop.eup %2811 }
 0x1b9   :  { %2688 = vmatmul.msk.f32.gmra.mxu3 %vm82_vm0, %v2812_v54  ;;  %2690 = vmatmul.msk.f32.gmra.mxu1 %vm82_vm0, %v2812_v54 }
 0x228   :  { %v340_v18 = vpop.f32.mrf.mxu0 }
 0x22e   :  { %v294_v59 = vpop.f32.mrf.mxu2  ;;  %v363_v15 = vpop.f32.mrf.mxu1 }
 0x22f   :  { %v364_v25 = vadd.f32 %v363_v15, %v340_v18 }
 0x230   :  { %v343_v37 = vpop.f32.mrf.mxu0 }
 0x231   :  { %v418_v32 = vadd.f32 %v2787_v26, %v364_v25 }
 0x233   :  { %v420_v38 = vmul.f32 %v418_v32, %v3195_v17  ;;  %v3420_v32 = vld [vmem:[%s4793_s16 + $0xc0] sm:$0xff] }
 0x234   :  { %v317_v61 = vpop.f32.mrf.mxu3  ;;  %673 = vmatpush.msra.mxu0 %v3420_v32 }
 0x235   :  { %v318_v62 = vadd.f32 %v317_v61, %v294_v59  ;;  %v422_v41 = vadd.f32 %v420_v38, %v3169_v4  ;;  %v3464_v38 = vld [vmem:[%s4793_s16 + $0x40] sm:$0xff] }
 0x236   :  { %v297_v2 = vpop.f32.mrf.mxu2  ;;  %v366_v34 = vpop.f32.mrf.mxu1 }
 0x237   :  { %v370_v63 = vadd.f32 %v2788_v60, %v318_v62  ;;  %379 = vrot.lane.b32.xlu2 %v318_v62, %s2928_s2  ;;  %v367_v39 = vadd.f32 %v366_v34, %v343_v37  ;;  %v3442_v34 = vld [vmem:[%s4793_s16 + $0x80] sm:$0xff]  ;;  %v3459_v37 = vld [vmem:[%s4793_s16 + $0x98] sm:$0xff] }
 0x238   :  { %674 = vmatpush.msra.mxu0 %v3442_v34 }
 0x239   :  { %v372_v0 = vmul.f32 %v370_v63, %v3195_v17  ;;  %v419_v40 = vadd.f32 %v2787_v26, %v367_v39  ;;  %v464_v63 = vld [vmem:[%s4789_s12 + $0x40] sm:$0xff]  ;;  %v3471_v39 = vld [vmem:[%s4793_s16 + $0x48] sm:$0xff] }
 0x23a   :  { %479 = vmatpush.msra.mxu3 %v464_v63  ;;  %675 = vmatpush.msra.mxu0 %v3464_v38  ;;  %v3606_v63 = vld [vmem:[%s4793_s16 + $0x28] sm:$0xff] }
 0x23b   :  { %v374_v1 = vadd.f32 %v372_v0, %v3169_v4  ;;  %v421_v42 = vmul.f32 %v419_v40, %v3223_v29  ;;  %v463_v0 = vld [vmem:[%s4789_s12 + $0x38] sm:$0xff]  ;;  %v3476_v40 = vld [vmem:[%s4793_s16 + $0x50] sm:$0xff] }
 0x23c   :  { %v320_v3 = vpop.f32.mrf.mxu3  ;;  %480 = vmatpush.msra.mxu3 %v463_v0  ;;  %v3613_v0 = vld [vmem:[%s4793_s16 + $0x30] sm:$0xff] }
 0x23d   :  { %v321_v5 = vadd.f32 %v320_v3, %v297_v2  ;;  %2693 = vmatmul.msk.f32.vlgmr.msrb.gmra.mxu1 %vm82_vm0, %v374_v1  ;;  %v423_v46 = vadd.f32 %v421_v42, %v3210_v24  ;;  %v462_v1 = vld [vmem:[%s4789_s12 + $0x30] sm:$0xff]  ;;  %v461_v2 = vld [vmem:[%s4789_s12 + $0x28] sm:$0xff]  ;;  %v460_v3 = vld [vmem:[%s4789_s12 + $0x20] sm:$0xff] }
 0x23e   :  { %481 = vmatpush.msra.mxu3 %v462_v1  ;;  %v3492_v42 = vld [vmem:[%s4793_s16] sm:$0xff]  ;;  %v3618_v1 = vld [vmem:[%s4793_s16 + $0x38] sm:$0xff] }
 0x23f   :  { %392 = vrot.lane.b32.xlu2 %v318_v62, %s2929_s9  ;;  %394 = vrot.lane.b32.xlu1 %v321_v5, %s2929_s9  ;;  %v371_v6 = vadd.f32 %v2788_v60, %v321_v5 }
 0x240   :  { %381 = vrot.lane.b32.xlu0 %v321_v5, %s2928_s2  ;;  %482 = vmatpush.msra.mxu3 %v461_v2 }
 0x241   :  { %v373_v7 = vmul.f32 %v371_v6, %v3223_v29  ;;  %v458_v6 = vld [vmem:[%s4789_s12 + $0x10] sm:$0xff]  ;;  %676 = vmatpush.msra.mxu0 %v3492_v42 }
 0x242   :  { %483 = vmatpush.msra.mxu3 %v460_v3 }
 0x243   :  { %v375_v8 = vadd.f32 %v373_v7, %v3210_v24  ;;  %v457_v7 = vld [vmem:[%s4789_s12 + $0x8] sm:$0xff] }
 0x245   :  { %2694 = vmatmul.msk.f32.gmra.mxu1 %vm82_vm0, %v375_v8  ;;  %v456_v8 = vld [vmem:[%s4789_s12] sm:$0xff] }
 0x247   :  { %405 = vrot.lane.b32.xlu2 %v318_v62, %s2930_s7 }
 0x248   :  { %407 = vrot.lane.b32.xlu0 %v321_v5, %s2930_s7  ;;  %v459_v5 = vld [vmem:[%s4789_s12 + $0x18] sm:$0xff] }
 0x249   :  { %484 = vmatpush.msra.mxu3 %v459_v5 }
 0x24b   :  { %485 = vmatpush.msra.mxu3 %v458_v6 }
 0x24d   :  { %486 = vmatpush.msra.mxu3 %v457_v7  ;;  %v2792_v7 = vld [vmem:[%s4825_s1] ss:$0 sm:$0xff]  ;;  %s2632_s1 = sshll.u32 %s4798_s21, 4  ;;  %s2633_s1 = int_to_ptr.hbm [resolvable:$true] %s2632_s1 }
 0x24f   :  { %487 = vmatpush.msra.mxu3 %v456_v8 }
 0x291   :  { %v380_v11 = vpop.permute.xlu2 %379 }
 0x292   :  { %v385_v12 = vadd.f32 %v2789_v9, %v380_v11 }
 0x294   :  { %v387_v14 = vmul.f32 %v385_v12, %v3195_v17  ;;  %v2791_v12 = vld [vmem:[%s4824_s29 + $0x4] ss:$0 sm:$0xff] }
 0x296   :  { %v389_v20 = vadd.f32 %v387_v14, %v3169_v4 }
 0x298   :  { %426 = vrot.lane.b32.xlu2 %v389_v20, %s2930_s7 }
 0x299   :  { %v393_v22 = vpop.permute.xlu2 %392 }
 0x29a   :  { %v398_v27 = vadd.f32 %v2790_v21, %v393_v22 }
 0x29c   :  { %v400_v30 = vmul.f32 %v398_v27, %v3195_v17 }
 0x29e   :  { %v402_v33 = vadd.f32 %v400_v30, %v3169_v4 }
 0x2a0   :  { %434 = vrot.lane.b32.xlu2 %v402_v33, %s2929_s9  ;;  %v3437_v33 = vld [vmem:[%s4793_s16 + $0xd8] sm:$0xff] }
 0x2a1   :  { %742 = vmatpush.msra.mxu2 %v3437_v33 }
 0x2a3   :  { %743 = vmatpush.msra.mxu2 %v3459_v37 }
 0x2a8   :  { %442 = vrot.lane.b32.xlu2 %v422_v41, %s2928_s2  ;;  %v3481_v41 = vld [vmem:[%s4793_s16 + $0x58] sm:$0xff] }
 0x2a9   :  { %744 = vmatpush.msra.mxu2 %v3481_v41 }
 0x2ab   :  { %745 = vmatpush.msra.mxu2 %v3509_v45 }
 0x2b0   :  { %444 = vrot.lane.b32.xlu2 %v423_v46, %s2928_s2 }
 0x2b1   :  { %v395_v49 = vpop.permute.xlu1 %394 }
 0x2b2   :  { %v399_v50 = vadd.f32 %v2790_v21, %v395_v49  ;;  %v382_v51 = vpop.permute.xlu0 %381  ;;  %v3531_v49 = vld [vmem:[%s4793_s16 + $0xe0] sm:$0xff] }
 0x2b3   :  { %v386_v53 = vadd.f32 %v2789_v9, %v382_v51  ;;  %v406_v9 = vpop.permute.xlu2 %405  ;;  %v3541_v51 = vld [vmem:[%s4793_s16 + $0xf0] sm:$0xff]  ;;  %765 = vmatpush.msrb.mxu0 %v3531_v49 }
 0x2b4   :  { %v401_v54 = vmul.f32 %v399_v50, %v3223_v29  ;;  %v411_v13 = vadd.f32 %v2791_v12, %v406_v9  ;;  %v3536_v50 = vld [vmem:[%s4793_s16 + $0xe8] sm:$0xff] }
 0x2b5   :  { %v388_v56 = vmul.f32 %v386_v53, %v3223_v29  ;;  %v3553_v53 = vld [vmem:[%s4793_s16 + $0xa0] sm:$0xff] }
 0x2b6   :  { %v403_v57 = vadd.f32 %v401_v54, %v3210_v24  ;;  %v413_v15 = vmul.f32 %v411_v13, %v3195_v17  ;;  %v3558_v54 = vld [vmem:[%s4793_s16 + $0xa8] sm:$0xff]  ;;  %766 = vmatpush.msrb.mxu0 %v3553_v53 }
 0x2b7   :  { %v390_v58 = vadd.f32 %v388_v56, %v3210_v24  ;;  %v3567_v56 = vld [vmem:[%s4793_s16 + $0xb0] sm:$0xff] }
 0x2b8   :  { %436 = vrot.lane.b32.xlu0 %v403_v57, %s2929_s9  ;;  %v415_v16 = vadd.f32 %v413_v15, %v3169_v4  ;;  %v3572_v57 = vld [vmem:[%s4793_s16 + $0xb8] sm:$0xff] }
 0x2b9   :  { %428 = vrot.lane.b32.xlu1 %v390_v58, %s2930_s7  ;;  %v3577_v58 = vld [vmem:[%s4793_s16 + $0x60] sm:$0xff] }
 0x2ba   :  { %v562_v59 = vpop.f32.mrf.mxu1  ;;  %v408_v22 = vpop.permute.xlu0 %407  ;;  %767 = vmatpush.msrb.mxu0 %v3577_v58 }
 0x2bb   :  { %2813 = vtanh.f32 %v562_v59  ;;  %v412_v23 = vadd.f32 %v2791_v12, %v408_v22  ;;  %v3584_v59 = vld [vmem:[%s4793_s16 + $0x68] sm:$0xff] }
 0x2bd   :  { %v414_v25 = vmul.f32 %v412_v23, %v3223_v29  ;;  %v3425_v29 = vld [vmem:[%s4793_s16 + $0xc8] sm:$0xff] }
 0x2be   :  { %696 = vmatpush.msra.mxu1 %v3425_v29 }
 0x2bf   :  { %v416_v26 = vadd.f32 %v414_v25, %v3210_v24  ;;  %v3430_v24 = vld [vmem:[%s4793_s16 + $0xd0] sm:$0xff] }
 0x2c0   :  { %719 = vmatpush.msrb.mxu3 %v3430_v24  ;;  %697 = vmatpush.msra.mxu1 %v3447_v35 }
 0x2c1   :  { %v2814_v60 = vpop.eup %2813 }
 0x2c2   :  { %v565_v61 = vpop.f32.mrf.mxu1  ;;  %2695 = vmatmul.msk.f32.vlgmr.msrb.gmra.mxu2 %vm450_vm10, %v2814_v60  ;;  %720 = vmatpush.msrb.mxu3 %v3454_v36  ;;  %v3589_v60 = vld [vmem:[%s4793_s16 + $0x70] sm:$0xff] }
 0x2c3   :  { %2815 = vtanh.f32 %v565_v61  ;;  %698 = vmatpush.msra.mxu1 %v3471_v39  ;;  %834 = vmatpush.msrb.mxu2 %v3548_v52  ;;  %v3594_v61 = vld [vmem:[%s4793_s16 + $0x78] sm:$0xff] }
 0x2c4   :  { %721 = vmatpush.msrb.mxu3 %v3476_v40 }
 0x2c5   :  { %699 = vmatpush.msra.mxu1 %v3497_v43  ;;  %835 = vmatpush.msrb.mxu2 %v3572_v57 }
 0x2c6   :  { %722 = vmatpush.msrb.mxu3 %v3502_v44 }
 0x2c7   :  { %788 = vmatpush.msrb.mxu1 %v3536_v50  ;;  %836 = vmatpush.msrb.mxu2 %v3594_v61 }
 0x2c9   :  { %v2816_v62 = vpop.eup %2815  ;;  %789 = vmatpush.msrb.mxu1 %v3558_v54  ;;  %837 = vmatpush.msrb.mxu2 %v3618_v1 }
 0x2ca   :  { %2696 = vmatmul.msk.f32.gmra.mxu2 %vm450_vm10, %v2816_v62  ;;  %v3601_v62 = vld [vmem:[%s4793_s16 + $0x20] sm:$0xff]  ;;  %s4827_s16 = sld [smem:[#allocation17_spill]] }
 0x2cb   :  { %790 = vmatpush.msrb.mxu1 %v3584_v59  ;;  %768 = vmatpush.msrb.mxu0 %v3601_v62 }
 0x2cd   :  { %791 = vmatpush.msrb.mxu1 %v3606_v63 }
 0x2f2   :  { %v427_v11 = vpop.permute.xlu2 %426 }
 0x2f3   :  { %v448_v19 = vsel %vm82_vm0, %v415_v16, %v427_v11 }
 0x2fa   :  { %v435_v14 = vpop.permute.xlu2 %434 }
 0x2fb   :  { %v451_v20 = vsel %vm450_vm10, %v448_v19, %v435_v14 }
 0x302   :  { %v443_v21 = vpop.permute.xlu2 %442 }
 0x303   :  { %v454_v18 = vsel %vm453_vm11, %v451_v20, %v443_v21 }
 0x304   :  { %488 = vmatmul.f32.vlgmr.msra.gmra.mxu3 %v454_v18 }
 0x305   :  { %811 = vmatpush.msra.mxu3 %v3541_v51 }
 0x307   :  { %812 = vmatpush.msra.mxu3 %v3567_v56 }
 0x309   :  { %813 = vmatpush.msra.mxu3 %v3589_v60 }
 0x30a   :  { %v445_v30 = vpop.permute.xlu2 %444 }
 0x30b   :  { %814 = vmatpush.msra.mxu3 %v3613_v0 }
 0x32a   :  { %v437_v27 = vpop.permute.xlu0 %436 }
 0x32b   :  { %v429_v28 = vpop.permute.xlu1 %428 }
 0x32c   :  { %v449_v17 = vsel %vm82_vm0, %v416_v26, %v429_v28 }
 0x32d   :  { %v452_v4 = vsel %vm450_vm10, %v449_v17, %v437_v27 }
 0x32e   :  { %v455_v31 = vsel %vm453_vm11, %v452_v4, %v445_v30 }
 0x32f   :  { %491 = vmatmul.f32.gmra.mxu3 %v455_v31 }
 0x345   :  { %v601_v5 = vpop.f32.mrf.mxu2 }
 0x346   :  { %v611_v9 = vadd.f32 %v2792_v7, %v601_v5  ;;  %v1050_v5 = vld [vmem:[%s4794_s17 + $0x78] sm:$0xff] }
 0x348   :  { %v613_v12 = vmul.f32 1.442695, %v611_v9  ;;  %v1042_v9 = vld [vmem:[%s4794_s17 + $0x38] sm:$0xff] }
 0x34d   :  { %v604_v14 = vpop.f32.mrf.mxu2 }
 0x34e   :  { %v612_v21 = vadd.f32 %v2792_v7, %v604_v14  ;;  %v1056_v7 = vld [vmem:[%s4794_s17 + $0xa8] sm:$0xff] }
 0x34f   :  { %v1040_v14 = vld [vmem:[%s4794_s17 + $0x28] sm:$0xff] }
 0x350   :  { %v615_v23 = vmul.f32 1.442695, %v612_v21  ;;  %v1283_v21 = vld [vmem:[%s4795_s18 + $0xc0] sm:$0xff] }
 0x387   :  { %v3513_v46 = vpop.f32.mrf.mxu3 }
 0x388   :  { %2697 = vmatmul.msk.f32.vlgmr.msra.gmra.mxu0 %vm82_vm0, %v3513_v46  ;;  %1291 = vrot.lane.b32.xlu2 %v3513_v46, %s2929_s9  ;;  %v2691_v47 = vmul.f32 -1.442695, %v3513_v46 }
 0x389   :  { %1067 = vrot.lane.b32.xlu1 %v3513_v46, %s2928_s2  ;;  %2699 = vmatmul.msk.f32.vlgmr.msra.gmra.mxu1 %vm82_vm0, %v3513_v46 }
 0x38a   :  { %2701 = vmatmul.msk.f32.vlgmr.msrb.gmra.mxu3 %vm82_vm0, %v3513_v46  ;;  %2703 = vmatmul.msk.f32.vlgmr.msra.gmra.mxu2 %vm82_vm0, %v3513_v46  ;;  %2817 = vpow2.f32 %v2691_v47 }
 0x38b   :  { %863 = vmatpush.msra.mxu0 %v3420_v32  ;;  %886 = vmatpush.msra.mxu1 %v3425_v29 }
 0x38c   :  { %909 = vmatpush.msrb.mxu3 %v3430_v24  ;;  %932 = vmatpush.msra.mxu2 %v3437_v33 }
 0x38d   :  { %864 = vmatpush.msra.mxu0 %v3442_v34  ;;  %887 = vmatpush.msra.mxu1 %v3447_v35 }
 0x38e   :  { %910 = vmatpush.msrb.mxu3 %v3454_v36  ;;  %933 = vmatpush.msra.mxu2 %v3459_v37 }
 0x38f   :  { %865 = vmatpush.msra.mxu0 %v3464_v38  ;;  %888 = vmatpush.msra.mxu1 %v3471_v39  ;;  %v1059_v39 = vld [vmem:[%s4794_s17 + $0xc0] sm:$0xff] }
 0x390   :  { %v2818_v48 = vpop.eup %2817  ;;  %911 = vmatpush.msrb.mxu3 %v3476_v40  ;;  %934 = vmatpush.msra.mxu2 %v3481_v41  ;;  %v1060_v40 = vld [vmem:[%s4794_s17 + $0xc8] sm:$0xff] }
 0x391   :  { %v3560_v55 = vadd.f32 1.0, %v2818_v48  ;;  %866 = vmatpush.msra.mxu0 %v3492_v42  ;;  %889 = vmatpush.msra.mxu1 %v3497_v43  ;;  %v1061_v42 = vld [vmem:[%s4794_s17 + $0xd0] sm:$0xff]  ;;  %v1062_v43 = vld [vmem:[%s4794_s17 + $0xd8] sm:$0xff] }
 0x392   :  { %912 = vmatpush.msrb.mxu3 %v3502_v44  ;;  %935 = vmatpush.msra.mxu2 %v3509_v45  ;;  %v1051_v45 = vld [vmem:[%s4794_s17 + $0x80] sm:$0xff]  ;;  %v1053_v48 = vld [vmem:[%s4794_s17 + $0x90] sm:$0xff] }
 0x393   :  { %2819 = vrcp.f32 %v3560_v55  ;;  %v514_v13 = vand.u32 2147483648, %v3560_v55  ;;  %vm508_vm13 = vweird.f32 %v3560_v55  ;;  %v512_v15 = vand.u32 2147483647, %v3560_v55 }
 0x394   :  { %2821 = vpow2.f32 %v613_v12  ;;  %v1048_v12 = vld [vmem:[%s4794_s17 + $0x68] sm:$0xff] }
 0x395   :  { %v515_v18 = vor.u32 1.1754944e-38, %v514_v13  ;;  %vm513_vm15 = vcmp.eq.f32.partialorder %v512_v15, 8.507059e+37  ;;  %v1039_v13 = vld [vmem:[%s4794_s17 + $0x20] sm:$0xff]  ;;  %v1285_v15 = vld [vmem:[%s4795_s18 + $0xd0] sm:$0xff] }
 0x399   :  { %v2820_v2 = vpop.eup %2819 }
 0x39a   :  { %v504_v3 = vmul.f32 %v2820_v2, %v3560_v55  ;;  %vm509_vm12 = vweird.f32 %v2820_v2  ;;  %v2822_v26 = vpop.eup %2821  ;;  %v1046_v55 = vld [vmem:[%s4794_s17 + $0x58] sm:$0xff] }
 0x39b   :  { %vm510_vm14 = vmor %vm508_vm13, %vm509_vm12  ;;  %v617_v17 = vsub.f32 0.0, %v2822_v26  ;;  %v1276_v26 = vld [vmem:[%s4795_s18 + $0x88] sm:$0xff] }
 0x39c   :  { %v505_v6 = vsub.f32 1.0, %v504_v3  ;;  %v1049_v3 = vld [vmem:[%s4794_s17 + $0x70] sm:$0xff] }
 0x39d   :  { %v619_v30 = vmul.f32 1.442695, %v617_v17  ;;  %v1267_v17 = vld [vmem:[%s4795_s18 + $0x40] sm:$0xff] }
 0x39e   :  { %v506_v8 = vmul.f32 %v2820_v2, %v505_v6  ;;  %v1055_v6 = vld [vmem:[%s4794_s17 + $0xa0] sm:$0xff] }
 0x3a0   :  { %v507_v11 = vadd.f32 %v2820_v2, %v506_v8  ;;  %v1041_v8 = vld [vmem:[%s4794_s17 + $0x30] sm:$0xff] }
 0x3a2   :  { %v511_v19 = vsel %vm510_vm14, %v2820_v2, %v507_v11  ;;  %v1047_v11 = vld [vmem:[%s4794_s17 + $0x60] sm:$0xff] }
 0x3a3   :  { %v516_v22 = vsel %vm513_vm15, %v515_v18, %v511_v19  ;;  %v1277_v19 = vld [vmem:[%s4795_s18 + $0x90] sm:$0xff]  ;;  %v1284_v18 = vld [vmem:[%s4795_s18 + $0xc8] sm:$0xff] }
 0x3a4   :  { %v533_v25 = vmul.f32 %v516_v22, %v3513_v46  ;;  %v1269_v22 = vld [vmem:[%s4795_s18 + $0x50] sm:$0xff] }
 0x3b2   :  { %v3650_v16 = vpop.f32.mrf.mxu3 }
 0x3b3   :  { %1293 = vrot.lane.b32.xlu1 %v3650_v16, %s2929_s9  ;;  %1069 = vrot.lane.b32.xlu0 %v3650_v16, %s2928_s2  ;;  %v2692_v20 = vmul.f32 -1.442695, %v3650_v16  ;;  %s2936_s2 = smov 128   ;;  %s2937_s9 = smov 8  }
 0x3b4   :  { %2698 = vmatmul.msk.f32.gmra.mxu0 %vm82_vm0, %v3650_v16  ;;  %2700 = vmatmul.msk.f32.gmra.mxu1 %vm82_vm0, %v3650_v16 }
 0x3b5   :  { %2702 = vmatmul.msk.f32.gmra.mxu3 %vm82_vm0, %v3650_v16  ;;  %2704 = vmatmul.msk.f32.gmra.mxu2 %vm82_vm0, %v3650_v16  ;;  %2823 = vpow2.f32 %v2692_v20  ;;  %v1278_v20 = vld [vmem:[%s4795_s18 + $0x98] sm:$0xff] }
 0x3b6   :  { %2825 = vpow2.f32 %v615_v23  ;;  %v1270_v23 = vld [vmem:[%s4795_s18 + $0x58] sm:$0xff] }
 0x3bb   :  { %v2824_v27 = vpop.eup %2823  ;;  %2342 = vrot.lane.b32.xlu0 %v533_v25, %s2930_s7  ;;  %v1275_v25 = vld [vmem:[%s4795_s18 + $0x80] sm:$0xff] }
 0x3bc   :  { %2705 = vmatmul.msk.f32.vlgmr.msrb.gmra.mxu0 %vm82_vm0, %v3513_v46  ;;  %2707 = vmatmul.msk.f32.vlgmr.msrb.gmra.mxu1 %vm82_vm0, %v3513_v46  ;;  %v502_v28 = vadd.f32 1.0, %v2824_v27  ;;  %v2826_v4 = vpop.eup %2825  ;;  %v1261_v27 = vld [vmem:[%s4795_s18 + $0x10] sm:$0xff] }
 0x3bd   :  { %2709 = vmatmul.msk.f32.vlgmr.msra.gmra.mxu3 %vm82_vm0, %v3513_v46  ;;  %2711 = vmatmul.msk.f32.vlgmr.msrb.gmra.mxu2 %vm82_vm0, %v3513_v46  ;;  %v618_v32 = vsub.f32 0.0, %v2826_v4  ;;  %v1052_v46 = vld [vmem:[%s4794_s17 + $0x88] sm:$0xff]  ;;  %v1259_v4 = vld [vmem:[%s4795_s18] sm:$0xff] }
 0x3be   :  { %2827 = vrcp.f32 %v502_v28  ;;  %955 = vmatpush.msrb.mxu0 %v3531_v49  ;;  %978 = vmatpush.msrb.mxu1 %v3536_v50  ;;  %v529_v33 = vand.u32 2147483648, %v502_v28  ;;  %v527_v36 = vand.u32 2147483647, %v502_v28  ;;  %vm523_vm2 = vweird.f32 %v502_v28  ;;  %v1054_v50 = vld [vmem:[%s4794_s17 + $0x98] sm:$0xff] }
 0x3bf   :  { %1001 = vmatpush.msra.mxu3 %v3541_v51  ;;  %1024 = vmatpush.msrb.mxu2 %v3548_v52  ;;  %2829 = vpow2.f32 %v619_v30  ;;  %v621_v34 = vmul.f32 1.442695, %v618_v32  ;;  %v1043_v51 = vld [vmem:[%s4794_s17 + $0x40] sm:$0xff]  ;;  %v1044_v52 = vld [vmem:[%s4794_s17 + $0x48] sm:$0xff] }
 0x3c0   :  { %956 = vmatpush.msrb.mxu0 %v3553_v53  ;;  %979 = vmatpush.msrb.mxu1 %v3558_v54  ;;  %v530_v41 = vor.u32 1.1754944e-38, %v529_v33  ;;  %vm528_vm4 = vcmp.eq.f32.partialorder %v527_v36, 8.507059e+37  ;;  %v1045_v53 = vld [vmem:[%s4794_s17 + $0x50] sm:$0xff]  ;;  %v1268_v30 = vld [vmem:[%s4795_s18 + $0x48] sm:$0xff] }
 0x3c1   :  { %1002 = vmatpush.msra.mxu3 %v3567_v56  ;;  %1025 = vmatpush.msrb.mxu2 %v3572_v57  ;;  %2831 = vpow2.f32 %v621_v34  ;;  %v1035_v56 = vld [vmem:[%s4794_s17] sm:$0xff]  ;;  %v1036_v57 = vld [vmem:[%s4794_s17 + $0x8] sm:$0xff]  ;;  %v1289_v33 = vld [vmem:[%s4795_s18 + $0xf0] sm:$0xff] }
 0x3c2   :  { %957 = vmatpush.msrb.mxu0 %v3577_v58  ;;  %980 = vmatpush.msrb.mxu1 %v3584_v59  ;;  %v1037_v58 = vld [vmem:[%s4794_s17 + $0x10] sm:$0xff]  ;;  %v1038_v59 = vld [vmem:[%s4794_s17 + $0x18] sm:$0xff]  ;;  %v1288_v36 = vld [vmem:[%s4795_s18 + $0xe8] sm:$0xff] }
 0x3c3   :  { %1003 = vmatpush.msra.mxu3 %v3589_v60  ;;  %1026 = vmatpush.msrb.mxu2 %v3594_v61  ;;  %v1065_v60 = vld [vmem:[%s4794_s17 + $0xf0] sm:$0xff]  ;;  %v1066_v61 = vld [vmem:[%s4794_s17 + $0xf8] sm:$0xff] }
 0x3c4   :  { %v2828_v31 = vpop.eup %2827  ;;  %2706 = vmatmul.msk.f32.gmra.mxu0 %vm82_vm0, %v3650_v16  ;;  %2708 = vmatmul.msk.f32.gmra.mxu1 %vm82_vm0, %v3650_v16  ;;  %v1290_v34 = vld [vmem:[%s4795_s18 + $0xf8] sm:$0xff] }
 0x3c5   :  { %2710 = vmatmul.msk.f32.gmra.mxu3 %vm82_vm0, %v3650_v16  ;;  %2712 = vmatmul.msk.f32.gmra.mxu2 %vm82_vm0, %v3650_v16  ;;  %v519_v29 = vmul.f32 %v2828_v31, %v502_v28  ;;  %vm524_vm1 = vweird.f32 %v2828_v31  ;;  %v2830_v37 = vpop.eup %2829  ;;  %v1262_v28 = vld [vmem:[%s4795_s18 + $0x18] sm:$0xff] }
 0x3c6   :  { %958 = vmatpush.msrb.mxu0 %v3601_v62  ;;  %981 = vmatpush.msrb.mxu1 %v3606_v63  ;;  %vm525_vm3 = vmor %vm523_vm2, %vm524_vm1  ;;  %v1057_v62 = vld [vmem:[%s4794_s17 + $0xb0] sm:$0xff]  ;;  %v1058_v63 = vld [vmem:[%s4794_s17 + $0xb8] sm:$0xff] }
 0x3c7   :  { %v520_v24 = vsub.f32 1.0, %v519_v29  ;;  %1004 = vmatpush.msra.mxu3 %v3613_v0  ;;  %1027 = vmatpush.msrb.mxu2 %v3618_v1  ;;  %v2832_v54 = vpop.eup %2831  ;;  %v1063_v0 = vld [vmem:[%s4794_s17 + $0xe0] sm:$0xff]  ;;  %v1064_v1 = vld [vmem:[%s4794_s17 + $0xe8] sm:$0xff]  ;;  %s2660_s17 = sshll.u32 %s4801_s24, 4  ;;  %s2661_s17 = int_to_ptr.hbm [resolvable:$true] %s2660_s17 }
 0x3c9   :  { %v521_v35 = vmul.f32 %v2828_v31, %v520_v24 }
 0x3cb   :  { %v522_v38 = vadd.f32 %v2828_v31, %v521_v35  ;;  %v1287_v35 = vld [vmem:[%s4795_s18 + $0xe0] sm:$0xff] }
 0x3cc   :  { %2713 = vmatmul.msk.f32.vlgmr.msra.gmra.mxu0 %vm82_vm0, %v2830_v37  ;;  %2715 = vmatmul.msk.f32.vlgmr.msra.gmra.mxu1 %vm82_vm0, %v2830_v37 }
 0x3cd   :  { %2717 = vmatmul.msk.f32.vlgmr.msrb.gmra.mxu3 %vm82_vm0, %v2830_v37  ;;  %2719 = vmatmul.msk.f32.vlgmr.msra.gmra.mxu2 %vm82_vm0, %v2830_v37  ;;  %v526_v44 = vsel %vm525_vm3, %v2828_v31, %v522_v38  ;;  %v1260_v31 = vld [vmem:[%s4795_s18 + $0x8] sm:$0xff]  ;;  %v1282_v38 = vld [vmem:[%s4795_s18 + $0xb8] sm:$0xff] }
 0x3ce   :  { %v531_v47 = vsel %vm528_vm4, %v530_v41, %v526_v44  ;;  %1087 = vmatpush.msra.mxu0 %v1059_v39  ;;  %1110 = vmatpush.msra.mxu1 %v1060_v40  ;;  %v1279_v41 = vld [vmem:[%s4795_s18 + $0xa0] sm:$0xff] }
 0x3cf   :  { %v534_v49 = vmul.f32 %v531_v47, %v3650_v16  ;;  %1133 = vmatpush.msrb.mxu3 %v1061_v42  ;;  %1156 = vmatpush.msra.mxu2 %v1062_v43  ;;  %v1286_v16 = vld [vmem:[%s4795_s18 + $0xd8] sm:$0xff]  ;;  %v1280_v42 = vld [vmem:[%s4795_s18 + $0xa8] sm:$0xff]  ;;  %v1271_v47 = vld [vmem:[%s4795_s18 + $0x60] sm:$0xff] }
 0x3d0   :  { %1088 = vmatpush.msra.mxu0 %v1051_v45  ;;  %1111 = vmatpush.msra.mxu1 %v1052_v46  ;;  %v1273_v45 = vld [vmem:[%s4795_s18 + $0x70] sm:$0xff]  ;;  %v1274_v46 = vld [vmem:[%s4795_s18 + $0x78] sm:$0xff] }
 0x3d1   :  { %2344 = vrot.lane.b32.xlu2 %v534_v49, %s2930_s7  ;;  %1134 = vmatpush.msrb.mxu3 %v1053_v48  ;;  %v1272_v48 = vld [vmem:[%s4795_s18 + $0x68] sm:$0xff]  ;;  %v1265_v49 = vld [vmem:[%s4795_s18 + $0x30] sm:$0xff] }
 0x3d2   :  { %1157 = vmatpush.msra.mxu2 %v1054_v50  ;;  %1089 = vmatpush.msra.mxu0 %v1043_v51  ;;  %v1266_v50 = vld [vmem:[%s4795_s18 + $0x38] sm:$0xff]  ;;  %v1263_v51 = vld [vmem:[%s4795_s18 + $0x20] sm:$0xff] }
 0x3d3   :  { %1112 = vmatpush.msra.mxu1 %v1044_v52  ;;  %1135 = vmatpush.msrb.mxu3 %v1045_v53  ;;  %v1264_v52 = vld [vmem:[%s4795_s18 + $0x28] sm:$0xff] }
 0x3d4   :  { %2714 = vmatmul.msk.f32.gmra.mxu0 %vm82_vm0, %v2832_v54  ;;  %2716 = vmatmul.msk.f32.gmra.mxu1 %vm82_vm0, %v2832_v54 }
 0x3d5   :  { %2718 = vmatmul.msk.f32.gmra.mxu3 %vm82_vm0, %v2832_v54  ;;  %2720 = vmatmul.msk.f32.gmra.mxu2 %vm82_vm0, %v2832_v54 }
 0x3d6   :  { %1158 = vmatpush.msra.mxu2 %v1046_v55  ;;  %1090 = vmatpush.msra.mxu0 %v1035_v56 }
 0x3d7   :  { %1113 = vmatpush.msra.mxu1 %v1036_v57  ;;  %1136 = vmatpush.msrb.mxu3 %v1037_v58 }
 0x3d8   :  { %1159 = vmatpush.msra.mxu2 %v1038_v59 }
 0x3dc   :  { %2721 = vmatmul.msk.f32.vlgmr.msrb.gmra.mxu0 %vm82_vm0, %v2830_v37  ;;  %2723 = vmatmul.msk.f32.vlgmr.msrb.gmra.mxu1 %vm82_vm0, %v2830_v37 }
 0x3dd   :  { %2725 = vmatmul.msk.f32.vlgmr.msra.gmra.mxu3 %vm82_vm0, %v2830_v37  ;;  %2727 = vmatmul.msk.f32.vlgmr.msrb.gmra.mxu2 %vm82_vm0, %v2830_v37  ;;  %v1281_v37 = vld [vmem:[%s4795_s18 + $0xb0] sm:$0xff] }
 0x3de   :  { %1225 = vmatpush.msra.mxu3 %v1065_v60  ;;  %1248 = vmatpush.msrb.mxu2 %v1066_v61 }
 0x3df   :  { %1179 = vmatpush.msrb.mxu0 %v1063_v0  ;;  %1202 = vmatpush.msrb.mxu1 %v1064_v1  ;;  %v3978_v1 = vld [vmem:[%s4826_s25] sm:$0xff] }
 0x3e0   :  { %1226 = vmatpush.msra.mxu3 %v1057_v62  ;;  %1249 = vmatpush.msrb.mxu2 %v1058_v63  ;;  %1619 = vst [vmem:[#allocation6] ss:$8 sm:$0xf] %v3978_v1 }
 0x3e1   :  { %1180 = vmatpush.msrb.mxu0 %v1055_v6  ;;  %1203 = vmatpush.msrb.mxu1 %v1056_v7  ;;  %1620 = vst [vmem:[#allocation6] ss:$8 sm:$0xf0] %v3978_v1 }
 0x3e2   :  { %1227 = vmatpush.msra.mxu3 %v1049_v3  ;;  %1250 = vmatpush.msrb.mxu2 %v1050_v5  ;;  %v1292_v57 = vpop.permute.xlu2 %1291  ;;  %v3987_v5 = vld [vmem:[%s4826_s25 + $0x8] sm:$0xff] }
 0x3e3   :  { %1181 = vmatpush.msrb.mxu0 %v1047_v11  ;;  %1204 = vmatpush.msrb.mxu1 %v1048_v12  ;;  %1622 = vst [vmem:[#allocation6 + $0x40] ss:$8 sm:$0xf] %v3987_v5 }
 0x3e4   :  { %2722 = vmatmul.msk.f32.gmra.mxu0 %vm82_vm0, %v2832_v54  ;;  %2724 = vmatmul.msk.f32.gmra.mxu1 %vm82_vm0, %v2832_v54  ;;  %1623 = vst [vmem:[#allocation6 + $0x40] ss:$8 sm:$0xf0] %v3987_v5 }
 0x3e5   :  { %2726 = vmatmul.msk.f32.gmra.mxu3 %vm82_vm0, %v2832_v54  ;;  %2728 = vmatmul.msk.f32.gmra.mxu2 %vm82_vm0, %v2832_v54 }
 0x3e6   :  { %1228 = vmatpush.msra.mxu3 %v1041_v8  ;;  %1251 = vmatpush.msrb.mxu2 %v1042_v9 }
 0x3e7   :  { %1182 = vmatpush.msrb.mxu0 %v1039_v13  ;;  %1205 = vmatpush.msrb.mxu1 %v1040_v14 }
 0x3fb   :  { %v3783_v2 = vpop.permute.xlu1 %1067 }
 0x3fc   :  { %2729 = vmatmul.msk.f32.vlgmr.msra.gmra.mxu0 %vm82_vm0, %v3783_v2  ;;  %2731 = vmatmul.msk.f32.vlgmr.msra.gmra.mxu1 %vm82_vm0, %v3783_v2 }
 0x3fd   :  { %2733 = vmatmul.msk.f32.vlgmr.msrb.gmra.mxu3 %vm82_vm0, %v3783_v2  ;;  %2735 = vmatmul.msk.f32.vlgmr.msra.gmra.mxu2 %vm82_vm0, %v3783_v2 }
 0x3fe   :  { %1357 = vmatpush.msrb.mxu3 %v1285_v15  ;;  %1380 = vmatpush.msra.mxu2 %v1286_v16 }
 0x3ff   :  { %1311 = vmatpush.msra.mxu0 %v1283_v21  ;;  %1334 = vmatpush.msra.mxu1 %v1284_v18 }
 0x400   :  { %1358 = vmatpush.msrb.mxu3 %v1277_v19  ;;  %1381 = vmatpush.msra.mxu2 %v1278_v20 }
 0x401   :  { %1312 = vmatpush.msra.mxu0 %v1275_v25  ;;  %1335 = vmatpush.msra.mxu1 %v1276_v26 }
 0x402   :  { %1359 = vmatpush.msrb.mxu3 %v1269_v22  ;;  %1382 = vmatpush.msra.mxu2 %v1270_v23 }
 0x403   :  { %1313 = vmatpush.msra.mxu0 %v1267_v17  ;;  %1336 = vmatpush.msra.mxu1 %v1268_v30 }
 0x404   :  { %1360 = vmatpush.msrb.mxu3 %v1261_v27  ;;  %1383 = vmatpush.msra.mxu2 %v1262_v28 }
 0x405   :  { %1314 = vmatpush.msra.mxu0 %v1259_v4  ;;  %1337 = vmatpush.msra.mxu1 %v1260_v31  ;;  %v3875_v29 = vpop.f32.mrf.mxu0 }
 0x406   :  { %v3877_v24 = vpop.f32.mrf.mxu1 }
 0x40d   :  { %v3905_v39 = vpop.f32.mrf.mxu3  ;;  %v3907_v40 = vpop.f32.mrf.mxu2 }
 0x425   :  { %v1070_v32 = vpop.permute.xlu0 %1069  ;;  %v1294_v62 = vpop.permute.xlu1 %1293 }
 0x426   :  { %2730 = vmatmul.msk.f32.gmra.mxu0 %vm82_vm0, %v1070_v32  ;;  %2732 = vmatmul.msk.f32.gmra.mxu1 %vm82_vm0, %v1070_v32 }
 0x427   :  { %2734 = vmatmul.msk.f32.gmra.mxu3 %vm82_vm0, %v1070_v32  ;;  %2736 = vmatmul.msk.f32.gmra.mxu2 %vm82_vm0, %v1070_v32 }
 0x42e   :  { %2737 = vmatmul.msk.f32.vlgmr.msrb.gmra.mxu0 %vm82_vm0, %v3783_v2  ;;  %2739 = vmatmul.msk.f32.vlgmr.msrb.gmra.mxu1 %vm82_vm0, %v3783_v2 }
 0x42f   :  { %2741 = vmatmul.msk.f32.vlgmr.msra.gmra.mxu3 %vm82_vm0, %v3783_v2  ;;  %2743 = vmatmul.msk.f32.vlgmr.msrb.gmra.mxu2 %vm82_vm0, %v3783_v2 }
 0x430   :  { %1449 = vmatpush.msra.mxu3 %v1289_v33  ;;  %1472 = vmatpush.msrb.mxu2 %v1290_v34 }
 0x431   :  { %v3915_v43 = vpop.f32.mrf.mxu0  ;;  %v3917_v44 = vpop.f32.mrf.mxu1  ;;  %1403 = vmatpush.msrb.mxu0 %v1287_v35  ;;  %1426 = vmatpush.msrb.mxu1 %v1288_v36 }
 0x432   :  { %1450 = vmatpush.msra.mxu3 %v1281_v37  ;;  %1473 = vmatpush.msrb.mxu2 %v1282_v38 }
 0x433   :  { %1404 = vmatpush.msrb.mxu0 %v1279_v41  ;;  %1427 = vmatpush.msrb.mxu1 %v1280_v42 }
 0x434   :  { %1451 = vmatpush.msra.mxu3 %v1273_v45  ;;  %1474 = vmatpush.msrb.mxu2 %v1274_v46 }
 0x435   :  { %1405 = vmatpush.msrb.mxu0 %v1271_v47  ;;  %1428 = vmatpush.msrb.mxu1 %v1272_v48  ;;  %v1949_v48 = vld [vmem:[%s4796_s19 + $0x78] sm:$0xff] }
 0x436   :  { %2738 = vmatmul.msk.f32.gmra.mxu0 %vm82_vm0, %v1070_v32  ;;  %2740 = vmatmul.msk.f32.gmra.mxu1 %vm82_vm0, %v1070_v32 }
 0x437   :  { %2742 = vmatmul.msk.f32.gmra.mxu3 %vm82_vm0, %v1070_v32  ;;  %2744 = vmatmul.msk.f32.gmra.mxu2 %vm82_vm0, %v1070_v32 }
 0x438   :  { %v3947_v53 = vpop.f32.mrf.mxu3  ;;  %v3949_v54 = vpop.f32.mrf.mxu2  ;;  %1452 = vmatpush.msra.mxu3 %v1265_v49  ;;  %1475 = vmatpush.msrb.mxu2 %v1266_v50  ;;  %v1965_v49 = vld [vmem:[%s4796_s19 + $0xf8] sm:$0xff] }
 0x439   :  { %v3951_v55 = vpop.f32.mrf.mxu0  ;;  %v3953_v56 = vpop.f32.mrf.mxu1  ;;  %1406 = vmatpush.msrb.mxu0 %v1263_v51  ;;  %1429 = vmatpush.msrb.mxu1 %v1264_v52  ;;  %v1981_v50 = vld [vmem:[%s4796_s19 + $0x178] sm:$0xff] }
 0x43e   :  { %2745 = vmatmul.msk.f32.vlgmr.msra.gmra.mxu0 %vm82_vm0, %v1292_v57  ;;  %2747 = vmatmul.msk.f32.vlgmr.msra.gmra.mxu1 %vm82_vm0, %v1292_v57 }
 0x43f   :  { %2749 = vmatmul.msk.f32.vlgmr.msrb.gmra.mxu3 %vm82_vm0, %v1292_v57  ;;  %2751 = vmatmul.msk.f32.vlgmr.msra.gmra.mxu2 %vm82_vm0, %v1292_v57 }
 0x440   :  { %v3959_v58 = vpop.f32.mrf.mxu3  ;;  %v3961_v59 = vpop.f32.mrf.mxu2  ;;  %2062 = vmatpush.msra.mxu0 %v1949_v48  ;;  %2085 = vmatpush.msra.mxu1 %v1965_v49 }
 0x441   :  { %v3963_v60 = vpop.f32.mrf.mxu0  ;;  %v3965_v61 = vpop.f32.mrf.mxu1  ;;  %2108 = vmatpush.msrb.mxu3 %v1981_v50 }
 0x446   :  { %2746 = vmatmul.msk.f32.gmra.mxu0 %vm82_vm0, %v1294_v62  ;;  %2748 = vmatmul.msk.f32.gmra.mxu1 %vm82_vm0, %v1294_v62 }
 0x447   :  { %2750 = vmatmul.msk.f32.gmra.mxu3 %vm82_vm0, %v1294_v62  ;;  %2752 = vmatmul.msk.f32.gmra.mxu2 %vm82_vm0, %v1294_v62 }
 0x448   :  { %v3971_v63 = vpop.f32.mrf.mxu3  ;;  %v3973_v0 = vpop.f32.mrf.mxu2 }
 0x449   :  { %v868_v2 = vpop.f32.mrf.mxu0  ;;  %v891_v3 = vpop.f32.mrf.mxu1 }
 0x44a   :  { %1565 = vst [vmem:[#allocation3] sm:$0xff] %v868_v2  ;;  %v1997_v2 = vld [vmem:[%s4796_s19 + $0x1f8] sm:$0xff] }
 0x44b   :  { %1566 = vst [vmem:[#allocation3 + $0x8] sm:$0xff] %v891_v3  ;;  %2131 = vmatpush.msra.mxu2 %v1997_v2 }
 0x44e   :  { %2753 = vmatmul.msk.f32.vlgmr.msrb.gmra.mxu0 %vm82_vm0, %v1292_v57  ;;  %2755 = vmatmul.msk.f32.vlgmr.msrb.gmra.mxu1 %vm82_vm0, %v1292_v57 }
 0x44f   :  { %2757 = vmatmul.msk.f32.vlgmr.msra.gmra.mxu3 %vm82_vm0, %v1292_v57  ;;  %2759 = vmatmul.msk.f32.vlgmr.msrb.gmra.mxu2 %vm82_vm0, %v1292_v57 }
 0x450   :  { %v914_v6 = vpop.f32.mrf.mxu3  ;;  %v937_v7 = vpop.f32.mrf.mxu2 }
 0x451   :  { %1567 = vst [vmem:[#allocation3 + $0x10] sm:$0xff] %v914_v6  ;;  %v871_v8 = vpop.f32.mrf.mxu0  ;;  %v894_v9 = vpop.f32.mrf.mxu1 }
 0x452   :  { %1568 = vst [vmem:[#allocation3 + $0x18] sm:$0xff] %v937_v7  ;;  %v1948_v7 = vld [vmem:[%s4796_s19 + $0x70] sm:$0xff] }
 0x453   :  { %1573 = vst [vmem:[#allocation3 + $0x40] sm:$0xff] %v871_v8  ;;  %v1964_v8 = vld [vmem:[%s4796_s19 + $0xf0] sm:$0xff]  ;;  %2063 = vmatpush.msra.mxu0 %v1948_v7  ;;  %v1991_v7 = vld [vmem:[%s4796_s19 + $0x1c8] sm:$0xff] }
 0x454   :  { %1574 = vst [vmem:[#allocation3 + $0x48] sm:$0xff] %v894_v9  ;;  %v1980_v9 = vld [vmem:[%s4796_s19 + $0x170] sm:$0xff]  ;;  %2086 = vmatpush.msra.mxu1 %v1964_v8  ;;  %v1942_v8 = vld [vmem:[%s4796_s19 + $0x40] sm:$0xff] }
 0x455   :  { %2109 = vmatpush.msrb.mxu3 %v1980_v9 }
 0x456   :  { %2754 = vmatmul.msk.f32.gmra.mxu0 %vm82_vm0, %v1294_v62  ;;  %2756 = vmatmul.msk.f32.gmra.mxu1 %vm82_vm0, %v1294_v62 }
 0x457   :  { %2758 = vmatmul.msk.f32.gmra.mxu3 %vm82_vm0, %v1294_v62  ;;  %2760 = vmatmul.msk.f32.gmra.mxu2 %vm82_vm0, %v1294_v62 }
 0x458   :  { %v917_v11 = vpop.f32.mrf.mxu3  ;;  %v940_v12 = vpop.f32.mrf.mxu2 }
 0x459   :  { %v960_v13 = vpop.f32.mrf.mxu0  ;;  %v983_v14 = vpop.f32.mrf.mxu1  ;;  %1575 = vst [vmem:[#allocation3 + $0x50] sm:$0xff] %v917_v11  ;;  %v1996_v11 = vld [vmem:[%s4796_s19 + $0x1f0] sm:$0xff] }
 0x45a   :  { %1576 = vst [vmem:[#allocation3 + $0x58] sm:$0xff] %v940_v12  ;;  %2132 = vmatpush.msra.mxu2 %v1996_v11  ;;  %v1947_v12 = vld [vmem:[%s4796_s19 + $0x68] sm:$0xff] }
 0x45b   :  { %1569 = vst [vmem:[#allocation3 + $0x20] sm:$0xff] %v960_v13  ;;  %v1963_v13 = vld [vmem:[%s4796_s19 + $0xe8] sm:$0xff]  ;;  %2064 = vmatpush.msra.mxu0 %v1947_v12 }
 0x45c   :  { %1570 = vst [vmem:[#allocation3 + $0x28] sm:$0xff] %v983_v14  ;;  %v1979_v14 = vld [vmem:[%s4796_s19 + $0x168] sm:$0xff]  ;;  %2087 = vmatpush.msra.mxu1 %v1963_v13 }
 0x45d   :  { %2110 = vmatpush.msrb.mxu3 %v1979_v14  ;;  %v1958_v14 = vld [vmem:[%s4796_s19 + $0xc0] sm:$0xff] }
 0x460   :  { %v1006_v15 = vpop.f32.mrf.mxu3  ;;  %v1029_v16 = vpop.f32.mrf.mxu2 }
 0x461   :  { %1571 = vst [vmem:[#allocation3 + $0x30] sm:$0xff] %v1006_v15  ;;  %v963_v19 = vpop.f32.mrf.mxu0  ;;  %v986_v20 = vpop.f32.mrf.mxu1  ;;  %v1995_v15 = vld [vmem:[%s4796_s19 + $0x1e8] sm:$0xff] }
 0x462   :  { %1572 = vst [vmem:[#allocation3 + $0x38] sm:$0xff] %v1029_v16  ;;  %2133 = vmatpush.msra.mxu2 %v1995_v15  ;;  %v1946_v16 = vld [vmem:[%s4796_s19 + $0x60] sm:$0xff] }
 0x463   :  { %1577 = vst [vmem:[#allocation3 + $0x60] sm:$0xff] %v963_v19  ;;  %v1962_v19 = vld [vmem:[%s4796_s19 + $0xe0] sm:$0xff]  ;;  %2065 = vmatpush.msra.mxu0 %v1946_v16 }
 0x464   :  { %1578 = vst [vmem:[#allocation3 + $0x68] sm:$0xff] %v986_v20  ;;  %v1978_v20 = vld [vmem:[%s4796_s19 + $0x160] sm:$0xff]  ;;  %2088 = vmatpush.msra.mxu1 %v1962_v19  ;;  %v1941_v19 = vld [vmem:[%s4796_s19 + $0x38] sm:$0xff] }
 0x465   :  { %2111 = vmatpush.msrb.mxu3 %v1978_v20  ;;  %v1974_v15 = vld [vmem:[%s4796_s19 + $0x140] sm:$0xff]  ;;  %v1957_v20 = vld [vmem:[%s4796_s19 + $0xb8] sm:$0xff] }
 0x468   :  { %v1009_v21 = vpop.f32.mrf.mxu3  ;;  %v1032_v18 = vpop.f32.mrf.mxu2 }
 0x469   :  { %1579 = vst [vmem:[#allocation3 + $0x70] sm:$0xff] %v1009_v21  ;;  %v1994_v21 = vld [vmem:[%s4796_s19 + $0x1e0] sm:$0xff] }
 0x46a   :  { %1580 = vst [vmem:[#allocation3 + $0x78] sm:$0xff] %v1032_v18  ;;  %2134 = vmatpush.msra.mxu2 %v1994_v21  ;;  %v1973_v21 = vld [vmem:[%s4796_s19 + $0x138] sm:$0xff] }
 0x479   :  { %v1092_v22 = vpop.f32.mrf.mxu0  ;;  %v1115_v23 = vpop.f32.mrf.mxu1 }
 0x480   :  { %v1138_v25 = vpop.f32.mrf.mxu3  ;;  %v1161_v26 = vpop.f32.mrf.mxu2 }
 0x4a3   :  { %v1095_v27 = vpop.f32.mrf.mxu0  ;;  %v1118_v28 = vpop.f32.mrf.mxu1 }
 0x4aa   :  { %v3997_v17 = vpop.f32.mrf.mxu3  ;;  %v3999_v30 = vpop.f32.mrf.mxu2 }
 0x4ab   :  { %v4001_v4 = vpop.f32.mrf.mxu0  ;;  %v4003_v31 = vpop.f32.mrf.mxu1 }
 0x4b2   :  { %v4005_v32 = vpop.f32.mrf.mxu3  ;;  %v4007_v33 = vpop.f32.mrf.mxu2 }
 0x4b3   :  { %v4009_v34 = vpop.f32.mrf.mxu0  ;;  %v4011_v35 = vpop.f32.mrf.mxu1 }
 0x4ba   :  { %v4013_v36 = vpop.f32.mrf.mxu3  ;;  %v4015_v37 = vpop.f32.mrf.mxu2 }
 0x4bb   :  { %v1316_v38 = vpop.f32.mrf.mxu0  ;;  %v1339_v41 = vpop.f32.mrf.mxu1 }
 0x4bc   :  { %v4017_v42 = vmul.f32 %v1316_v38, %v1092_v22  ;;  %v4019_v45 = vmul.f32 %v1339_v41, %v1115_v23  ;;  %v1945_v23 = vld [vmem:[%s4796_s19 + $0x58] sm:$0xff]  ;;  %v1944_v41 = vld [vmem:[%s4796_s19 + $0x50] sm:$0xff] }
 0x4bd   :  { %2066 = vmatpush.msra.mxu0 %v1945_v23  ;;  %v1993_v38 = vld [vmem:[%s4796_s19 + $0x1d8] sm:$0xff] }
 0x4be   :  { %1581 = vst [vmem:[#allocation4] sm:$0xff] %v4017_v42  ;;  %2135 = vmatpush.msra.mxu2 %v1993_v38  ;;  %v1625_v23 = vld [vmem:[#allocation3] ss:$8 sm:$0xf0] }
 0x4bf   :  { %1582 = vst [vmem:[#allocation4 + $0x8] sm:$0xff] %v4019_v45  ;;  %2067 = vmatpush.msra.mxu0 %v1944_v41  ;;  %v1624_v38 = vld [vmem:[#allocation3] ss:$8 sm:$0xf] }
 0x4c0   :  { %v1987_v41 = vld [vmem:[%s4796_s19 + $0x1a8] sm:$0xff] }
 0x4c2   :  { %v1362_v46 = vpop.f32.mrf.mxu3  ;;  %v1385_v47 = vpop.f32.mrf.mxu2 }
 0x4c3   :  { %v4032_v51 = vmul.f32 %v1362_v46, %v1138_v25  ;;  %v4034_v52 = vmul.f32 %v1385_v47, %v1161_v26  ;;  %v1319_v57 = vpop.f32.mrf.mxu0  ;;  %v1342_v62 = vpop.f32.mrf.mxu1  ;;  %v1961_v25 = vld [vmem:[%s4796_s19 + $0xd8] sm:$0xff]  ;;  %v1960_v46 = vld [vmem:[%s4796_s19 + $0xd0] sm:$0xff] }
 0x4c4   :  { %v4039_v3 = vmul.f32 %v1319_v57, %v1095_v27  ;;  %v4041_v6 = vmul.f32 %v1342_v62, %v1118_v28  ;;  %v1977_v26 = vld [vmem:[%s4796_s19 + $0x158] sm:$0xff]  ;;  %2089 = vmatpush.msra.mxu1 %v1961_v25  ;;  %v1976_v47 = vld [vmem:[%s4796_s19 + $0x150] sm:$0xff] }
 0x4c5   :  { %1583 = vst [vmem:[#allocation4 + $0x10] sm:$0xff] %v4032_v51  ;;  %2112 = vmatpush.msrb.mxu3 %v1977_v26  ;;  %v1992_v62 = vld [vmem:[%s4796_s19 + $0x1d0] sm:$0xff]  ;;  %v1939_v26 = vld [vmem:[%s4796_s19 + $0x28] sm:$0xff] }
 0x4c6   :  { %1584 = vst [vmem:[#allocation4 + $0x18] sm:$0xff] %v4034_v52  ;;  %2090 = vmatpush.msra.mxu1 %v1960_v46  ;;  %2136 = vmatpush.msra.mxu2 %v1992_v62  ;;  %v1988_v25 = vld [vmem:[%s4796_s19 + $0x1b0] sm:$0xff]  ;;  %v1938_v46 = vld [vmem:[%s4796_s19 + $0x20] sm:$0xff] }
 0x4c7   :  { %1589 = vst [vmem:[#allocation4 + $0x40] sm:$0xff] %v4039_v3  ;;  %2113 = vmatpush.msrb.mxu3 %v1976_v47  ;;  %v1626_v47 = vor.u32 %v1625_v23, %v1624_v38  ;;  %v4234_v38 = vld [vmem:[#allocation3 + $0x40] ss:$8 sm:$0xf0] }
 0x4c8   :  { %1590 = vst [vmem:[#allocation4 + $0x48] sm:$0xff] %v4041_v6  ;;  %2137 = vmatpush.msra.mxu2 %v1991_v7 }
 0x4ca   :  { %v1365_v18 = vpop.f32.mrf.mxu3  ;;  %v1388_v22 = vpop.f32.mrf.mxu2 }
 0x4cb   :  { %v1408_v27 = vpop.f32.mrf.mxu0  ;;  %v1431_v28 = vpop.f32.mrf.mxu1  ;;  %v4105_v48 = vmul.f32 %v1365_v18, %v3997_v17  ;;  %v4108_v49 = vmul.f32 %v1388_v22, %v3999_v30  ;;  %v1943_v17 = vld [vmem:[%s4796_s19 + $0x48] sm:$0xff]  ;;  %v1956_v18 = vld [vmem:[%s4796_s19 + $0xb0] sm:$0xff] }
 0x4cc   :  { %v4111_v50 = vmul.f32 %v1408_v27, %v4001_v4  ;;  %v4114_v57 = vmul.f32 %v1431_v28, %v4003_v31  ;;  %v1959_v30 = vld [vmem:[%s4796_s19 + $0xc8] sm:$0xff]  ;;  %2068 = vmatpush.msra.mxu0 %v1943_v17  ;;  %v1972_v22 = vld [vmem:[%s4796_s19 + $0x130] sm:$0xff]  ;;  %v1954_v17 = vld [vmem:[%s4796_s19 + $0xa0] sm:$0xff] }
 0x4cd   :  { %1591 = vst [vmem:[#allocation4 + $0x50] sm:$0xff] %v4105_v48  ;;  %v1975_v31 = vld [vmem:[%s4796_s19 + $0x148] sm:$0xff]  ;;  %2091 = vmatpush.msra.mxu1 %v1959_v30  ;;  %v1970_v30 = vld [vmem:[%s4796_s19 + $0x120] sm:$0xff] }
 0x4ce   :  { %1592 = vst [vmem:[#allocation4 + $0x58] sm:$0xff] %v4108_v49  ;;  %2114 = vmatpush.msrb.mxu3 %v1975_v31  ;;  %2069 = vmatpush.msra.mxu0 %v1942_v8  ;;  %v1955_v27 = vld [vmem:[%s4796_s19 + $0xa8] sm:$0xff] }
 0x4cf   :  { %1585 = vst [vmem:[#allocation4 + $0x20] sm:$0xff] %v4111_v50  ;;  %2092 = vmatpush.msra.mxu1 %v1958_v14  ;;  %v1971_v28 = vld [vmem:[%s4796_s19 + $0x128] sm:$0xff] }
 0x4d0   :  { %1586 = vst [vmem:[#allocation4 + $0x28] sm:$0xff] %v4114_v57  ;;  %2115 = vmatpush.msrb.mxu3 %v1974_v15  ;;  %2070 = vmatpush.msra.mxu0 %v1941_v19  ;;  %v1653_v14 = vld [vmem:[#allocation3 + $0x1] ss:$8 sm:$0xf] }
 0x4d1   :  { %2093 = vmatpush.msra.mxu1 %v1957_v20  ;;  %v1684_v19 = vld [vmem:[#allocation3 + $0x2] ss:$8 sm:$0xf0]  ;;  %v1663_v20 = vld [vmem:[#allocation4 + $0x1] ss:$8 sm:$0xf] }
 0x4d2   :  { %v1454_v4 = vpop.f32.mrf.mxu3  ;;  %v1477_v2 = vpop.f32.mrf.mxu2  ;;  %2116 = vmatpush.msrb.mxu3 %v1973_v21 }
 0x4d3   :  { %v4138_v9 = vmul.f32 %v1454_v4, %v4005_v32  ;;  %v4141_v11 = vmul.f32 %v1477_v2, %v4007_v33  ;;  %v1411_v12 = vpop.f32.mrf.mxu0  ;;  %v1434_v13 = vpop.f32.mrf.mxu1  ;;  %v1990_v32 = vld [vmem:[%s4796_s19 + $0x1c0] sm:$0xff]  ;;  %2094 = vmatpush.msra.mxu1 %v1956_v18 }
 0x4d4   :  { %v4154_v33 = vmul.f32 %v1411_v12, %v4009_v34  ;;  %v4157_v16 = vmul.f32 %v1434_v13, %v4011_v35  ;;  %v1989_v34 = vld [vmem:[%s4796_s19 + $0x1b8] sm:$0xff]  ;;  %v1940_v35 = vld [vmem:[%s4796_s19 + $0x30] sm:$0xff]  ;;  %2138 = vmatpush.msra.mxu2 %v1990_v32  ;;  %2117 = vmatpush.msrb.mxu3 %v1972_v22  ;;  %v1631_v12 = vmul.f32 %v1626_v47, %v3978_v1 }
 0x4d5   :  { %1587 = vst [vmem:[#allocation4 + $0x30] sm:$0xff] %v4138_v9  ;;  %2071 = vmatpush.msra.mxu0 %v1940_v35  ;;  %2095 = vmatpush.msra.mxu1 %v1955_v27  ;;  %v1654_v4 = vld [vmem:[#allocation3 + $0x1] ss:$8 sm:$0xf0] }
 0x4d6   :  { %1588 = vst [vmem:[#allocation4 + $0x38] sm:$0xff] %v4141_v11  ;;  %2139 = vmatpush.msra.mxu2 %v1989_v34  ;;  %2118 = vmatpush.msrb.mxu3 %v1971_v28  ;;  %v1633_v2 = vld [vmem:[#allocation4] ss:$8 sm:$0xf]  ;;  %v1655_v32 = vor.u32 %v1654_v4, %v1653_v14 }
 0x4d7   :  { %1593 = vst [vmem:[#allocation4 + $0x60] sm:$0xff] %v4154_v33  ;;  %2072 = vmatpush.msra.mxu0 %v1939_v26  ;;  %2096 = vmatpush.msra.mxu1 %v1954_v17  ;;  %v1683_v35 = vld [vmem:[#allocation3 + $0x2] ss:$8 sm:$0xf] }
 0x4d8   :  { %1594 = vst [vmem:[#allocation4 + $0x68] sm:$0xff] %v4157_v16  ;;  %2140 = vmatpush.msra.mxu2 %v1988_v25  ;;  %2119 = vmatpush.msrb.mxu3 %v1970_v30  ;;  %v1937_v1 = vld [vmem:[%s4796_s19 + $0x18] sm:$0xff]  ;;  %v1936_v27 = vld [vmem:[%s4796_s19 + $0x10] sm:$0xff]  ;;  %v1685_v17 = vor.u32 %v1684_v19, %v1683_v35  ;;  %v1935_v4 = vld [vmem:[%s4796_s19 + $0x8] sm:$0xff] }
 0x4d9   :  { %2073 = vmatpush.msra.mxu0 %v1938_v46  ;;  %v1953_v22 = vld [vmem:[%s4796_s19 + $0x98] sm:$0xff]  ;;  %v1952_v46 = vld [vmem:[%s4796_s19 + $0x90] sm:$0xff]  ;;  %v1983_v14 = vld [vmem:[%s4796_s19 + $0x188] sm:$0xff] }
 0x4da   :  { %v1457_v62 = vpop.f32.mrf.mxu3  ;;  %2141 = vmatpush.msra.mxu2 %v1987_v41  ;;  %v1480_v8 = vpop.f32.mrf.mxu2  ;;  %v1969_v25 = vld [vmem:[%s4796_s19 + $0x118] sm:$0xff]  ;;  %2097 = vmatpush.msra.mxu1 %v1953_v22  ;;  %v1968_v47 = vld [vmem:[%s4796_s19 + $0x110] sm:$0xff]  ;;  %v1966_v35 = vld [vmem:[%s4796_s19 + $0x100] sm:$0xff] }
 0x4db   :  { %v4209_v7 = vmul.f32 %v1457_v62, %v4013_v36  ;;  %v4213_v34 = vmul.f32 %v1480_v8, %v4015_v37  ;;  %v1986_v36 = vld [vmem:[%s4796_s19 + $0x1a0] sm:$0xff]  ;;  %2074 = vmatpush.msra.mxu0 %v1937_v1  ;;  %v1985_v26 = vld [vmem:[%s4796_s19 + $0x198] sm:$0xff]  ;;  %2120 = vmatpush.msrb.mxu3 %v1969_v25  ;;  %v1984_v62 = vld [vmem:[%s4796_s19 + $0x190] sm:$0xff] }
 0x4dc   :  { %2142 = vmatpush.msra.mxu2 %v1986_v36  ;;  %v1714_v28 = vld [vmem:[#allocation3 + $0x3] ss:$8 sm:$0xf0]  ;;  %v1693_v41 = vld [vmem:[#allocation4 + $0x2] ss:$8 sm:$0xf]  ;;  %2098 = vmatpush.msra.mxu1 %v1952_v46 }
 0x4dd   :  { %v1634_v31 = vld [vmem:[#allocation4] ss:$8 sm:$0xf0]  ;;  %v1664_v15 = vld [vmem:[#allocation4 + $0x1] ss:$8 sm:$0xf0]  ;;  %2075 = vmatpush.msra.mxu0 %v1936_v27  ;;  %2121 = vmatpush.msrb.mxu3 %v1968_v47 }
 0x4de   :  { %v1635_v13 = vor.u32 %v1634_v31, %v1633_v2  ;;  %v1694_v18 = vld [vmem:[#allocation4 + $0x2] ss:$8 sm:$0xf0]  ;;  %1595 = vst [vmem:[#allocation4 + $0x70] sm:$0xff] %v4209_v7  ;;  %v1665_v37 = vor.u32 %v1664_v15, %v1663_v20  ;;  %2143 = vmatpush.msra.mxu2 %v1985_v26 }
 0x4df   :  { %1596 = vst [vmem:[#allocation4 + $0x78] sm:$0xff] %v4213_v34  ;;  %v1951_v2 = vld [vmem:[%s4796_s19 + $0x88] sm:$0xff]  ;;  %v1934_v15 = vld [vmem:[%s4796_s19] sm:$0xff]  ;;  %v1695_v20 = vor.u32 %v1694_v18, %v1693_v41  ;;  %2076 = vmatpush.msra.mxu0 %v1935_v4  ;;  %v2013_v18 = vld [vmem:[%s4796_s19 + $0x278] sm:$0xff] }
 0x4e0   :  { %v1640_v21 = vadd.f32 %v1635_v13, %v1631_v12  ;;  %v1967_v31 = vld [vmem:[%s4796_s19 + $0x108] sm:$0xff]  ;;  %2144 = vmatpush.msra.mxu2 %v1984_v62  ;;  %2099 = vmatpush.msra.mxu1 %v1951_v2  ;;  %v1982_v36 = vld [vmem:[%s4796_s19 + $0x180] sm:$0xff]  ;;  %v2029_v26 = vld [vmem:[%s4796_s19 + $0x2f8] sm:$0xff] }
 0x4e1   :  { %v1713_v8 = vld [vmem:[#allocation3 + $0x3] ss:$8 sm:$0xf]  ;;  %v1628_v12 = vld [vmem:[#allocation3 + $0x40] ss:$8 sm:$0xf]  ;;  %2122 = vmatpush.msrb.mxu3 %v1967_v31  ;;  %2077 = vmatpush.msra.mxu0 %v1934_v15 }
 0x4e2   :  { %1648 = vst [vmem:[#allocation6 + $0x1] ss:$8 sm:$0xf0] %v1640_v21  ;;  %v1660_v23 = vmul.f32 %v1655_v32, %v1640_v21  ;;  %v1724_v13 = vld [vmem:[#allocation4 + $0x3] ss:$8 sm:$0xf0]  ;;  %v1715_v22 = vor.u32 %v1714_v28, %v1713_v8  ;;  %2145 = vmatpush.msra.mxu2 %v1983_v14 }
 0x4e3   :  { %1647 = vst [vmem:[#allocation6 + $0x1] ss:$8 sm:$0xf] %v1640_v21  ;;  %v4261_v32 = vld [vmem:[#allocation3 + $0x4] ss:$8 sm:$0xf0]  ;;  %2123 = vmatpush.msrb.mxu3 %v1966_v35  ;;  %2154 = vmatpush.msrb.mxu0 %v2013_v18 }
 0x4e4   :  { %v1670_v30 = vadd.f32 %v1665_v37, %v1660_v23  ;;  %v1950_v21 = vld [vmem:[%s4796_s19 + $0x80] sm:$0xff]  ;;  %v1630_v23 = vor.u32 %v4234_v38, %v1628_v12  ;;  %v2045_v27 = vld [vmem:[%s4796_s19 + $0x378] sm:$0xff]  ;;  %v2012_v38 = vld [vmem:[%s4796_s19 + $0x270] sm:$0xff]  ;;  %2146 = vmatpush.msra.mxu2 %v1982_v36 }
 0x4e5   :  { %v1743_v1 = vld [vmem:[#allocation3 + $0x4] ss:$8 sm:$0xf]  ;;  %v1723_v37 = vld [vmem:[#allocation4 + $0x3] ss:$8 sm:$0xf]  ;;  %2100 = vmatpush.msra.mxu1 %v1950_v21  ;;  %2200 = vmatpush.msra.mxu3 %v2045_v27 }
 0x4e6   :  { %1678 = vst [vmem:[#allocation6 + $0x2] ss:$8 sm:$0xf0] %v1670_v30  ;;  %v1690_v19 = vmul.f32 %v1685_v17, %v1670_v30  ;;  %v1658_v41 = vld [vmem:[#allocation3 + $0x41] ss:$8 sm:$0xf0]  ;;  %v1745_v8 = vor.u32 %v4261_v32, %v1743_v1  ;;  %2155 = vmatpush.msrb.mxu0 %v2012_v38 }
 0x4e7   :  { %1677 = vst [vmem:[#allocation6 + $0x2] ss:$8 sm:$0xf] %v1670_v30  ;;  %v1637_v46 = vld [vmem:[#allocation4 + $0x40] ss:$8 sm:$0xf]  ;;  %v1725_v30 = vor.u32 %v1724_v13, %v1723_v37  ;;  %2177 = vmatpush.msrb.mxu1 %v2029_v26  ;;  %v1632_v13 = vmul.f32 %v1630_v23, %v3987_v5 }
 0x4e8   :  { %v1700_v25 = vadd.f32 %v1695_v20, %v1690_v19  ;;  %v1754_v47 = vld [vmem:[#allocation4 + $0x4] ss:$8 sm:$0xf0]  ;;  %v4288_v62 = vld [vmem:[#allocation3 + $0x5] ss:$8 sm:$0xf0] }
 0x4e9   :  { %v2061_v28 = vld [vmem:[%s4796_s19 + $0x3f8] sm:$0xff]  ;;  %v2028_v4 = vld [vmem:[%s4796_s19 + $0x2f0] sm:$0xff]  ;;  %v2011_v32 = vld [vmem:[%s4796_s19 + $0x268] sm:$0xff] }
 0x4ea   :  { %1708 = vst [vmem:[#allocation6 + $0x3] ss:$8 sm:$0xf0] %v1700_v25  ;;  %v1720_v17 = vmul.f32 %v1715_v22, %v1700_v25  ;;  %v2044_v2 = vld [vmem:[%s4796_s19 + $0x370] sm:$0xff]  ;;  %2223 = vmatpush.msrb.mxu2 %v2061_v28  ;;  %2178 = vmatpush.msrb.mxu1 %v2028_v4  ;;  %v2027_v5 = vld [vmem:[%s4796_s19 + $0x2e8] sm:$0xff]  ;;  %v2010_v28 = vld [vmem:[%s4796_s19 + $0x260] sm:$0xff] }
 0x4eb   :  { %v1657_v31 = vld [vmem:[#allocation3 + $0x41] ss:$8 sm:$0xf]  ;;  %1707 = vst [vmem:[#allocation6 + $0x3] ss:$8 sm:$0xf] %v1700_v25  ;;  %2201 = vmatpush.msra.mxu3 %v2044_v2  ;;  %2156 = vmatpush.msrb.mxu0 %v2011_v32 }
 0x4ec   :  { %v1638_v12 = vld [vmem:[#allocation4 + $0x40] ss:$8 sm:$0xf0]  ;;  %v1773_v14 = vld [vmem:[#allocation3 + $0x5] ss:$8 sm:$0xf]  ;;  %v1730_v20 = vadd.f32 %v1725_v30, %v1720_v17  ;;  %v1659_v37 = vor.u32 %v1658_v41, %v1657_v31  ;;  %2179 = vmatpush.msrb.mxu1 %v2027_v5 }
 0x4ed   :  { %v4298_v15 = vld [vmem:[#allocation3 + $0x42] ss:$8 sm:$0xf0]  ;;  %v1753_v19 = vld [vmem:[#allocation4 + $0x4] ss:$8 sm:$0xf]  ;;  %v1639_v21 = vor.u32 %v1638_v12, %v1637_v46  ;;  %v1775_v38 = vor.u32 %v4288_v62, %v1773_v14  ;;  %2157 = vmatpush.msrb.mxu0 %v2010_v28 }
 0x4ee   :  { %v2060_v35 = vld [vmem:[%s4796_s19 + $0x3f0] sm:$0xff]  ;;  %v2043_v1 = vld [vmem:[%s4796_s19 + $0x368] sm:$0xff]  ;;  %1738 = vst [vmem:[#allocation6 + $0x4] ss:$8 sm:$0xf0] %v1730_v20  ;;  %v1750_v25 = vmul.f32 %v1745_v8, %v1730_v20  ;;  %v1755_v26 = vor.u32 %v1754_v47, %v1753_v19  ;;  %v4324_v41 = vld [vmem:[%s4788_s11] sm:$0xff] }
 0x4ef   :  { %v1667_v36 = vld [vmem:[#allocation4 + $0x41] ss:$8 sm:$0xf]  ;;  %v1687_v22 = vld [vmem:[#allocation3 + $0x42] ss:$8 sm:$0xf]  ;;  %v1641_v27 = vadd.f32 %v1639_v21, %v1632_v13  ;;  %2224 = vmatpush.msrb.mxu2 %v2060_v35  ;;  %2202 = vmatpush.msra.mxu3 %v2043_v1 }
 0x4f0   :  { %v1668_v18 = vld [vmem:[#allocation4 + $0x41] ss:$8 sm:$0xf0]  ;;  %v4312_v23 = vld [vmem:[#allocation3 + $0x6] ss:$8 sm:$0xf0]  ;;  %v1760_v2 = vadd.f32 %v1755_v26, %v1750_v25  ;;  %v1689_v62 = vor.u32 %v4298_v15, %v1687_v22 }
 0x4f1   :  { %v2059_v46 = vld [vmem:[%s4796_s19 + $0x3e8] sm:$0xff]  ;;  %1737 = vst [vmem:[#allocation6 + $0x4] ss:$8 sm:$0xf] %v1730_v20  ;;  %v1661_v31 = vmul.f32 %v1659_v37, %v1641_v27  ;;  %v1669_v8 = vor.u32 %v1668_v18, %v1667_v36  ;;  %v2026_v19 = vld [vmem:[%s4796_s19 + $0x2e0] sm:$0xff]  ;;  %v2009_v5 = vld [vmem:[%s4796_s19 + $0x258] sm:$0xff] }
 0x4f2   :  { %v1783_v17 = vld [vmem:[#allocation4 + $0x5] ss:$8 sm:$0xf]  ;;  %v1803_v47 = vld [vmem:[#allocation3 + $0x6] ss:$8 sm:$0xf]  ;;  %2225 = vmatpush.msrb.mxu2 %v2059_v46  ;;  %v1780_v32 = vmul.f32 %v1775_v38, %v1760_v2  ;;  %2180 = vmatpush.msrb.mxu1 %v2026_v19 }
 0x4f3   :  { %v1784_v30 = vld [vmem:[#allocation4 + $0x5] ss:$8 sm:$0xf0]  ;;  %v4326_v4 = vld [vmem:[#allocation3 + $0x43] ss:$8 sm:$0xf0]  ;;  %v1671_v18 = vadd.f32 %v1669_v8, %v1661_v31  ;;  %v1805_v37 = vor.u32 %v4312_v23, %v1803_v47  ;;  %2158 = vmatpush.msrb.mxu0 %v2009_v5 }
 0x4f4   :  { %v1698_v12 = vld [vmem:[#allocation4 + $0x42] ss:$8 sm:$0xf0]  ;;  %1650 = vst [vmem:[#allocation6 + $0x41] ss:$8 sm:$0xf] %v1641_v27  ;;  %v1785_v36 = vor.u32 %v1784_v30, %v1783_v17 }
 0x4f5   :  { %v1697_v14 = vld [vmem:[#allocation4 + $0x42] ss:$8 sm:$0xf]  ;;  %v4329_v13 = vld [vmem:[#allocation4 + $0x6] ss:$8 sm:$0xf0]  ;;  %v1691_v30 = vmul.f32 %v1689_v62, %v1671_v18 }
 0x4f6   :  { %1651 = vst [vmem:[#allocation6 + $0x41] ss:$8 sm:$0xf0] %v1641_v27  ;;  %v2042_v20 = vld [vmem:[%s4796_s19 + $0x360] sm:$0xff]  ;;  %v2025_v1 = vld [vmem:[%s4796_s19 + $0x2d8] sm:$0xff]  ;;  %v2008_v46 = vld [vmem:[%s4796_s19 + $0x250] sm:$0xff]  ;;  %v1790_v17 = vadd.f32 %v1785_v36, %v1780_v32  ;;  %v1699_v47 = vor.u32 %v1698_v12, %v1697_v14 }
 0x4f7   :  { %v2058_v21 = vld [vmem:[%s4796_s19 + $0x3e0] sm:$0xff]  ;;  %1768 = vst [vmem:[#allocation6 + $0x5] ss:$8 sm:$0xf0] %v1760_v2  ;;  %2203 = vmatpush.msra.mxu3 %v2042_v20  ;;  %v2041_v22 = vld [vmem:[%s4796_s19 + $0x358] sm:$0xff]  ;;  %v2024_v28 = vld [vmem:[%s4796_s19 + $0x2d0] sm:$0xff]  ;;  %2181 = vmatpush.msrb.mxu1 %v2025_v1 }
 0x4f8   :  { %v1717_v35 = vld [vmem:[#allocation3 + $0x43] ss:$8 sm:$0xf]  ;;  %v4340_v15 = vld [vmem:[#allocation3 + $0x7] ss:$8 sm:$0xf0]  ;;  %2226 = vmatpush.msrb.mxu2 %v2058_v21  ;;  %2159 = vmatpush.msrb.mxu0 %v2008_v46  ;;  %v1810_v36 = vmul.f32 %v1805_v37, %v1790_v17  ;;  %v1701_v1 = vadd.f32 %v1699_v47, %v1691_v30 }
 0x4f9   :  { %v1813_v25 = vld [vmem:[#allocation4 + $0x6] ss:$8 sm:$0xf]  ;;  %1767 = vst [vmem:[#allocation6 + $0x5] ss:$8 sm:$0xf] %v1760_v2  ;;  %2204 = vmatpush.msra.mxu3 %v2041_v22  ;;  %v1719_v62 = vor.u32 %v4326_v4, %v1717_v35  ;;  %2182 = vmatpush.msrb.mxu1 %v2024_v28 }
 0x4fa   :  { %v4352_v26 = vld [vmem:[#allocation4 + $0x43] ss:$8 sm:$0xf0]  ;;  %v1833_v38 = vld [vmem:[#allocation3 + $0x7] ss:$8 sm:$0xf]  ;;  %v1815_v5 = vor.u32 %v4329_v13, %v1813_v25 }
 0x4fb   :  { %v2057_v27 = vld [vmem:[%s4796_s19 + $0x3d8] sm:$0xff]  ;;  %1680 = vst [vmem:[#allocation6 + $0x42] ss:$8 sm:$0xf] %v1671_v18  ;;  %v2040_v2 = vld [vmem:[%s4796_s19 + $0x350] sm:$0xff]  ;;  %v2007_v8 = vld [vmem:[%s4796_s19 + $0x248] sm:$0xff]  ;;  %v1835_v22 = vor.u32 %v4340_v15, %v1833_v38  ;;  %v1721_v28 = vmul.f32 %v1719_v62, %v1701_v1 }
 0x4fc   :  { %v4363_v23 = vld [vmem:[#allocation3 + $0x44] ss:$8 sm:$0xf0]  ;;  %v1501_v19 = vperm.slane %v4324_v41, 0  ;;  %2227 = vmatpush.msrb.mxu2 %v2057_v27  ;;  %2205 = vmatpush.msra.mxu3 %v2040_v2  ;;  %v1820_v46 = vadd.f32 %v1815_v5, %v1810_v36  ;;  %s2933_s11 = smov 1  }
 0x4fd   :  { %v2056_v31 = vld [vmem:[%s4796_s19 + $0x3d0] sm:$0xff]  ;;  %1681 = vst [vmem:[#allocation6 + $0x42] ss:$8 sm:$0xf0] %v1671_v18  ;;  %v2023_v20 = vld [vmem:[%s4796_s19 + $0x2c8] sm:$0xff]  ;;  %v2006_v35 = vld [vmem:[%s4796_s19 + $0x240] sm:$0xff]  ;;  %2160 = vmatpush.msrb.mxu0 %v2007_v8 }
 0x4fe   :  { %v1727_v12 = vld [vmem:[#allocation4 + $0x43] ss:$8 sm:$0xf]  ;;  %v1844_v14 = vld [vmem:[#allocation4 + $0x7] ss:$8 sm:$0xf0]  ;;  %2228 = vmatpush.msrb.mxu2 %v2056_v31  ;;  %2183 = vmatpush.msrb.mxu1 %v2023_v20  ;;  %v1840_v62 = vmul.f32 %v1835_v22, %v1820_v46 }
 0x4ff   :  { %v2039_v21 = vld [vmem:[%s4796_s19 + $0x348] sm:$0xff]  ;;  %1798 = vst [vmem:[#allocation6 + $0x6] ss:$8 sm:$0xf0] %v1790_v17  ;;  %v1502_v18 = vperm.slane %v4324_v41, 1  ;;  %v2022_v13 = vld [vmem:[%s4796_s19 + $0x2c0] sm:$0xff]  ;;  %v1729_v30 = vor.u32 %v4352_v26, %v1727_v12  ;;  %2161 = vmatpush.msrb.mxu0 %v2006_v35 }
 0x500   :  { %v1747_v32 = vld [vmem:[#allocation3 + $0x44] ss:$8 sm:$0xf]  ;;  %v1843_v27 = vld [vmem:[#allocation4 + $0x7] ss:$8 sm:$0xf]  ;;  %2206 = vmatpush.msra.mxu3 %v2039_v21  ;;  %2184 = vmatpush.msrb.mxu1 %v2022_v13 }
 0x501   :  { %v2055_v4 = vld [vmem:[%s4796_s19 + $0x3c8] sm:$0xff]  ;;  %1797 = vst [vmem:[#allocation6 + $0x6] ss:$8 sm:$0xf] %v1790_v17  ;;  %v2038_v25 = vld [vmem:[%s4796_s19 + $0x340] sm:$0xff]  ;;  %v2005_v38 = vld [vmem:[%s4796_s19 + $0x238] sm:$0xff]  ;;  %v1749_v47 = vor.u32 %v4363_v23, %v1747_v32  ;;  %v1845_v12 = vor.u32 %v1844_v14, %v1843_v27  ;;  %v1731_v20 = vadd.f32 %v1729_v30, %v1721_v28 }
 0x502   :  { %v1758_v37 = vld [vmem:[#allocation4 + $0x44] ss:$8 sm:$0xf0]  ;;  %1710 = vst [vmem:[#allocation6 + $0x43] ss:$8 sm:$0xf] %v1701_v1  ;;  %2229 = vmatpush.msrb.mxu2 %v2055_v4  ;;  %2207 = vmatpush.msra.mxu3 %v2038_v25 }
 0x503   :  { %v2054_v15 = vld [vmem:[%s4796_s19 + $0x3c0] sm:$0xff]  ;;  %v1503_v17 = vperm.slane %v4324_v41, 2  ;;  %1711 = vst [vmem:[#allocation6 + $0x43] ss:$8 sm:$0xf0] %v1701_v1  ;;  %v2021_v26 = vld [vmem:[%s4796_s19 + $0x2b8] sm:$0xff]  ;;  %2162 = vmatpush.msrb.mxu0 %v2005_v38  ;;  %v1850_v35 = vadd.f32 %v1845_v12, %v1840_v62  ;;  %v1751_v22 = vmul.f32 %v1749_v47, %v1731_v20 }
 0x504   :  { %v1778_v2 = vld [vmem:[#allocation3 + $0x45] ss:$8 sm:$0xf0]  ;;  %v1757_v31 = vld [vmem:[#allocation4 + $0x44] ss:$8 sm:$0xf]  ;;  %2230 = vmatpush.msrb.mxu2 %v2054_v15  ;;  %2185 = vmatpush.msrb.mxu1 %v2021_v26  ;;  %v1518_v26 = vmul.f32 %v1502_v18, %v3877_v24 }
 0x505   :  { %v2037_v8 = vld [vmem:[%s4796_s19 + $0x338] sm:$0xff]  ;;  %1828 = vst [vmem:[#allocation6 + $0x7] ss:$8 sm:$0xf0] %v1820_v46  ;;  %v2004_v21 = vld [vmem:[%s4796_s19 + $0x230] sm:$0xff]  ;;  %v1504_v32 = vperm.slane %v4324_v41, 3  ;;  %v1759_v27 = vor.u32 %v1758_v37, %v1757_v31 }
 0x506   :  { %v2053_v23 = vld [vmem:[%s4796_s19 + $0x3b8] sm:$0xff]  ;;  %1827 = vst [vmem:[#allocation6 + $0x7] ss:$8 sm:$0xf] %v1820_v46  ;;  %v2020_v14 = vld [vmem:[%s4796_s19 + $0x2b0] sm:$0xff]  ;;  %2208 = vmatpush.msra.mxu3 %v2037_v8  ;;  %v2003_v25 = vld [vmem:[%s4796_s19 + $0x228] sm:$0xff]  ;;  %2163 = vmatpush.msrb.mxu0 %v2004_v21  ;;  %v1519_v8 = vmul.f32 %v1503_v17, %v3905_v39 }
 0x507   :  { %v1777_v36 = vld [vmem:[#allocation3 + $0x45] ss:$8 sm:$0xf]  ;;  %v4425_v4 = vld [vmem:[#allocation3 + $0x46] ss:$8 sm:$0xf0]  ;;  %2231 = vmatpush.msrb.mxu2 %v2053_v23  ;;  %1852 = vst [vmem:[%s4800_s23] sm:$0xff] %v1850_v35  ;;  %v1761_v38 = vadd.f32 %v1759_v27, %v1751_v22  ;;  %2186 = vmatpush.msrb.mxu1 %v2020_v14  ;;  %v1520_v23 = vmul.f32 %v1504_v32, %v3907_v40 }
 0x508   :  { %v1788_v5 = vld [vmem:[#allocation4 + $0x45] ss:$8 sm:$0xf0]  ;;  %1740 = vst [vmem:[#allocation6 + $0x44] ss:$8 sm:$0xf] %v1731_v20  ;;  %v1779_v30 = vor.u32 %v1778_v2, %v1777_v36  ;;  %v1517_v2 = vmul.f32 %v1501_v19, %v3875_v29  ;;  %2164 = vmatpush.msrb.mxu0 %v2003_v25 }
 0x509   :  { %v2036_v1 = vld [vmem:[%s4796_s19 + $0x330] sm:$0xff]  ;;  %1741 = vst [vmem:[#allocation6 + $0x44] ss:$8 sm:$0xf0] %v1731_v20  ;;  %v2019_v46 = vld [vmem:[%s4796_s19 + $0x2a8] sm:$0xff]  ;;  %v2002_v31 = vld [vmem:[%s4796_s19 + $0x220] sm:$0xff] }
 0x50a   :  { %v2052_v13 = vld [vmem:[%s4796_s19 + $0x3b0] sm:$0xff]  ;;  %v2035_v37 = vld [vmem:[%s4796_s19 + $0x328] sm:$0xff]  ;;  %2209 = vmatpush.msra.mxu3 %v2036_v1  ;;  %v2018_v12 = vld [vmem:[%s4796_s19 + $0x2a0] sm:$0xff]  ;;  %v1781_v21 = vmul.f32 %v1779_v30, %v1761_v38  ;;  %1770 = vst [vmem:[#allocation6 + $0x45] ss:$8 sm:$0xf] %v1761_v38  ;;  %2187 = vmatpush.msrb.mxu1 %v2019_v46 }
 0x50b   :  { %v1807_v28 = vld [vmem:[#allocation3 + $0x46] ss:$8 sm:$0xf]  ;;  %v1787_v15 = vld [vmem:[#allocation4 + $0x45] ss:$8 sm:$0xf]  ;;  %2232 = vmatpush.msrb.mxu2 %v2052_v13  ;;  %v1534_v13 = vmul.f32 %v1518_v26, %v4019_v45  ;;  %2165 = vmatpush.msrb.mxu0 %v2002_v31  ;;  %v1536_v45 = vmul.f32 %v1520_v23, %v4034_v52 }
 0x50c   :  { %v2051_v47 = vld [vmem:[%s4796_s19 + $0x3a8] sm:$0xff]  ;;  %v2034_v20 = vld [vmem:[%s4796_s19 + $0x320] sm:$0xff]  ;;  %v1789_v36 = vor.u32 %v1788_v5, %v1787_v15  ;;  %2210 = vmatpush.msra.mxu3 %v2035_v37  ;;  %v2001_v1 = vld [vmem:[%s4796_s19 + $0x218] sm:$0xff]  ;;  %v1809_v22 = vor.u32 %v4425_v4, %v1807_v28  ;;  %v1533_v5 = vmul.f32 %v1517_v2, %v4017_v42  ;;  %1771 = vst [vmem:[#allocation6 + $0x45] ss:$8 sm:$0xf0] %v1761_v38 }
 0x50d   :  { %v1818_v62 = vld [vmem:[#allocation4 + $0x46] ss:$8 sm:$0xf0]  ;;  %v1838_v27 = vld [vmem:[#allocation3 + $0x47] ss:$8 sm:$0xf0]  ;;  %2233 = vmatpush.msrb.mxu2 %v2051_v47  ;;  %v1535_v42 = vmul.f32 %v1519_v8, %v4032_v51  ;;  %2188 = vmatpush.msrb.mxu1 %v2018_v12 }
 0x50e   :  { %v2050_v14 = vld [vmem:[%s4796_s19 + $0x3a0] sm:$0xff]  ;;  %v2017_v35 = vld [vmem:[%s4796_s19 + $0x298] sm:$0xff]  ;;  %v2000_v4 = vld [vmem:[%s4796_s19 + $0x210] sm:$0xff]  ;;  %v1791_v28 = vadd.f32 %v1789_v36, %v1781_v21  ;;  %2211 = vmatpush.msra.mxu3 %v2034_v20  ;;  %2166 = vmatpush.msrb.mxu0 %v2001_v1 }
 0x50f   :  { %v1817_v25 = vld [vmem:[#allocation4 + $0x46] ss:$8 sm:$0xf]  ;;  %2234 = vmatpush.msrb.mxu2 %v2050_v14  ;;  %v1837_v8 = vld [vmem:[#allocation3 + $0x47] ss:$8 sm:$0xf]  ;;  %2189 = vmatpush.msrb.mxu1 %v2017_v35 }
 0x510   :  { %v2033_v46 = vld [vmem:[%s4796_s19 + $0x318] sm:$0xff]  ;;  %v1870_v30 = vld [vmem:[#allocation6] sm:$0xff]  ;;  %v1871_v15 = vld [vmem:[#allocation6 + $0x8] sm:$0xff]  ;;  %v1811_v12 = vmul.f32 %v1809_v22, %v1791_v28  ;;  %v1819_v20 = vor.u32 %v1818_v62, %v1817_v25  ;;  %1800 = vst [vmem:[#allocation6 + $0x46] ss:$8 sm:$0xf] %v1791_v28  ;;  %2167 = vmatpush.msrb.mxu0 %v2000_v4  ;;  %v1839_v36 = vor.u32 %v1838_v27, %v1837_v8 }
 0x511   :  { %v2049_v37 = vld [vmem:[%s4796_s19 + $0x398] sm:$0xff]  ;;  %v1872_v38 = vld [vmem:[#allocation6 + $0x10] sm:$0xff]  ;;  %v1886_v47 = vmul.f32 %v1870_v30, %v3875_v29  ;;  %v1887_v31 = vmul.f32 %v1871_v15, %v3877_v24  ;;  %2212 = vmatpush.msra.mxu3 %v2033_v46  ;;  %1801 = vst [vmem:[#allocation6 + $0x46] ss:$8 sm:$0xf0] %v1791_v28  ;;  %v2015_v22 = vld [vmem:[%s4796_s19 + $0x288] sm:$0xff]  ;;  %v1525_v28 = vmul.f32 %v1501_v19, %v3915_v43 }
 0x512   :  { %v1888_v2 = vmul.f32 %v1872_v38, %v3905_v39  ;;  %v1873_v26 = vld [vmem:[#allocation6 + $0x18] sm:$0xff]  ;;  %v2016_v51 = vld [vmem:[%s4796_s19 + $0x290] sm:$0xff]  ;;  %2235 = vmatpush.msrb.mxu2 %v2049_v37  ;;  %v1821_v14 = vadd.f32 %v1819_v20, %v1811_v12  ;;  %v2031_v27 = vld [vmem:[%s4796_s19 + $0x308] sm:$0xff]  ;;  %v1526_v30 = vmul.f32 %v1502_v18, %v3917_v44  ;;  %v1527_v15 = vmul.f32 %v1503_v17, %v3947_v53 }
 0x513   :  { %v2032_v52 = vld [vmem:[%s4796_s19 + $0x310] sm:$0xff]  ;;  %v1889_v29 = vmul.f32 %v1873_v26, %v3907_v40  ;;  %v1918_v39 = vadd.f32 %v1886_v47, %v1533_v5  ;;  %v1919_v23 = vadd.f32 %v1887_v31, %v1534_v13  ;;  %2190 = vmatpush.msrb.mxu1 %v2016_v51  ;;  %v1999_v40 = vld [vmem:[%s4796_s19 + $0x208] sm:$0xff]  ;;  %v1998_v46 = vld [vmem:[%s4796_s19 + $0x200] sm:$0xff]  ;;  %v1528_v38 = vmul.f32 %v1504_v32, %v3949_v54 }
 0x514   :  { %v1848_v24 = vld [vmem:[#allocation4 + $0x47] ss:$8 sm:$0xf0]  ;;  %v1920_v21 = vadd.f32 %v1888_v2, %v1535_v42  ;;  %2213 = vmatpush.msra.mxu3 %v2032_v52  ;;  %v1841_v5 = vmul.f32 %v1839_v36, %v1821_v14  ;;  %1830 = vst [vmem:[#allocation6 + $0x47] ss:$8 sm:$0xf] %v1821_v14  ;;  %2168 = vmatpush.msrb.mxu0 %v1999_v40 }
 0x515   :  { %v1921_v1 = vadd.f32 %v1889_v29, %v1536_v45  ;;  %v2048_v62 = vld [vmem:[%s4796_s19 + $0x390] sm:$0xff]  ;;  %2078 = vmatmul.f32.vlgmr.msra.gmra.mxu0 %v1918_v39  ;;  %2101 = vmatmul.f32.vlgmr.msra.gmra.mxu1 %v1919_v23  ;;  %v2047_v25 = vld [vmem:[%s4796_s19 + $0x388] sm:$0xff]  ;;  %1831 = vst [vmem:[#allocation6 + $0x47] ss:$8 sm:$0xf0] %v1821_v14  ;;  %v2014_v37 = vld [vmem:[%s4796_s19 + $0x280] sm:$0xff]  ;;  %v1541_v47 = vmul.f32 %v1525_v28, %v4039_v3 }
 0x516   :  { %v1847_v35 = vld [vmem:[#allocation4 + $0x47] ss:$8 sm:$0xf]  ;;  %2124 = vmatmul.f32.vlgmr.msrb.gmra.mxu3 %v1920_v21  ;;  %2236 = vmatpush.msrb.mxu2 %v2048_v62  ;;  %v1542_v31 = vmul.f32 %v1526_v30, %v4041_v6  ;;  %v1543_v51 = vmul.f32 %v1527_v15, %v4105_v48  ;;  %v1505_v12 = vperm.slane %v4324_v41, 4  ;;  %v1544_v32 = vmul.f32 %v1528_v38, %v4108_v49 }
 0x517   :  { %v1849_v13 = vor.u32 %v1848_v24, %v1847_v35  ;;  %2147 = vmatmul.f32.vlgmr.msra.gmra.mxu2 %v1921_v1  ;;  %v2030_v4 = vld [vmem:[%s4796_s19 + $0x300] sm:$0xff]  ;;  %2191 = vmatpush.msrb.mxu1 %v2015_v22  ;;  %v1506_v6 = vperm.slane %v4324_v41, 5  ;;  %v1507_v48 = vperm.slane %v4324_v41, 6  ;;  %v1875_v23 = vld [vmem:[#allocation6 + $0x28] sm:$0xff]  ;;  %v1876_v21 = vld [vmem:[#allocation6 + $0x30] sm:$0xff] }
 0x518   :  { %2214 = vmatpush.msra.mxu3 %v2031_v27  ;;  %v2046_v45 = vld [vmem:[%s4796_s19 + $0x380] sm:$0xff]  ;;  %2237 = vmatpush.msrb.mxu2 %v2047_v25  ;;  %v1891_v14 = vmul.f32 %v1875_v23, %v3953_v56  ;;  %v1892_v40 = vmul.f32 %v1876_v21, %v3959_v58 }
 0x519   :  { %v1851_v42 = vadd.f32 %v1849_v13, %v1841_v5  ;;  %2169 = vmatpush.msrb.mxu0 %v1998_v46  ;;  %2192 = vmatpush.msrb.mxu1 %v2014_v37  ;;  %v1522_v49 = vmul.f32 %v1506_v6, %v3953_v56  ;;  %v1523_v1 = vmul.f32 %v1507_v48, %v3959_v58 }
 0x51a   :  { %2215 = vmatpush.msra.mxu3 %v2030_v4  ;;  %2238 = vmatpush.msrb.mxu2 %v2046_v45  ;;  %v1529_v58 = vmul.f32 %v1505_v12, %v3963_v60 }
 0x51b   :  { %1853 = vst [vmem:[%s4800_s23 + $0x8] sm:$0xff] %v1851_v42  ;;  %v1878_v2 = vld [vmem:[#allocation6 + $0x40] sm:$0xff]  ;;  %v1879_v26 = vld [vmem:[#allocation6 + $0x48] sm:$0xff]  ;;  %v1880_v19 = vld [vmem:[#allocation6 + $0x50] sm:$0xff]  ;;  %v1538_v22 = vmul.f32 %v1522_v49, %v4114_v57  ;;  %v1539_v27 = vmul.f32 %v1523_v1, %v4138_v9 }
 0x51c   :  { %v1894_v18 = vmul.f32 %v1878_v2, %v3915_v43  ;;  %v1895_v52 = vmul.f32 %v1879_v26, %v3917_v44  ;;  %v1896_v8 = vmul.f32 %v1880_v19, %v3947_v53  ;;  %v1881_v17 = vld [vmem:[#allocation6 + $0x58] sm:$0xff]  ;;  %v1508_v43 = vperm.slane %v4324_v41, 7  ;;  %v1874_v44 = vld [vmem:[#allocation6 + $0x20] sm:$0xff]  ;;  %v1883_v37 = vld [vmem:[#allocation6 + $0x68] sm:$0xff] }
 0x51d   :  { %v1897_v3 = vmul.f32 %v1881_v17, %v3949_v54  ;;  %v1877_v53 = vld [vmem:[#allocation6 + $0x38] sm:$0xff]  ;;  %v1521_v54 = vmul.f32 %v1505_v12, %v3951_v55  ;;  %v1890_v36 = vmul.f32 %v1874_v44, %v3951_v55  ;;  %v1923_v55 = vadd.f32 %v1891_v14, %v1538_v22  ;;  %v1882_v46 = vld [vmem:[#allocation6 + $0x60] sm:$0xff]  ;;  %v1884_v4 = vld [vmem:[#allocation6 + $0x70] sm:$0xff] }
 0x51e   :  { %v1926_v20 = vadd.f32 %v1894_v18, %v1541_v47  ;;  %v1927_v29 = vadd.f32 %v1895_v52, %v1542_v31  ;;  %v1928_v24 = vadd.f32 %v1896_v8, %v1543_v51  ;;  %v1524_v41 = vmul.f32 %v1508_v43, %v3961_v59 }
 0x51f   :  { %v1929_v39 = vadd.f32 %v1897_v3, %v1544_v32  ;;  %v1893_v62 = vmul.f32 %v1877_v53, %v3961_v59  ;;  %v1537_v35 = vmul.f32 %v1521_v54, %v4111_v50  ;;  %v1924_v56 = vadd.f32 %v1892_v40, %v1539_v27  ;;  %v1885_v59 = vld [vmem:[#allocation6 + $0x78] sm:$0xff] }
 0x520   :  { %2081 = vmatmul.f32.gmra.mxu0 %v1926_v20  ;;  %2104 = vmatmul.f32.gmra.mxu1 %v1927_v29  ;;  %v1540_v5 = vmul.f32 %v1524_v41, %v4141_v11  ;;  %v1530_v50 = vmul.f32 %v1506_v6, %v3965_v61  ;;  %v1898_v57 = vmul.f32 %v1882_v46, %v3963_v60  ;;  %v2350_v46 = vld [vmem:[%s4790_s13] sm:$0xff] }
 0x521   :  { %2127 = vmatmul.f32.gmra.mxu3 %v1928_v24  ;;  %2150 = vmatmul.f32.gmra.mxu2 %v1929_v39  ;;  %v1922_v13 = vadd.f32 %v1890_v36, %v1537_v35  ;;  %v1899_v9 = vmul.f32 %v1883_v37, %v3965_v61  ;;  %v1531_v11 = vmul.f32 %v1507_v48, %v3971_v63 }
 0x522   :  { %v1925_v25 = vadd.f32 %v1893_v62, %v1540_v5  ;;  %v1532_v42 = vmul.f32 %v1508_v43, %v3973_v0  ;;  %v1900_v45 = vmul.f32 %v1884_v4, %v3971_v63  ;;  %v1901_v28 = vmul.f32 %v1885_v59, %v3973_v0  ;;  %v2249_v63 = vld [vmem:[%s4797_s20 + $0x18] sm:$0xff]  ;;  %v2248_v0 = vld [vmem:[%s4797_s20 + $0x10] sm:$0xff] }
 0x523   :  { %v1545_v30 = vmul.f32 %v1529_v58, %v4154_v33  ;;  %v1546_v15 = vmul.f32 %v1530_v50, %v4157_v16  ;;  %v1547_v38 = vmul.f32 %v1531_v11, %v4209_v7  ;;  %2268 = vmatpush.msra.mxu0 %v2249_v63  ;;  %2301 = vmatpush.msra.mxu1 %v2249_v63  ;;  %v2247_v33 = vld [vmem:[%s4797_s20 + $0x8] sm:$0xff]  ;;  %v2246_v16 = vld [vmem:[%s4797_s20] sm:$0xff] }
 0x524   :  { %v1548_v47 = vmul.f32 %v1532_v42, %v4213_v34 }
 0x525   :  { %v1930_v31 = vadd.f32 %v1898_v57, %v1545_v30  ;;  %v1931_v60 = vadd.f32 %v1899_v9, %v1546_v15  ;;  %v1932_v2 = vadd.f32 %v1900_v45, %v1547_v38  ;;  %2269 = vmatpush.msra.mxu0 %v2248_v0  ;;  %2302 = vmatpush.msra.mxu1 %v2248_v0  ;;  %v2793_v15 = vld [vmem:[%s4822_s6 + $0x4] ss:$0 sm:$0xff] }
 0x526   :  { %v1933_v61 = vadd.f32 %v1901_v28, %v1548_v47 }
 0x527   :  { %2270 = vmatpush.msra.mxu0 %v2247_v33  ;;  %2303 = vmatpush.msra.mxu1 %v2247_v33  ;;  %v2343_v33 = vpop.permute.xlu0 %2342 }
 0x528   :  { %2170 = vmatmul.f32.vlgmr.msrb.gmra.mxu0 %v1922_v13  ;;  %2193 = vmatmul.f32.vlgmr.msrb.gmra.mxu1 %v1923_v55  ;;  %v2353_v55 = vld [vmem:[%s4790_s13 + $0x18] sm:$0xff] }
 0x529   :  { %2216 = vmatmul.f32.vlgmr.msra.gmra.mxu3 %v1924_v56  ;;  %2239 = vmatmul.f32.vlgmr.msrb.gmra.mxu2 %v1925_v25  ;;  %v2352_v25 = vld [vmem:[%s4790_s13 + $0x10] sm:$0xff]  ;;  %v2351_v56 = vld [vmem:[%s4790_s13 + $0x8] sm:$0xff] }
 0x52a   :  { %2271 = vmatpush.msra.mxu0 %v2246_v16  ;;  %2304 = vmatpush.msra.mxu1 %v2246_v16 }
 0x52b   :  { %2372 = vmatpush.msrb.mxu3 %v2353_v55 }
 0x52d   :  { %2373 = vmatpush.msrb.mxu3 %v2352_v25 }
 0x52f   :  { %2374 = vmatpush.msrb.mxu3 %v2351_v56 }
 0x530   :  { %2173 = vmatmul.f32.gmra.mxu0 %v1930_v31  ;;  %2196 = vmatmul.f32.gmra.mxu1 %v1931_v60  ;;  %v2794_v60 = vld [vmem:[%s4822_s6 + $0x5] ss:$0 sm:$0xff] }
 0x531   :  { %2219 = vmatmul.f32.gmra.mxu3 %v1932_v2  ;;  %2242 = vmatmul.f32.gmra.mxu2 %v1933_v61 }
 0x532   :  { %2375 = vmatpush.msrb.mxu3 %v2350_v46  ;;  %v2795_v46 = vld [vmem:[%s4822_s6 + $0x2] ss:$0 sm:$0xff] }
 0x592   :  { %v2079_v7 = vpop.f32.mrf.mxu0  ;;  %v2102_v34 = vpop.f32.mrf.mxu1 }
 0x593   :  { %v2103_v52 = vadd.f32 %v2102_v34, %v2079_v7 }
 0x599   :  { %v2125_v26 = vpop.f32.mrf.mxu3 }
 0x59a   :  { %v2148_v19 = vpop.f32.mrf.mxu2  ;;  %v2126_v8 = vadd.f32 %v2125_v26, %v2103_v52 }
 0x59c   :  { %v2149_v32 = vadd.f32 %v2148_v19, %v2126_v8 }
 0x59d   :  { %v2082_v51 = vpop.f32.mrf.mxu0  ;;  %v2105_v18 = vpop.f32.mrf.mxu1 }
 0x59e   :  { %v2106_v6 = vadd.f32 %v2105_v18, %v2082_v51  ;;  %v2345_v18 = vpop.permute.xlu2 %2344 }
 0x5a4   :  { %v2128_v17 = vpop.f32.mrf.mxu3  ;;  %v2151_v12 = vpop.f32.mrf.mxu2 }
 0x5a5   :  { %v2171_v3 = vpop.f32.mrf.mxu0  ;;  %v2194_v29 = vpop.f32.mrf.mxu1  ;;  %v2129_v24 = vadd.f32 %v2128_v17, %v2106_v6  ;;  %v2849_v17 = vld [vmem:[%s4819_s27] sm:$0xff]  ;;  %v2850_v6 = vld [vmem:[%s4819_s27 + $0x8] sm:$0xff]  ;;  %s2645_s27 = sshll.u32 %s4799_s22, 4  ;;  %s2935_s22 = smov [#allocation7]   ;;  %s2646_s27 = int_to_ptr.hbm [resolvable:$true] %s2645_s27 }
 0x5a6   :  { %v2172_v20 = vadd.f32 %v2171_v3, %v2149_v32  ;;  %s2630_s24 = sshll.u32 %s2935_s22, 4  ;;  %s2631_s24 = int_to_ptr.vmem [resolvable:$true] %s2630_s24 }
 0x5a7   :  { %v2152_v44 = vadd.f32 %v2151_v12, %v2129_v24 }
 0x5a8   :  { %v2195_v48 = vadd.f32 %v2194_v29, %v2172_v20 }
 0x5ac   :  { %v2217_v43 = vpop.f32.mrf.mxu3  ;;  %v2240_v39 = vpop.f32.mrf.mxu2 }
 0x5ad   :  { %v2218_v23 = vadd.f32 %v2217_v43, %v2195_v48  ;;  %v2174_v53 = vpop.f32.mrf.mxu0  ;;  %v2197_v49 = vpop.f32.mrf.mxu1 }
 0x5ae   :  { %v2175_v54 = vadd.f32 %v2174_v53, %v2152_v44 }
 0x5af   :  { %v2241_v21 = vadd.f32 %v2240_v39, %v2218_v23 }
 0x5b0   :  { %v2198_v36 = vadd.f32 %v2197_v49, %v2175_v54 }
 0x5b1   :  { %2761 = vmatmul.msk.f32.vlgmr.msra.gmra.mxu0 %vm82_vm0, %v2241_v21 }
 0x5b4   :  { %v2220_v14 = vpop.f32.mrf.mxu3  ;;  %v2243_v41 = vpop.f32.mrf.mxu2 }
 0x5b5   :  { %v2221_v1 = vadd.f32 %v2220_v14, %v2198_v36 }
 0x5b7   :  { %v2244_v62 = vadd.f32 %v2243_v41, %v2221_v1 }
 0x5b9   :  { %2762 = vmatmul.msk.f32.gmra.mxu0 %vm82_vm0, %v2244_v62 }
 0x62e   :  { %v2273_v40 = vpop.f32.mrf.mxu0 }
 0x62f   :  { %v2279_v35 = vsub.f32 %v2241_v21, %v2273_v40 }
 0x631   :  { %v2281_v22 = vmul.f32 %v2279_v35, %v2279_v35 }
 0x633   :  { %2763 = vmatmul.msk.f32.vlgmr.msra.gmra.mxu1 %vm82_vm0, %v2281_v22 }
 0x636   :  { %v2276_v27 = vpop.f32.mrf.mxu0 }
 0x637   :  { %v2280_v5 = vsub.f32 %v2244_v62, %v2276_v27 }
 0x639   :  { %v2282_v13 = vmul.f32 %v2280_v5, %v2280_v5 }
 0x63b   :  { %2764 = vmatmul.msk.f32.gmra.mxu1 %vm82_vm0, %v2282_v13 }
 0x6b0   :  { %v2306_v37 = vpop.f32.mrf.mxu1 }
 0x6b1   :  { %v2307_v4 = vadd.f32 0.00064, %v2306_v37 }
 0x6b3   :  { %2833 = vrsqrt.f32 %v2307_v4  ;;  %vm2318_vm7 = vweird.f32 %v2307_v4 }
 0x6b8   :  { %v2309_v59 = vpop.f32.mrf.mxu1 }
 0x6b9   :  { %v2834_v58 = vpop.eup %2833  ;;  %v2310_v50 = vadd.f32 0.00064, %v2309_v59 }
 0x6ba   :  { %v2313_v57 = vmul.f32 %v2834_v58, %v2307_v4  ;;  %vm2319_vm5 = vweird.f32 %v2834_v58 }
 0x6bb   :  { %2835 = vrsqrt.f32 %v2310_v50  ;;  %vm2320_vm9 = vmor %vm2318_vm7, %vm2319_vm5  ;;  %vm2328_vm12 = vweird.f32 %v2310_v50 }
 0x6bc   :  { %v2314_v9 = vmul.f32 %v2834_v58, %v2313_v57 }
 0x6be   :  { %v2315_v11 = vmul.f32 0.5, %v2314_v9 }
 0x6c0   :  { %v2316_v42 = vsub.f32 1.5, %v2315_v11 }
 0x6c1   :  { %v2836_v45 = vpop.eup %2835 }
 0x6c2   :  { %v2317_v28 = vmul.f32 %v2834_v58, %v2316_v42  ;;  %v2323_v30 = vmul.f32 %v2836_v45, %v2310_v50  ;;  %vm2329_vm11 = vweird.f32 %v2836_v45  ;;  %v2437_v42 = vld [vmem:[%s4827_s16] sm:$0x1] }
 0x6c3   :  { %vm2330_vm13 = vmor %vm2328_vm12, %vm2329_vm11 }
 0x6c4   :  { %v2321_v38 = vsel %vm2320_vm9, %v2834_v58, %v2317_v28  ;;  %v2324_v47 = vmul.f32 %v2836_v45, %v2323_v30  ;;  %v2797_v30 = vld [vmem:[%s4824_s29 + $0x7] ss:$0 sm:$0xff] }
 0x6c5   :  { %v2332_v31 = vmul.f32 %v2321_v38, %v2279_v35 }
 0x6c6   :  { %v2325_v2 = vmul.f32 0.5, %v2324_v47 }
 0x6c7   :  { %v2335_v61 = vmul.f32 %v2793_v15, %v2332_v31 }
 0x6c8   :  { %v2326_v63 = vsub.f32 1.5, %v2325_v2 }
 0x6c9   :  { %v2338_v0 = vadd.f32 %v2794_v60, %v2335_v61 }
 0x6ca   :  { %v2327_v16 = vmul.f32 %v2836_v45, %v2326_v63 }
 0x6cb   :  { %v2348_v7 = vmul.f32 %v2343_v33, %v2338_v0  ;;  %v2438_v33 = vld [vmem:[%s4827_s16 + $0x1] sm:$0x1]  ;;  %s2934_s16 = smov [#allocation11]  }
 0x6cc   :  { %v2331_v34 = vsel %vm2330_vm13, %v2836_v45, %v2327_v16  ;;  %s2658_s20 = sshll.u32 %s2934_s16, 4  ;;  %s2659_s20 = int_to_ptr.vmem [resolvable:$true] %s2658_s20 }
 0x6cd   :  { %v2333_v26 = vmul.f32 %v2331_v34, %v2280_v5  ;;  %2765 = vmatmul.msk.f32.vlgmr.msrb.gmra.mxu3 %vm82_vm0, %v2348_v7 }
 0x6cf   :  { %v2336_v19 = vmul.f32 %v2793_v15, %v2333_v26  ;;  %v2798_v15 = vld [vmem:[%s4824_s29 + $0x6] ss:$0 sm:$0xff] }
 0x6d1   :  { %v2339_v51 = vadd.f32 %v2794_v60, %v2336_v19 }
 0x6d3   :  { %v2349_v52 = vmul.f32 %v2345_v18, %v2339_v51 }
 0x6d5   :  { %2766 = vmatmul.msk.f32.gmra.mxu3 %vm82_vm0, %v2349_v52 }
 0x750   :  { %v2377_v8 = vpop.f32.mrf.mxu3 }
 0x751   :  { %v4616_v12 = vadd.f32 %v2849_v17, %v2377_v8  ;;  %v2485_v8 = vld [vmem:[%s4791_s14 + $0x70] sm:$0xff]  ;;  %v2486_v17 = vld [vmem:[%s4791_s14 + $0x78] sm:$0xff] }
 0x752   :  { %2501 = vmatpush.msra.mxu2 %v2485_v8  ;;  %2524 = vmatpush.msrb.mxu0 %v2486_v17 }
 0x753   :  { %v2385_v32 = vsel %vm82_vm0, %v4616_v12, 0.0 }
 0x754   :  { %2386 = vadd.xlane.f32.xlu1 %v2385_v32  ;;  %v2483_v32 = vld [vmem:[%s4791_s14 + $0x60] sm:$0xff] }
 0x755   :  { %2502 = vmatpush.msra.mxu2 %v2483_v32 }
 0x758   :  { %v2380_v3 = vpop.f32.mrf.mxu3 }
 0x759   :  { %v4623_v20 = vadd.f32 %v2850_v6, %v2380_v3  ;;  %v2484_v3 = vld [vmem:[%s4791_s14 + $0x68] sm:$0xff]  ;;  %v2481_v6 = vld [vmem:[%s4791_s14 + $0x50] sm:$0xff] }
 0x75a   :  { %2525 = vmatpush.msrb.mxu0 %v2484_v3  ;;  %2503 = vmatpush.msra.mxu2 %v2481_v6 }
 0x75b   :  { %v2388_v29 = vsel %vm82_vm0, %v4623_v20, 0.0 }
 0x75c   :  { %2389 = vadd.xlane.f32.xlu0 %v2388_v29  ;;  %v2482_v29 = vld [vmem:[%s4791_s14 + $0x58] sm:$0xff] }
 0x75d   :  { %2526 = vmatpush.msrb.mxu0 %v2482_v29 }
 0x7c7   :  { %v2387_v24 = vpop.xlane.xlu1 %2386 }
 0x7c8   :  { %v2391_v48 = vmul.f32 %v2387_v24, %v3071_v10  ;;  %v2479_v24 = vld [vmem:[%s4791_s14 + $0x40] sm:$0xff] }
 0x7c9   :  { %2504 = vmatpush.msra.mxu2 %v2479_v24 }
 0x7ca   :  { %v2393_v43 = vsub.f32 %v4616_v12, %v2391_v48  ;;  %v2480_v48 = vld [vmem:[%s4791_s14 + $0x48] sm:$0xff] }
 0x7cb   :  { %2527 = vmatpush.msrb.mxu0 %v2480_v48 }
 0x7cc   :  { %v2395_v39 = vmul.f32 %v2393_v43, %v2393_v43 }
 0x7ce   :  { %v2397_v44 = vsel %vm82_vm0, %v2395_v39, 0.0  ;;  %v2478_v39 = vld [vmem:[%s4791_s14 + $0x38] sm:$0xff] }
 0x7cf   :  { %2398 = vadd.xlane.f32.xlu2 %v2397_v44  ;;  %v2390_v23 = vpop.xlane.xlu0 %2389  ;;  %v2475_v44 = vld [vmem:[%s4791_s14 + $0x20] sm:$0xff]  ;;  %2528 = vmatpush.msrb.mxu0 %v2478_v39 }
 0x7d0   :  { %v2392_v53 = vmul.f32 %v2390_v23, %v3071_v10  ;;  %v2476_v23 = vld [vmem:[%s4791_s14 + $0x28] sm:$0xff] }
 0x7d1   :  { %2529 = vmatpush.msrb.mxu0 %v2476_v23 }
 0x7d2   :  { %v2394_v21 = vsub.f32 %v4623_v20, %v2392_v53  ;;  %v2473_v53 = vld [vmem:[%s4791_s14 + $0x10] sm:$0xff] }
 0x7d4   :  { %v2396_v54 = vmul.f32 %v2394_v21, %v2394_v21 }
 0x7d6   :  { %v2400_v49 = vsel %vm82_vm0, %v2396_v54, 0.0  ;;  %v2471_v54 = vld [vmem:[%s4791_s14] sm:$0xff] }
 0x7d7   :  { %2401 = vadd.xlane.f32.xlu1 %v2400_v49  ;;  %v2472_v49 = vld [vmem:[%s4791_s14 + $0x8] sm:$0xff] }
 0x842   :  { %v2399_v36 = vpop.xlane.xlu2 %2398 }
 0x843   :  { %v2403_v14 = vmul.f32 %v2399_v36, %v3071_v10  ;;  %v2558_v36 = vld [vmem:[%s4792_s15 + $0x78] sm:$0xff] }
 0x844   :  { %2559 = vmatpush.msrb.mxu1 %v2558_v36 }
 0x845   :  { %v2405_v1 = vadd.f32 1e-05, %v2403_v14  ;;  %v2557_v14 = vld [vmem:[%s4792_s15 + $0x70] sm:$0xff] }
 0x846   :  { %2560 = vmatpush.msrb.mxu1 %v2557_v14 }
 0x847   :  { %2837 = vrsqrt.f32 %v2405_v1  ;;  %vm2413_vm15 = vweird.f32 %v2405_v1 }
 0x84a   :  { %v2402_v41 = vpop.xlane.xlu1 %2401 }
 0x84b   :  { %v2404_v62 = vmul.f32 %v2402_v41, %v3071_v10  ;;  %v2796_v10 = vld [vmem:[%s4822_s6 + $0x3] ss:$0 sm:$0xff] }
 0x84c   :  { %v2555_v41 = vld [vmem:[%s4792_s15 + $0x60] sm:$0xff] }
 0x84d   :  { %v2838_v40 = vpop.eup %2837  ;;  %v2406_v35 = vadd.f32 1e-05, %v2404_v62  ;;  %v2554_v62 = vld [vmem:[%s4792_s15 + $0x58] sm:$0xff] }
 0x84e   :  { %v2408_v22 = vmul.f32 %v2838_v40, %v2405_v1  ;;  %vm2414_vm14 = vweird.f32 %v2838_v40  ;;  %v2556_v1 = vld [vmem:[%s4792_s15 + $0x68] sm:$0xff] }
 0x84f   :  { %2839 = vrsqrt.f32 %v2406_v35  ;;  %vm2415_vm1 = vmor %vm2413_vm15, %vm2414_vm14  ;;  %vm2423_vm3 = vweird.f32 %v2406_v35  ;;  %2561 = vmatpush.msrb.mxu1 %v2556_v1 }
 0x850   :  { %v2409_v27 = vmul.f32 %v2838_v40, %v2408_v22  ;;  %v2551_v22 = vld [vmem:[%s4792_s15 + $0x40] sm:$0xff] }
 0x851   :  { %2562 = vmatpush.msrb.mxu1 %v2555_v41 }
 0x852   :  { %v2410_v5 = vmul.f32 0.5, %v2409_v27  ;;  %v2550_v27 = vld [vmem:[%s4792_s15 + $0x38] sm:$0xff] }
 0x853   :  { %2563 = vmatpush.msrb.mxu1 %v2554_v62 }
 0x854   :  { %v2411_v13 = vsub.f32 1.5, %v2410_v5  ;;  %v2549_v5 = vld [vmem:[%s4792_s15 + $0x30] sm:$0xff] }
 0x855   :  { %v2840_v55 = vpop.eup %2839 }
 0x856   :  { %v2412_v25 = vmul.f32 %v2838_v40, %v2411_v13  ;;  %v2418_v56 = vmul.f32 %v2840_v55, %v2406_v35  ;;  %vm2424_vm2 = vweird.f32 %v2840_v55  ;;  %v2552_v35 = vld [vmem:[%s4792_s15 + $0x48] sm:$0xff] }
 0x857   :  { %vm2425_vm4 = vmor %vm2423_vm3, %vm2424_vm2 }
 0x858   :  { %v2416_v37 = vsel %vm2415_vm1, %v2838_v40, %v2412_v25  ;;  %v2419_v4 = vmul.f32 %v2840_v55, %v2418_v56  ;;  %v2553_v40 = vld [vmem:[%s4792_s15 + $0x50] sm:$0xff] }
 0x859   :  { %v2427_v59 = vmul.f32 %v2416_v37, %v2393_v43  ;;  %v2477_v43 = vld [vmem:[%s4791_s14 + $0x30] sm:$0xff]  ;;  %2564 = vmatpush.msrb.mxu1 %v2553_v40  ;;  %v2547_v37 = vld [vmem:[%s4792_s15 + $0x20] sm:$0xff] }
 0x85a   :  { %v2420_v58 = vmul.f32 0.5, %v2419_v4  ;;  %2505 = vmatpush.msra.mxu2 %v2477_v43  ;;  %v2546_v4 = vld [vmem:[%s4792_s15 + $0x18] sm:$0xff] }
 0x85b   :  { %v2430_v50 = vmul.f32 %v2795_v46, %v2427_v59  ;;  %2565 = vmatpush.msrb.mxu1 %v2552_v35  ;;  %v2544_v59 = vld [vmem:[%s4792_s15 + $0x8] sm:$0xff] }
 0x85c   :  { %v2421_v57 = vsub.f32 1.5, %v2420_v58  ;;  %2506 = vmatpush.msra.mxu2 %v2475_v44  ;;  %v2543_v58 = vld [vmem:[%s4792_s15] sm:$0xff] }
 0x85d   :  { %v2433_v9 = vadd.f32 %v2796_v10, %v2430_v50  ;;  %2566 = vmatpush.msrb.mxu1 %v2551_v22 }
 0x85e   :  { %v2422_v11 = vmul.f32 %v2840_v55, %v2421_v57  ;;  %2507 = vmatpush.msra.mxu2 %v2473_v53 }
 0x85f   :  { %v2441_v45 = vrot.slane %v2433_v9, 7  ;;  %2435 = vst.msk [vmem:[#allocation11 - $0x7] sm:$0x80] %vm140_vm6, %v2433_v9  ;;  %2567 = vmatpush.msrb.mxu1 %v2550_v27 }
 0x860   :  { %v2426_v28 = vsel %vm2425_vm4, %v2840_v55, %v2422_v11  ;;  %2508 = vmatpush.msra.mxu2 %v2471_v54 }
 0x861   :  { %v2428_v38 = vmul.f32 %v2426_v28, %v2394_v21  ;;  %v2445_v47 = vsel %vm151_vm8, %v2437_v42, %v2441_v45  ;;  %v2474_v21 = vld [vmem:[%s4791_s14 + $0x18] sm:$0xff]  ;;  %2568 = vmatpush.msrb.mxu1 %v2549_v5  ;;  %s2931_s14 = smov [#allocation9]  }
 0x862   :  { %v2447_v31 = vsub.f32 %v2445_v47, %v2433_v9  ;;  %2530 = vmatpush.msrb.mxu0 %v2474_v21  ;;  %s2643_s8 = sshll.u32 %s2931_s14, 4  ;;  %s2644_s8 = int_to_ptr.vmem [resolvable:$true] %s2643_s8 }
 0x863   :  { %v2431_v60 = vmul.f32 %v2795_v46, %v2428_v38  ;;  %v2548_v46 = vld [vmem:[%s4792_s15 + $0x28] sm:$0xff] }
 0x864   :  { %v2457_v2 = vmul.f32 %v2797_v30, %v2447_v31  ;;  %v2452_v61 = vmul.f32 %v2798_v15, %v2447_v31  ;;  %2531 = vmatpush.msrb.mxu0 %v2472_v49  ;;  %2569 = vmatpush.msrb.mxu1 %v2548_v46  ;;  %2651 = dma.vmem_to_hbm [thread:$0]  %s2644_s8, 32, %s2646_s27, [#allocation10], %s2932_s10, %s2932_s10, %s2933_s11  }
 0x865   :  { %v2434_v63 = vadd.f32 %v2796_v10, %v2431_v60  ;;  %v2545_v10 = vld [vmem:[%s4792_s15 + $0x10] sm:$0xff] }
 0x866   :  { %v2459_v0 = vadd.f32 %v2457_v2, %v2433_v9  ;;  %v4655_v16 = vadd.f32 %v2452_v61, %v2433_v9  ;;  %2570 = vmatpush.msrb.mxu1 %v2547_v37 }
 0x867   :  { %v2442_v7 = vrot.slane %v2434_v63, 7  ;;  %2436 = vst.msk [vmem:[#allocation11 - $0x6] sm:$0x80] %vm140_vm6, %v2434_v63 }
 0x868   :  { %2463 = vrot.lane.b32.xlu0 %v2459_v0, %s2930_s7  ;;  %2571 = vmatpush.msrb.mxu1 %v2546_v4 }
 0x869   :  { %v2446_v34 = vsel %vm151_vm8, %v2438_v33, %v2442_v7  ;;  %2666 = dma.vmem_to_hbm [thread:$0]  %s2659_s20, 32, %s2661_s17, [#allocation10], %s2932_s10, %s2932_s10, %s2933_s11  }
 0x86a   :  { %v2448_v26 = vsub.f32 %v2446_v34, %v2434_v63  ;;  %2572 = vmatpush.msrb.mxu1 %v2545_v10 }
 0x86c   :  { %v2458_v19 = vmul.f32 %v2797_v30, %v2448_v26  ;;  %v2453_v51 = vmul.f32 %v2798_v15, %v2448_v26  ;;  %2573 = vmatpush.msrb.mxu1 %v2544_v59 }
 0x86e   :  { %v2460_v18 = vadd.f32 %v2458_v19, %v2434_v63  ;;  %v2455_v52 = vadd.f32 %v2453_v51, %v2434_v63  ;;  %2574 = vmatpush.msrb.mxu1 %v2543_v58 }
 0x870   :  { %2465 = vrot.lane.b32.xlu2 %v2460_v18, %s2930_s7 }
 0x8ca   :  { %v2466_v25 = vpop.permute.xlu2 %2465 }
 0x8cb   :  { %v2470_v56 = vsel %vm82_vm0, %v2455_v52, %v2466_v25 }
 0x8da   :  { %v2464_v13 = vpop.permute.xlu0 %2463 }
 0x8db   :  { %v2469_v55 = vsel %vm82_vm0, %v4655_v16, %v2464_v13 }
 0x8dc   :  { %2767 = vmatmul.msk.f32.vlgmr.msra.gmra.mxu2 %vm450_vm10, %v2469_v55  ;;  %2769 = vmatmul.msk.f32.vlgmr.msrb.gmra.mxu0 %vm450_vm10, %v2469_v55 }
 0x8e4   :  { %2768 = vmatmul.msk.f32.gmra.mxu2 %vm450_vm10, %v2470_v56  ;;  %2770 = vmatmul.msk.f32.gmra.mxu0 %vm450_vm10, %v2470_v56 }
 0x959   :  { %v2533_v28 = vpop.f32.mrf.mxu0 }
 0x95a   :  { %v2771_v30 = vmul.f32 -1.442695, %v2533_v28 }
 0x95c   :  { %2841 = vpow2.f32 %v2771_v30 }
 0x95f   :  { %v2510_v50 = vpop.f32.mrf.mxu2 }
 0x960   :  { %v2539_v57 = vmax.f32 %v2510_v50, 0.0 }
 0x961   :  { %v2536_v15 = vpop.f32.mrf.mxu0 }
 0x962   :  { %v2541_v9 = vmul.f32 %v2539_v57, %v2539_v57  ;;  %v2772_v38 = vmul.f32 -1.442695, %v2536_v15  ;;  %v2842_v47 = vpop.eup %2841 }
 0x963   :  { %v2588_v31 = vadd.f32 1.0, %v2842_v47 }
 0x964   :  { %2575 = vmatmul.f32.vlgmr.msrb.gmra.mxu1 %v2541_v9  ;;  %2843 = vpow2.f32 %v2772_v38 }
 0x965   :  { %2845 = vrcp.f32 %v2588_v31  ;;  %v2601_v19 = vand.u32 2147483648, %v2588_v31  ;;  %vm2595_vm8 = vweird.f32 %v2588_v31  ;;  %v2599_v51 = vand.u32 2147483647, %v2588_v31 }
 0x967   :  { %v2513_v11 = vpop.f32.mrf.mxu2  ;;  %v2602_v8 = vor.u32 1.1754944e-38, %v2601_v19  ;;  %vm2600_vm5 = vcmp.eq.f32.partialorder %v2599_v51, 8.507059e+37 }
 0x968   :  { %v2540_v42 = vmax.f32 %v2513_v11, 0.0 }
 0x96a   :  { %v2542_v45 = vmul.f32 %v2540_v42, %v2540_v42  ;;  %v2844_v60 = vpop.eup %2843 }
 0x96b   :  { %v2589_v2 = vadd.f32 1.0, %v2844_v60  ;;  %v2846_v61 = vpop.eup %2845 }
 0x96c   :  { %2578 = vmatmul.f32.gmra.mxu1 %v2542_v45  ;;  %v2591_v63 = vmul.f32 %v2846_v61, %v2588_v31  ;;  %vm2596_vm6 = vweird.f32 %v2846_v61 }
 0x96d   :  { %2847 = vrcp.f32 %v2589_v2  ;;  %vm2597_vm10 = vmor %vm2595_vm8, %vm2596_vm6  ;;  %v2616_v29 = vand.u32 2147483648, %v2589_v2  ;;  %vm2610_vm9 = vweird.f32 %v2589_v2  ;;  %v2614_v48 = vand.u32 2147483647, %v2589_v2 }
 0x96e   :  { %v2592_v0 = vsub.f32 1.0, %v2591_v63 }
 0x96f   :  { %v2617_v39 = vor.u32 1.1754944e-38, %v2616_v29  ;;  %vm2615_vm12 = vcmp.eq.f32.partialorder %v2614_v48, 8.507059e+37 }
 0x970   :  { %v2593_v16 = vmul.f32 %v2846_v61, %v2592_v0 }
 0x972   :  { %v2594_v34 = vadd.f32 %v2846_v61, %v2593_v16 }
 0x973   :  { %v2848_v33 = vpop.eup %2847 }
 0x974   :  { %v2606_v7 = vmul.f32 %v2848_v33, %v2589_v2  ;;  %v2598_v18 = vsel %vm2597_vm10, %v2846_v61, %v2594_v34  ;;  %vm2611_vm7 = vweird.f32 %v2848_v33 }
 0x975   :  { %v2603_v32 = vsel %vm2600_vm5, %v2602_v8, %v2598_v18  ;;  %vm2612_vm11 = vmor %vm2610_vm9, %vm2611_vm7 }
 0x976   :  { %v2607_v26 = vsub.f32 1.0, %v2606_v7 }
 0x978   :  { %v2608_v52 = vmul.f32 %v2848_v33, %v2607_v26 }
 0x97a   :  { %v2609_v6 = vadd.f32 %v2848_v33, %v2608_v52 }
 0x97c   :  { %v2613_v43 = vsel %vm2612_vm11, %v2848_v33, %v2609_v6 }
 0x97d   :  { %v2618_v23 = vsel %vm2615_vm12, %v2617_v39, %v2613_v43 }
 0x9e1   :  { %v2576_v17 = vpop.f32.mrf.mxu1 }
 0x9e2   :  { %v2620_v3 = vmul.f32 %v2603_v32, %v2576_v17 }
 0x9e4   :  { %v2622_v24 = vadd.f32 %v2620_v3, %v4616_v12 }
 0x9e6   :  { %2624 = vst.msk [vmem:[#allocation7] sm:$0xff] %vm82_vm0, %v2622_v24 }
 0x9e9   :  { %v2579_v44 = vpop.f32.mrf.mxu1 }
 0x9ea   :  { %v2621_v53 = vmul.f32 %v2618_v23, %v2579_v44 }
 0x9ec   :  { %v2623_v12 = vadd.f32 %v2621_v53, %v4623_v20 }
 0x9ee   :  { %2625 = vst.msk [vmem:[#allocation7 + $0x8] sm:$0xff] %vm82_vm0, %v2623_v12 }
 0x9ef   :  { %2638 = dma.vmem_to_hbm [thread:$0]  %s2631_s24, 256, %s2633_s1, [#allocation8], %s2936_s2, %s2936_s2, %s2937_s9  }
 0x9f0   :  { %2923 = dma.done.wait [#allocation8], 256  }
 0x9f1   :  { %2924 = vsyncadd [#allocation8], 4294967040 }
 0x9f2   :  { %2925 = dma.done.wait [#allocation10], 64  }
 0x9f3   :  { %2926 = vsyncadd [#allocation10], 4294967232 }
 0x9f4   :  { %2681 = vsyncpa [#allocation8], 1 }
 0x9f5   :  { %2682 = vsyncpa [#allocation10], 1 }

</bundles_post_ra>
